<compile_context>
chip_gen: v7x
topology: tpu7x:2x2x1
jax: 0.10.0
libtpu: 0.0.40
codegen_flags: <defaults>
</compile_context>

<pallas_src>
import functools
import math

import jax
import jax.numpy as jnp
from jax.experimental import pallas as pl
from jax.experimental.pallas import tpu as pltpu


_VMEM_SPEC = pl.BlockSpec(memory_space=pltpu.MemorySpace.VMEM)


def _align8(n):
    return -(-n // 8) * 8


# ------------------------------ fused kernel -------------------------------

def _make_fused_kernel(n_layers, D, H, O, T, B):
    """Fused kernel: n_layers stacked LSTM layers + Linear head.

    Ref layout (all VMEM, f32):
      x_ref   : (B, T, D)           batch-major, as given by the caller
      w_ref   : (ROWS, 4H) packed   per layer: [w_ih | w_hh | bias] blocks
                                    (8-row aligned), then [w_fc | b_fc]
                                    (FC lane-padded to 4H); gate order
                                    along lanes is [i, f, o, g], bias is
                                    b_ih + b_hh folded once.
      out_ref : (B, O)
      seq_scr : (B, T, H) VMEM scratch for the inter-layer hidden sequence.
    """
    G = 4 * H

    # Static row offsets into the packed weight buffer (must match pack_params).
    offs = []
    row = 0
    for layer in range(n_layers):
        d_in = D if layer == 0 else H
        o_ih = row; row += _align8(d_in)
        o_hh = row; row += _align8(H)
        o_b = row;  row += 8
        offs.append((o_ih, d_in, o_hh, o_b))
    o_fcw = row; row += _align8(H)
    o_fcb = row; row += 8
    total_rows = row

    hp = jax.lax.Precision.HIGHEST

    def kernel(x_ref, w_ref, out_ref, seq_scr):

        def proj(inp, o_w, rows, o_b):
            # One packed (N, rows) @ (rows, 4H) matmul with bias folded in.
            w = w_ref[o_w:o_w + rows, :]                    # (rows, G)
            b = w_ref[o_b:o_b + 1, :]                       # (1, G)
            return jnp.dot(inp, w, precision=hp,
                           preferred_element_type=jnp.float32) + b

        # ---- layer 0 input projection for ALL timesteps (one matmul) ----
        o_ih, _, _, o_b = offs[0]
        gx = proj(x_ref[...].reshape(B * T, D), o_ih, D, o_b).reshape(B, T, G)

        h = None
        for layer in range(n_layers):
            o_ih, d_in, o_hh, o_b = offs[layer]
            if layer > 0:
                # Previous layer's hidden sequence lives in VMEM scratch.
                gx = proj(seq_scr[...].reshape(B * T, H), o_ih, H,
                          o_b).reshape(B, T, G)

            w_hh = w_ref[o_hh:o_hh + H, :]                  # (H, G), loaded once
            want_seq = layer < n_layers - 1

            hh = jnp.zeros((B, H), jnp.float32)
            c = jnp.zeros((B, H), jnp.float32)
            for t in range(T):                              # T static -> unrolled
                # One MXU push per step on the serial h->h chain.
                acc = gx[:, t, :]
                acc = acc + jnp.dot(hh, w_hh, precision=hp,
                                    preferred_element_type=jnp.float32)
                # Packed nonlinearity: one sigmoid push (lanes i|f|o|*) +
                # one partial tanh push (lanes of gate g).
                sg = jax.nn.sigmoid(acc)                    # (B, 4H)
                gg = jnp.tanh(acc[:, 3 * H:])               # (B, H)
                c = sg[:, H:2 * H] * c + sg[:, :H] * gg
                hh = sg[:, 2 * H:3 * H] * jnp.tanh(c)
                if want_seq:
                    seq_scr[:, t, :] = hh                   # bound live range
            h = hh

        # Dropout is identity at inference; Linear head on last hidden state.
        # TODO(synk): add a PRNG-based dropout mask path for training mode.
        y = proj(h, o_fcw, H, o_fcb)                        # (B, G) lane-padded
        out_ref[...] = y[:, :O].astype(out_ref.dtype)

    return kernel, total_rows


# --------------------------------- wrapper ----------------------------------

@functools.partial(jax.jit,
                   static_argnames=("n_layers", "n_units", "out_features"))
def lstm_model_forward(x, w_packed, *, n_layers, n_units, out_features):
    """x: (B, T, in_features) f32, w_packed: (rows, 4H) f32 -> (B, out_features)."""
    B, T, D = x.shape
    H, O = n_units, out_features

    kernel, total_rows = _make_fused_kernel(n_layers, D, H, O, T, B)
    assert w_packed.shape == (total_rows, 4 * H), (w_packed.shape, total_rows)

    out = pl.pallas_call(
        kernel,
        out_shape=jax.ShapeDtypeStruct((B, O), x.dtype),
        in_specs=[_VMEM_SPEC, _VMEM_SPEC],
        out_specs=_VMEM_SPEC,
        scratch_shapes=[pltpu.VMEM((B, T, H), jnp.float32)],
    )(x, w_packed)
    # TODO(synk): at large T/B/H, stream time/batch tiles via a BlockSpec grid
    # (re-tiled for v7x's 64 MiB VMEM) instead of whole-array VMEM operands.
    return out


# ----------------------- deterministic parameter init -----------------------

def init_params(key, in_features, out_features, n_layers, n_units):
    """PyTorch-style uniform(-1/sqrt(H), 1/sqrt(H)) init, deterministic."""
    H = n_units
    k_lstm = 1.0 / math.sqrt(H)
    raw_lstm = []       # PyTorch layout (for the pure-JAX reference)
    for layer in range(n_layers):
        d_in = in_features if layer == 0 else H
        key, k1, k2, k3, k4 = jax.random.split(key, 5)
        w_ih = jax.random.uniform(k1, (4 * H, d_in), jnp.float32, -k_lstm, k_lstm)
        w_hh = jax.random.uniform(k2, (4 * H, H), jnp.float32, -k_lstm, k_lstm)
        b_ih = jax.random.uniform(k3, (4 * H,), jnp.float32, -k_lstm, k_lstm)
        b_hh = jax.random.uniform(k4, (4 * H,), jnp.float32, -k_lstm, k_lstm)
        raw_lstm.append((w_ih, w_hh, b_ih, b_hh))

    k_fc = 1.0 / math.sqrt(H)
    key, k1, k2 = jax.random.split(key, 3)
    w_fc = jax.random.uniform(k1, (out_features, H), jnp.float32, -k_fc, k_fc)
    b_fc = jax.random.uniform(k2, (out_features,), jnp.float32, -k_fc, k_fc)
    return raw_lstm, (w_fc, b_fc)


def pack_params(raw_lstm, raw_fc, in_features, n_units, out_features):
    """Pack all weights into one (rows, 4H) buffer: per layer
    [w_ih | w_hh | bias] (gate order [i,f,o,g], 8-row aligned blocks), then
    the FC head lane-padded to 4H.  Done once outside the jitted forward."""
    H, O = n_units, out_features
    G = 4 * H
    assert O <= G, "FC head wider than 4H not supported by lane-packing"
    perm = jnp.array([0, 1, 3, 2])      # PyTorch [i, f, g, o] -> [i, f, o, g]

    def pad_rows(a, rows):
        return jnp.pad(a, ((0, rows - a.shape[0]), (0, 0)))

    blocks = []
    for layer, (w_ih, w_hh, b_ih, b_hh) in enumerate(raw_lstm):
        d_in = in_features if layer == 0 else H
        w_ih_p = jnp.transpose(w_ih.reshape(4, H, d_in)[perm],
                               (2, 0, 1)).reshape(d_in, G)
        w_hh_p = jnp.transpose(w_hh.reshape(4, H, H)[perm],
                               (2, 0, 1)).reshape(H, G)
        b_p = (b_ih + b_hh).reshape(4, H)[perm].reshape(1, G)
        blocks += [pad_rows(w_ih_p, _align8(d_in)),
                   pad_rows(w_hh_p, _align8(H)),
                   pad_rows(b_p, 8)]

    w_fc, b_fc = raw_fc
    w_fc_p = jnp.pad(w_fc.T, ((0, 0), (0, G - O)))          # (H, G)
    b_fc_p = jnp.pad(b_fc.reshape(1, O), ((0, 0), (0, G - O)))
    blocks += [pad_rows(w_fc_p, _align8(H)), pad_rows(b_fc_p, 8)]
    return jnp.concatenate(blocks, axis=0)


# ----------------------------- pure-JAX reference ----------------------------

def ref_forward(x, raw_lstm, raw_fc):
    hp = jax.lax.Precision.HIGHEST
    B, T, _ = x.shape
    seq = x
    for (w_ih, w_hh, b_ih, b_hh) in raw_lstm:
        H = w_hh.shape[1]
        h = jnp.zeros((B, H), jnp.float32)
        c = jnp.zeros((B, H), jnp.float32)
        outs = []
        for t in range(T):
            gates = (jnp.dot(seq[:, t, :], w_ih.T, precision=hp) + b_ih
                     + jnp.dot(h, w_hh.T, precision=hp) + b_hh)
            i_g, f_g, g_g, o_g = jnp.split(gates, 4, axis=-1)
            c = jax.nn.sigmoid(f_g) * c + jax.nn.sigmoid(i_g) * jnp.tanh(g_g)
            h = jax.nn.sigmoid(o_g) * jnp.tanh(c)
            outs.append(h)
        seq = jnp.stack(outs, axis=1)
    w_fc, b_fc = raw_fc
    return jnp.dot(seq[:, -1, :], w_fc.T, precision=hp) + b_fc


# ----------------------------------- main ------------------------------------

if __name__ == "__main__":
    in_features, out_features = 4, 4
    n_layers, n_units = 2, 32
    dropout = 0.1            # identity at inference time
    B, T = 2, 8

    key = jax.random.PRNGKey(0)
    key, xkey = jax.random.split(key)
    x = jax.random.normal(xkey, (B, T, in_features), jnp.float32)

    raw_lstm, raw_fc = init_params(key, in_features, out_features,
                                   n_layers, n_units)
    w_packed = pack_params(raw_lstm, raw_fc, in_features, n_units, out_features)

    out = lstm_model_forward(x, w_packed, n_layers=n_layers, n_units=n_units,
                             out_features=out_features)
    out = jax.block_until_ready(out)

    ref = jax.block_until_ready(ref_forward(x, raw_lstm, raw_fc))
    assert out.shape == (B, out_features)
    assert jnp.allclose(out, ref, rtol=1e-4, atol=1e-5), (out, ref)

    print("KERNEL_OK")
</pallas_src>

<mosaic_0001>
module attributes {stable_mosaic.version = 11 : i64} {
  func.func @kernel(%arg0: memref<2x8x4xf32, #tpu.memory_space<vmem>>, %arg1: memref<160x128xf32, #tpu.memory_space<vmem>>, %arg2: memref<2x4xf32, #tpu.memory_space<vmem>>, %arg3: memref<2x8x32xf32, #tpu.memory_space<vmem>>) attributes {dimension_semantics = [], scalar_prefetch = 0 : i64, scratch_operands = 1 : i64, tpu.core_type = #tpu.core_type<tc>} {
    %c0 = arith.constant 0 : index
    %c0_0 = arith.constant 0 : index
    %c0_1 = arith.constant 0 : index
    %0 = vector.load %arg0[%c0, %c0_0, %c0_1] : memref<2x8x4xf32, #tpu.memory_space<vmem>>, vector<2x8x4xf32>
    %1 = vector.shape_cast %0 : vector<2x8x4xf32> to vector<16x4xf32>
    %c0_2 = arith.constant 0 : index
    %c0_3 = arith.constant 0 : index
    %2 = vector.load %arg1[%c0_2, %c0_3] : memref<160x128xf32, #tpu.memory_space<vmem>>, vector<4x128xf32>
    %c40 = arith.constant 40 : index
    %c0_4 = arith.constant 0 : index
    %3 = vector.load %arg1[%c40, %c0_4] : memref<160x128xf32, #tpu.memory_space<vmem>>, vector<1x128xf32>
    %cst = arith.constant dense<0.000000e+00> : vector<16x128xf32>
    %4 = tpu.matmul %1, %2, %cst {dimension_numbers = #tpu.dot_dimension_numbers<[1], [0], [0], [1], [0, 0, 1, 1], [], []>, precision = #tpu.contract_precision<fp32>} : vector<16x4xf32>, vector<4x128xf32>, vector<16x128xf32> -> vector<16x128xf32>
    %5 = vector.broadcast %3 : vector<1x128xf32> to vector<16x128xf32>
    %6 = arith.addf %4, %5 : vector<16x128xf32>
    %7 = vector.shape_cast %6 : vector<16x128xf32> to vector<2x8x128xf32>
    %c8 = arith.constant 8 : index
    %c0_5 = arith.constant 0 : index
    %8 = vector.load %arg1[%c8, %c0_5] : memref<160x128xf32, #tpu.memory_space<vmem>>, vector<32x128xf32>
    %cst_6 = arith.constant 0.000000e+00 : f32
    %9 = vector.broadcast %cst_6 : f32 to vector<2x32xf32>
    %cst_7 = arith.constant 0.000000e+00 : f32
    %10 = vector.broadcast %cst_7 : f32 to vector<2x32xf32>
    %11 = vector.extract_strided_slice %7 {offsets = [0, 0, 0], sizes = [2, 1, 128], strides = [1, 1, 1]} : vector<2x8x128xf32> to vector<2x1x128xf32>
    %12 = vector.shape_cast %11 : vector<2x1x128xf32> to vector<2x128xf32>
    %cst_8 = arith.constant dense<0.000000e+00> : vector<2x128xf32>
    %13 = tpu.matmul %9, %8, %cst_8 {dimension_numbers = #tpu.dot_dimension_numbers<[1], [0], [0], [1], [0, 0, 1, 1], [], []>, precision = #tpu.contract_precision<fp32>} : vector<2x32xf32>, vector<32x128xf32>, vector<2x128xf32> -> vector<2x128xf32>
    %14 = arith.addf %12, %13 : vector<2x128xf32>
    %15 = arith.negf %14 : vector<2x128xf32>
    %16 = math.exp %15 : vector<2x128xf32>
    %cst_9 = arith.constant 1.000000e+00 : f32
    %17 = vector.broadcast %cst_9 : f32 to vector<2x128xf32>
    %18 = arith.addf %17, %16 : vector<2x128xf32>
    %19 = arith.divf %17, %18 : vector<2x128xf32>
    %20 = vector.extract_strided_slice %14 {offsets = [0, 96], sizes = [2, 32], strides = [1, 1]} : vector<2x128xf32> to vector<2x32xf32>
    %21 = math.tanh %20 : vector<2x32xf32>
    %22 = vector.extract_strided_slice %19 {offsets = [0, 32], sizes = [2, 32], strides = [1, 1]} : vector<2x128xf32> to vector<2x32xf32>
    %23 = arith.mulf %22, %10 : vector<2x32xf32>
    %24 = vector.extract_strided_slice %19 {offsets = [0, 0], sizes = [2, 32], strides = [1, 1]} : vector<2x128xf32> to vector<2x32xf32>
    %25 = arith.mulf %24, %21 : vector<2x32xf32>
    %26 = arith.addf %23, %25 : vector<2x32xf32>
    %27 = vector.extract_strided_slice %19 {offsets = [0, 64], sizes = [2, 32], strides = [1, 1]} : vector<2x128xf32> to vector<2x32xf32>
    %28 = math.tanh %26 : vector<2x32xf32>
    %29 = arith.mulf %27, %28 : vector<2x32xf32>
    %c0_10 = arith.constant 0 : index
    %c0_11 = arith.constant 0 : index
    %c0_12 = arith.constant 0 : index
    %30 = vector.load %arg3[%c0_10, %c0_11, %c0_12] : memref<2x8x32xf32, #tpu.memory_space<vmem>>, vector<2x1x32xf32>
    %31 = vector.shape_cast %30 : vector<2x1x32xf32> to vector<2x32xf32>
    %32 = vector.shape_cast %29 : vector<2x32xf32> to vector<2x1x32xf32>
    tpu.vector_store %arg3[%c0_10, %c0_11, %c0_12], %32 {strides = array<i32>} : memref<2x8x32xf32, #tpu.memory_space<vmem>>, vector<2x1x32xf32>,
    %33 = vector.extract_strided_slice %7 {offsets = [0, 1, 0], sizes = [2, 1, 128], strides = [1, 1, 1]} : vector<2x8x128xf32> to vector<2x1x128xf32>
    %34 = vector.shape_cast %33 : vector<2x1x128xf32> to vector<2x128xf32>
    %cst_13 = arith.constant dense<0.000000e+00> : vector<2x128xf32>
    %35 = tpu.matmul %29, %8, %cst_13 {dimension_numbers = #tpu.dot_dimension_numbers<[1], [0], [0], [1], [0, 0, 1, 1], [], []>, precision = #tpu.contract_precision<fp32>} : vector<2x32xf32>, vector<32x128xf32>, vector<2x128xf32> -> vector<2x128xf32>
    %36 = arith.addf %34, %35 : vector<2x128xf32>
    %37 = arith.negf %36 : vector<2x128xf32>
    %38 = math.exp %37 : vector<2x128xf32>
    %cst_14 = arith.constant 1.000000e+00 : f32
    %39 = vector.broadcast %cst_14 : f32 to vector<2x128xf32>
    %40 = arith.addf %39, %38 : vector<2x128xf32>
    %41 = arith.divf %39, %40 : vector<2x128xf32>
    %42 = vector.extract_strided_slice %36 {offsets = [0, 96], sizes = [2, 32], strides = [1, 1]} : vector<2x128xf32> to vector<2x32xf32>
    %43 = math.tanh %42 : vector<2x32xf32>
    %44 = vector.extract_strided_slice %41 {offsets = [0, 32], sizes = [2, 32], strides = [1, 1]} : vector<2x128xf32> to vector<2x32xf32>
    %45 = arith.mulf %44, %26 : vector<2x32xf32>
    %46 = vector.extract_strided_slice %41 {offsets = [0, 0], sizes = [2, 32], strides = [1, 1]} : vector<2x128xf32> to vector<2x32xf32>
    %47 = arith.mulf %46, %43 : vector<2x32xf32>
    %48 = arith.addf %45, %47 : vector<2x32xf32>
    %49 = vector.extract_strided_slice %41 {offsets = [0, 64], sizes = [2, 32], strides = [1, 1]} : vector<2x128xf32> to vector<2x32xf32>
    %50 = math.tanh %48 : vector<2x32xf32>
    %51 = arith.mulf %49, %50 : vector<2x32xf32>
    %c0_15 = arith.constant 0 : index
    %c1 = arith.constant 1 : index
    %c0_16 = arith.constant 0 : index
    %52 = vector.load %arg3[%c0_15, %c1, %c0_16] : memref<2x8x32xf32, #tpu.memory_space<vmem>>, vector<2x1x32xf32>
    %53 = vector.shape_cast %52 : vector<2x1x32xf32> to vector<2x32xf32>
    %54 = vector.shape_cast %51 : vector<2x32xf32> to vector<2x1x32xf32>
    tpu.vector_store %arg3[%c0_15, %c1, %c0_16], %54 {strides = array<i32>} : memref<2x8x32xf32, #tpu.memory_space<vmem>>, vector<2x1x32xf32>,
    %55 = vector.extract_strided_slice %7 {offsets = [0, 2, 0], sizes = [2, 1, 128], strides = [1, 1, 1]} : vector<2x8x128xf32> to vector<2x1x128xf32>
    %56 = vector.shape_cast %55 : vector<2x1x128xf32> to vector<2x128xf32>
    %cst_17 = arith.constant dense<0.000000e+00> : vector<2x128xf32>
    %57 = tpu.matmul %51, %8, %cst_17 {dimension_numbers = #tpu.dot_dimension_numbers<[1], [0], [0], [1], [0, 0, 1, 1], [], []>, precision = #tpu.contract_precision<fp32>} : vector<2x32xf32>, vector<32x128xf32>, vector<2x128xf32> -> vector<2x128xf32>
    %58 = arith.addf %56, %57 : vector<2x128xf32>
    %59 = arith.negf %58 : vector<2x128xf32>
    %60 = math.exp %59 : vector<2x128xf32>
    %cst_18 = arith.constant 1.000000e+00 : f32
    %61 = vector.broadcast %cst_18 : f32 to vector<2x128xf32>
    %62 = arith.addf %61, %60 : vector<2x128xf32>
    %63 = arith.divf %61, %62 : vector<2x128xf32>
    %64 = vector.extract_strided_slice %58 {offsets = [0, 96], sizes = [2, 32], strides = [1, 1]} : vector<2x128xf32> to vector<2x32xf32>
    %65 = math.tanh %64 : vector<2x32xf32>
    %66 = vector.extract_strided_slice %63 {offsets = [0, 32], sizes = [2, 32], strides = [1, 1]} : vector<2x128xf32> to vector<2x32xf32>
    %67 = arith.mulf %66, %48 : vector<2x32xf32>
    %68 = vector.extract_strided_slice %63 {offsets = [0, 0], sizes = [2, 32], strides = [1, 1]} : vector<2x128xf32> to vector<2x32xf32>
    %69 = arith.mulf %68, %65 : vector<2x32xf32>
    %70 = arith.addf %67, %69 : vector<2x32xf32>
    %71 = vector.extract_strided_slice %63 {offsets = [0, 64], sizes = [2, 32], strides = [1, 1]} : vector<2x128xf32> to vector<2x32xf32>
    %72 = math.tanh %70 : vector<2x32xf32>
    %73 = arith.mulf %71, %72 : vector<2x32xf32>
    %c0_19 = arith.constant 0 : index
    %c2 = arith.constant 2 : index
    %c0_20 = arith.constant 0 : index
    %74 = vector.load %arg3[%c0_19, %c2, %c0_20] : memref<2x8x32xf32, #tpu.memory_space<vmem>>, vector<2x1x32xf32>
    %75 = vector.shape_cast %74 : vector<2x1x32xf32> to vector<2x32xf32>
    %76 = vector.shape_cast %73 : vector<2x32xf32> to vector<2x1x32xf32>
    tpu.vector_store %arg3[%c0_19, %c2, %c0_20], %76 {strides = array<i32>} : memref<2x8x32xf32, #tpu.memory_space<vmem>>, vector<2x1x32xf32>,
    %77 = vector.extract_strided_slice %7 {offsets = [0, 3, 0], sizes = [2, 1, 128], strides = [1, 1, 1]} : vector<2x8x128xf32> to vector<2x1x128xf32>
    %78 = vector.shape_cast %77 : vector<2x1x128xf32> to vector<2x128xf32>
    %cst_21 = arith.constant dense<0.000000e+00> : vector<2x128xf32>
    %79 = tpu.matmul %73, %8, %cst_21 {dimension_numbers = #tpu.dot_dimension_numbers<[1], [0], [0], [1], [0, 0, 1, 1], [], []>, precision = #tpu.contract_precision<fp32>} : vector<2x32xf32>, vector<32x128xf32>, vector<2x128xf32> -> vector<2x128xf32>
    %80 = arith.addf %78, %79 : vector<2x128xf32>
    %81 = arith.negf %80 : vector<2x128xf32>
    %82 = math.exp %81 : vector<2x128xf32>
    %cst_22 = arith.constant 1.000000e+00 : f32
    %83 = vector.broadcast %cst_22 : f32 to vector<2x128xf32>
    %84 = arith.addf %83, %82 : vector<2x128xf32>
    %85 = arith.divf %83, %84 : vector<2x128xf32>
    %86 = vector.extract_strided_slice %80 {offsets = [0, 96], sizes = [2, 32], strides = [1, 1]} : vector<2x128xf32> to vector<2x32xf32>
    %87 = math.tanh %86 : vector<2x32xf32>
    %88 = vector.extract_strided_slice %85 {offsets = [0, 32], sizes = [2, 32], strides = [1, 1]} : vector<2x128xf32> to vector<2x32xf32>
    %89 = arith.mulf %88, %70 : vector<2x32xf32>
    %90 = vector.extract_strided_slice %85 {offsets = [0, 0], sizes = [2, 32], strides = [1, 1]} : vector<2x128xf32> to vector<2x32xf32>
    %91 = arith.mulf %90, %87 : vector<2x32xf32>
    %92 = arith.addf %89, %91 : vector<2x32xf32>
    %93 = vector.extract_strided_slice %85 {offsets = [0, 64], sizes = [2, 32], strides = [1, 1]} : vector<2x128xf32> to vector<2x32xf32>
    %94 = math.tanh %92 : vector<2x32xf32>
    %95 = arith.mulf %93, %94 : vector<2x32xf32>
    %c0_23 = arith.constant 0 : index
    %c3 = arith.constant 3 : index
    %c0_24 = arith.constant 0 : index
    %96 = vector.load %arg3[%c0_23, %c3, %c0_24] : memref<2x8x32xf32, #tpu.memory_space<vmem>>, vector<2x1x32xf32>
    %97 = vector.shape_cast %96 : vector<2x1x32xf32> to vector<2x32xf32>
    %98 = vector.shape_cast %95 : vector<2x32xf32> to vector<2x1x32xf32>
    tpu.vector_store %arg3[%c0_23, %c3, %c0_24], %98 {strides = array<i32>} : memref<2x8x32xf32, #tpu.memory_space<vmem>>, vector<2x1x32xf32>,
    %99 = vector.extract_strided_slice %7 {offsets = [0, 4, 0], sizes = [2, 1, 128], strides = [1, 1, 1]} : vector<2x8x128xf32> to vector<2x1x128xf32>
    %100 = vector.shape_cast %99 : vector<2x1x128xf32> to vector<2x128xf32>
    %cst_25 = arith.constant dense<0.000000e+00> : vector<2x128xf32>
    %101 = tpu.matmul %95, %8, %cst_25 {dimension_numbers = #tpu.dot_dimension_numbers<[1], [0], [0], [1], [0, 0, 1, 1], [], []>, precision = #tpu.contract_precision<fp32>} : vector<2x32xf32>, vector<32x128xf32>, vector<2x128xf32> -> vector<2x128xf32>
    %102 = arith.addf %100, %101 : vector<2x128xf32>
    %103 = arith.negf %102 : vector<2x128xf32>
    %104 = math.exp %103 : vector<2x128xf32>
    %cst_26 = arith.constant 1.000000e+00 : f32
    %105 = vector.broadcast %cst_26 : f32 to vector<2x128xf32>
    %106 = arith.addf %105, %104 : vector<2x128xf32>
    %107 = arith.divf %105, %106 : vector<2x128xf32>
    %108 = vector.extract_strided_slice %102 {offsets = [0, 96], sizes = [2, 32], strides = [1, 1]} : vector<2x128xf32> to vector<2x32xf32>
    %109 = math.tanh %108 : vector<2x32xf32>
    %110 = vector.extract_strided_slice %107 {offsets = [0, 32], sizes = [2, 32], strides = [1, 1]} : vector<2x128xf32> to vector<2x32xf32>
    %111 = arith.mulf %110, %92 : vector<2x32xf32>
    %112 = vector.extract_strided_slice %107 {offsets = [0, 0], sizes = [2, 32], strides = [1, 1]} : vector<2x128xf32> to vector<2x32xf32>
    %113 = arith.mulf %112, %109 : vector<2x32xf32>
    %114 = arith.addf %111, %113 : vector<2x32xf32>
    %115 = vector.extract_strided_slice %107 {offsets = [0, 64], sizes = [2, 32], strides = [1, 1]} : vector<2x128xf32> to vector<2x32xf32>
    %116 = math.tanh %114 : vector<2x32xf32>
    %117 = arith.mulf %115, %116 : vector<2x32xf32>
    %c0_27 = arith.constant 0 : index
    %c4 = arith.constant 4 : index
    %c0_28 = arith.constant 0 : index
    %118 = vector.load %arg3[%c0_27, %c4, %c0_28] : memref<2x8x32xf32, #tpu.memory_space<vmem>>, vector<2x1x32xf32>
    %119 = vector.shape_cast %118 : vector<2x1x32xf32> to vector<2x32xf32>
    %120 = vector.shape_cast %117 : vector<2x32xf32> to vector<2x1x32xf32>
    tpu.vector_store %arg3[%c0_27, %c4, %c0_28], %120 {strides = array<i32>} : memref<2x8x32xf32, #tpu.memory_space<vmem>>, vector<2x1x32xf32>,
    %121 = vector.extract_strided_slice %7 {offsets = [0, 5, 0], sizes = [2, 1, 128], strides = [1, 1, 1]} : vector<2x8x128xf32> to vector<2x1x128xf32>
    %122 = vector.shape_cast %121 : vector<2x1x128xf32> to vector<2x128xf32>
    %cst_29 = arith.constant dense<0.000000e+00> : vector<2x128xf32>
    %123 = tpu.matmul %117, %8, %cst_29 {dimension_numbers = #tpu.dot_dimension_numbers<[1], [0], [0], [1], [0, 0, 1, 1], [], []>, precision = #tpu.contract_precision<fp32>} : vector<2x32xf32>, vector<32x128xf32>, vector<2x128xf32> -> vector<2x128xf32>
    %124 = arith.addf %122, %123 : vector<2x128xf32>
    %125 = arith.negf %124 : vector<2x128xf32>
    %126 = math.exp %125 : vector<2x128xf32>
    %cst_30 = arith.constant 1.000000e+00 : f32
    %127 = vector.broadcast %cst_30 : f32 to vector<2x128xf32>
    %128 = arith.addf %127, %126 : vector<2x128xf32>
    %129 = arith.divf %127, %128 : vector<2x128xf32>
    %130 = vector.extract_strided_slice %124 {offsets = [0, 96], sizes = [2, 32], strides = [1, 1]} : vector<2x128xf32> to vector<2x32xf32>
    %131 = math.tanh %130 : vector<2x32xf32>
    %132 = vector.extract_strided_slice %129 {offsets = [0, 32], sizes = [2, 32], strides = [1, 1]} : vector<2x128xf32> to vector<2x32xf32>
    %133 = arith.mulf %132, %114 : vector<2x32xf32>
    %134 = vector.extract_strided_slice %129 {offsets = [0, 0], sizes = [2, 32], strides = [1, 1]} : vector<2x128xf32> to vector<2x32xf32>
    %135 = arith.mulf %134, %131 : vector<2x32xf32>
    %136 = arith.addf %133, %135 : vector<2x32xf32>
    %137 = vector.extract_strided_slice %129 {offsets = [0, 64], sizes = [2, 32], strides = [1, 1]} : vector<2x128xf32> to vector<2x32xf32>
    %138 = math.tanh %136 : vector<2x32xf32>
    %139 = arith.mulf %137, %138 : vector<2x32xf32>
    %c0_31 = arith.constant 0 : index
    %c5 = arith.constant 5 : index
    %c0_32 = arith.constant 0 : index
    %140 = vector.load %arg3[%c0_31, %c5, %c0_32] : memref<2x8x32xf32, #tpu.memory_space<vmem>>, vector<2x1x32xf32>
    %141 = vector.shape_cast %140 : vector<2x1x32xf32> to vector<2x32xf32>
    %142 = vector.shape_cast %139 : vector<2x32xf32> to vector<2x1x32xf32>
    tpu.vector_store %arg3[%c0_31, %c5, %c0_32], %142 {strides = array<i32>} : memref<2x8x32xf32, #tpu.memory_space<vmem>>, vector<2x1x32xf32>,
    %143 = vector.extract_strided_slice %7 {offsets = [0, 6, 0], sizes = [2, 1, 128], strides = [1, 1, 1]} : vector<2x8x128xf32> to vector<2x1x128xf32>
    %144 = vector.shape_cast %143 : vector<2x1x128xf32> to vector<2x128xf32>
    %cst_33 = arith.constant dense<0.000000e+00> : vector<2x128xf32>
    %145 = tpu.matmul %139, %8, %cst_33 {dimension_numbers = #tpu.dot_dimension_numbers<[1], [0], [0], [1], [0, 0, 1, 1], [], []>, precision = #tpu.contract_precision<fp32>} : vector<2x32xf32>, vector<32x128xf32>, vector<2x128xf32> -> vector<2x128xf32>
    %146 = arith.addf %144, %145 : vector<2x128xf32>
    %147 = arith.negf %146 : vector<2x128xf32>
    %148 = math.exp %147 : vector<2x128xf32>
    %cst_34 = arith.constant 1.000000e+00 : f32
    %149 = vector.broadcast %cst_34 : f32 to vector<2x128xf32>
    %150 = arith.addf %149, %148 : vector<2x128xf32>
    %151 = arith.divf %149, %150 : vector<2x128xf32>
    %152 = vector.extract_strided_slice %146 {offsets = [0, 96], sizes = [2, 32], strides = [1, 1]} : vector<2x128xf32> to vector<2x32xf32>
    %153 = math.tanh %152 : vector<2x32xf32>
    %154 = vector.extract_strided_slice %151 {offsets = [0, 32], sizes = [2, 32], strides = [1, 1]} : vector<2x128xf32> to vector<2x32xf32>
    %155 = arith.mulf %154, %136 : vector<2x32xf32>
    %156 = vector.extract_strided_slice %151 {offsets = [0, 0], sizes = [2, 32], strides = [1, 1]} : vector<2x128xf32> to vector<2x32xf32>
    %157 = arith.mulf %156, %153 : vector<2x32xf32>
    %158 = arith.addf %155, %157 : vector<2x32xf32>
    %159 = vector.extract_strided_slice %151 {offsets = [0, 64], sizes = [2, 32], strides = [1, 1]} : vector<2x128xf32> to vector<2x32xf32>
    %160 = math.tanh %158 : vector<2x32xf32>
    %161 = arith.mulf %159, %160 : vector<2x32xf32>
    %c0_35 = arith.constant 0 : index
    %c6 = arith.constant 6 : index
    %c0_36 = arith.constant 0 : index
    %162 = vector.load %arg3[%c0_35, %c6, %c0_36] : memref<2x8x32xf32, #tpu.memory_space<vmem>>, vector<2x1x32xf32>
    %163 = vector.shape_cast %162 : vector<2x1x32xf32> to vector<2x32xf32>
    %164 = vector.shape_cast %161 : vector<2x32xf32> to vector<2x1x32xf32>
    tpu.vector_store %arg3[%c0_35, %c6, %c0_36], %164 {strides = array<i32>} : memref<2x8x32xf32, #tpu.memory_space<vmem>>, vector<2x1x32xf32>,
    %165 = vector.extract_strided_slice %7 {offsets = [0, 7, 0], sizes = [2, 1, 128], strides = [1, 1, 1]} : vector<2x8x128xf32> to vector<2x1x128xf32>
    %166 = vector.shape_cast %165 : vector<2x1x128xf32> to vector<2x128xf32>
    %cst_37 = arith.constant dense<0.000000e+00> : vector<2x128xf32>
    %167 = tpu.matmul %161, %8, %cst_37 {dimension_numbers = #tpu.dot_dimension_numbers<[1], [0], [0], [1], [0, 0, 1, 1], [], []>, precision = #tpu.contract_precision<fp32>} : vector<2x32xf32>, vector<32x128xf32>, vector<2x128xf32> -> vector<2x128xf32>
    %168 = arith.addf %166, %167 : vector<2x128xf32>
    %169 = arith.negf %168 : vector<2x128xf32>
    %170 = math.exp %169 : vector<2x128xf32>
    %cst_38 = arith.constant 1.000000e+00 : f32
    %171 = vector.broadcast %cst_38 : f32 to vector<2x128xf32>
    %172 = arith.addf %171, %170 : vector<2x128xf32>
    %173 = arith.divf %171, %172 : vector<2x128xf32>
    %174 = vector.extract_strided_slice %168 {offsets = [0, 96], sizes = [2, 32], strides = [1, 1]} : vector<2x128xf32> to vector<2x32xf32>
    %175 = math.tanh %174 : vector<2x32xf32>
    %176 = vector.extract_strided_slice %173 {offsets = [0, 32], sizes = [2, 32], strides = [1, 1]} : vector<2x128xf32> to vector<2x32xf32>
    %177 = arith.mulf %176, %158 : vector<2x32xf32>
    %178 = vector.extract_strided_slice %173 {offsets = [0, 0], sizes = [2, 32], strides = [1, 1]} : vector<2x128xf32> to vector<2x32xf32>
    %179 = arith.mulf %178, %175 : vector<2x32xf32>
    %180 = arith.addf %177, %179 : vector<2x32xf32>
    %181 = vector.extract_strided_slice %173 {offsets = [0, 64], sizes = [2, 32], strides = [1, 1]} : vector<2x128xf32> to vector<2x32xf32>
    %182 = math.tanh %180 : vector<2x32xf32>
    %183 = arith.mulf %181, %182 : vector<2x32xf32>
    %c0_39 = arith.constant 0 : index
    %c7 = arith.constant 7 : index
    %c0_40 = arith.constant 0 : index
    %184 = vector.load %arg3[%c0_39, %c7, %c0_40] : memref<2x8x32xf32, #tpu.memory_space<vmem>>, vector<2x1x32xf32>
    %185 = vector.shape_cast %184 : vector<2x1x32xf32> to vector<2x32xf32>
    %186 = vector.shape_cast %183 : vector<2x32xf32> to vector<2x1x32xf32>
    tpu.vector_store %arg3[%c0_39, %c7, %c0_40], %186 {strides = array<i32>} : memref<2x8x32xf32, #tpu.memory_space<vmem>>, vector<2x1x32xf32>,
    %c0_41 = arith.constant 0 : index
    %c0_42 = arith.constant 0 : index
    %c0_43 = arith.constant 0 : index
    %187 = vector.load %arg3[%c0_41, %c0_42, %c0_43] : memref<2x8x32xf32, #tpu.memory_space<vmem>>, vector<2x8x32xf32>
    %188 = vector.shape_cast %187 : vector<2x8x32xf32> to vector<16x32xf32>
    %c48 = arith.constant 48 : index
    %c0_44 = arith.constant 0 : index
    %189 = vector.load %arg1[%c48, %c0_44] : memref<160x128xf32, #tpu.memory_space<vmem>>, vector<32x128xf32>
    %c112 = arith.constant 112 : index
    %c0_45 = arith.constant 0 : index
    %190 = vector.load %arg1[%c112, %c0_45] : memref<160x128xf32, #tpu.memory_space<vmem>>, vector<1x128xf32>
    %cst_46 = arith.constant dense<0.000000e+00> : vector<16x128xf32>
    %191 = tpu.matmul %188, %189, %cst_46 {dimension_numbers = #tpu.dot_dimension_numbers<[1], [0], [0], [1], [0, 0, 1, 1], [], []>, precision = #tpu.contract_precision<fp32>} : vector<16x32xf32>, vector<32x128xf32>, vector<16x128xf32> -> vector<16x128xf32>
    %192 = vector.broadcast %190 : vector<1x128xf32> to vector<16x128xf32>
    %193 = arith.addf %191, %192 : vector<16x128xf32>
    %194 = vector.shape_cast %193 : vector<16x128xf32> to vector<2x8x128xf32>
    %c80 = arith.constant 80 : index
    %c0_47 = arith.constant 0 : index
    %195 = vector.load %arg1[%c80, %c0_47] : memref<160x128xf32, #tpu.memory_space<vmem>>, vector<32x128xf32>
    %cst_48 = arith.constant 0.000000e+00 : f32
    %196 = vector.broadcast %cst_48 : f32 to vector<2x32xf32>
    %cst_49 = arith.constant 0.000000e+00 : f32
    %197 = vector.broadcast %cst_49 : f32 to vector<2x32xf32>
    %198 = vector.extract_strided_slice %194 {offsets = [0, 0, 0], sizes = [2, 1, 128], strides = [1, 1, 1]} : vector<2x8x128xf32> to vector<2x1x128xf32>
    %199 = vector.shape_cast %198 : vector<2x1x128xf32> to vector<2x128xf32>
    %cst_50 = arith.constant dense<0.000000e+00> : vector<2x128xf32>
    %200 = tpu.matmul %196, %195, %cst_50 {dimension_numbers = #tpu.dot_dimension_numbers<[1], [0], [0], [1], [0, 0, 1, 1], [], []>, precision = #tpu.contract_precision<fp32>} : vector<2x32xf32>, vector<32x128xf32>, vector<2x128xf32> -> vector<2x128xf32>
    %201 = arith.addf %199, %200 : vector<2x128xf32>
    %202 = arith.negf %201 : vector<2x128xf32>
    %203 = math.exp %202 : vector<2x128xf32>
    %cst_51 = arith.constant 1.000000e+00 : f32
    %204 = vector.broadcast %cst_51 : f32 to vector<2x128xf32>
    %205 = arith.addf %204, %203 : vector<2x128xf32>
    %206 = arith.divf %204, %205 : vector<2x128xf32>
    %207 = vector.extract_strided_slice %201 {offsets = [0, 96], sizes = [2, 32], strides = [1, 1]} : vector<2x128xf32> to vector<2x32xf32>
    %208 = math.tanh %207 : vector<2x32xf32>
    %209 = vector.extract_strided_slice %206 {offsets = [0, 32], sizes = [2, 32], strides = [1, 1]} : vector<2x128xf32> to vector<2x32xf32>
    %210 = arith.mulf %209, %197 : vector<2x32xf32>
    %211 = vector.extract_strided_slice %206 {offsets = [0, 0], sizes = [2, 32], strides = [1, 1]} : vector<2x128xf32> to vector<2x32xf32>
    %212 = arith.mulf %211, %208 : vector<2x32xf32>
    %213 = arith.addf %210, %212 : vector<2x32xf32>
    %214 = vector.extract_strided_slice %206 {offsets = [0, 64], sizes = [2, 32], strides = [1, 1]} : vector<2x128xf32> to vector<2x32xf32>
    %215 = math.tanh %213 : vector<2x32xf32>
    %216 = arith.mulf %214, %215 : vector<2x32xf32>
    %217 = vector.extract_strided_slice %194 {offsets = [0, 1, 0], sizes = [2, 1, 128], strides = [1, 1, 1]} : vector<2x8x128xf32> to vector<2x1x128xf32>
    %218 = vector.shape_cast %217 : vector<2x1x128xf32> to vector<2x128xf32>
    %cst_52 = arith.constant dense<0.000000e+00> : vector<2x128xf32>
    %219 = tpu.matmul %216, %195, %cst_52 {dimension_numbers = #tpu.dot_dimension_numbers<[1], [0], [0], [1], [0, 0, 1, 1], [], []>, precision = #tpu.contract_precision<fp32>} : vector<2x32xf32>, vector<32x128xf32>, vector<2x128xf32> -> vector<2x128xf32>
    %220 = arith.addf %218, %219 : vector<2x128xf32>
    %221 = arith.negf %220 : vector<2x128xf32>
    %222 = math.exp %221 : vector<2x128xf32>
    %cst_53 = arith.constant 1.000000e+00 : f32
    %223 = vector.broadcast %cst_53 : f32 to vector<2x128xf32>
    %224 = arith.addf %223, %222 : vector<2x128xf32>
    %225 = arith.divf %223, %224 : vector<2x128xf32>
    %226 = vector.extract_strided_slice %220 {offsets = [0, 96], sizes = [2, 32], strides = [1, 1]} : vector<2x128xf32> to vector<2x32xf32>
    %227 = math.tanh %226 : vector<2x32xf32>
    %228 = vector.extract_strided_slice %225 {offsets = [0, 32], sizes = [2, 32], strides = [1, 1]} : vector<2x128xf32> to vector<2x32xf32>
    %229 = arith.mulf %228, %213 : vector<2x32xf32>
    %230 = vector.extract_strided_slice %225 {offsets = [0, 0], sizes = [2, 32], strides = [1, 1]} : vector<2x128xf32> to vector<2x32xf32>
    %231 = arith.mulf %230, %227 : vector<2x32xf32>
    %232 = arith.addf %229, %231 : vector<2x32xf32>
    %233 = vector.extract_strided_slice %225 {offsets = [0, 64], sizes = [2, 32], strides = [1, 1]} : vector<2x128xf32> to vector<2x32xf32>
    %234 = math.tanh %232 : vector<2x32xf32>
    %235 = arith.mulf %233, %234 : vector<2x32xf32>
    %236 = vector.extract_strided_slice %194 {offsets = [0, 2, 0], sizes = [2, 1, 128], strides = [1, 1, 1]} : vector<2x8x128xf32> to vector<2x1x128xf32>
    %237 = vector.shape_cast %236 : vector<2x1x128xf32> to vector<2x128xf32>
    %cst_54 = arith.constant dense<0.000000e+00> : vector<2x128xf32>
    %238 = tpu.matmul %235, %195, %cst_54 {dimension_numbers = #tpu.dot_dimension_numbers<[1], [0], [0], [1], [0, 0, 1, 1], [], []>, precision = #tpu.contract_precision<fp32>} : vector<2x32xf32>, vector<32x128xf32>, vector<2x128xf32> -> vector<2x128xf32>
    %239 = arith.addf %237, %238 : vector<2x128xf32>
    %240 = arith.negf %239 : vector<2x128xf32>
    %241 = math.exp %240 : vector<2x128xf32>
    %cst_55 = arith.constant 1.000000e+00 : f32
    %242 = vector.broadcast %cst_55 : f32 to vector<2x128xf32>
    %243 = arith.addf %242, %241 : vector<2x128xf32>
    %244 = arith.divf %242, %243 : vector<2x128xf32>
    %245 = vector.extract_strided_slice %239 {offsets = [0, 96], sizes = [2, 32], strides = [1, 1]} : vector<2x128xf32> to vector<2x32xf32>
    %246 = math.tanh %245 : vector<2x32xf32>
    %247 = vector.extract_strided_slice %244 {offsets = [0, 32], sizes = [2, 32], strides = [1, 1]} : vector<2x128xf32> to vector<2x32xf32>
    %248 = arith.mulf %247, %232 : vector<2x32xf32>
    %249 = vector.extract_strided_slice %244 {offsets = [0, 0], sizes = [2, 32], strides = [1, 1]} : vector<2x128xf32> to vector<2x32xf32>
    %250 = arith.mulf %249, %246 : vector<2x32xf32>
    %251 = arith.addf %248, %250 : vector<2x32xf32>
    %252 = vector.extract_strided_slice %244 {offsets = [0, 64], sizes = [2, 32], strides = [1, 1]} : vector<2x128xf32> to vector<2x32xf32>
    %253 = math.tanh %251 : vector<2x32xf32>
    %254 = arith.mulf %252, %253 : vector<2x32xf32>
    %255 = vector.extract_strided_slice %194 {offsets = [0, 3, 0], sizes = [2, 1, 128], strides = [1, 1, 1]} : vector<2x8x128xf32> to vector<2x1x128xf32>
    %256 = vector.shape_cast %255 : vector<2x1x128xf32> to vector<2x128xf32>
    %cst_56 = arith.constant dense<0.000000e+00> : vector<2x128xf32>
    %257 = tpu.matmul %254, %195, %cst_56 {dimension_numbers = #tpu.dot_dimension_numbers<[1], [0], [0], [1], [0, 0, 1, 1], [], []>, precision = #tpu.contract_precision<fp32>} : vector<2x32xf32>, vector<32x128xf32>, vector<2x128xf32> -> vector<2x128xf32>
    %258 = arith.addf %256, %257 : vector<2x128xf32>
    %259 = arith.negf %258 : vector<2x128xf32>
    %260 = math.exp %259 : vector<2x128xf32>
    %cst_57 = arith.constant 1.000000e+00 : f32
    %261 = vector.broadcast %cst_57 : f32 to vector<2x128xf32>
    %262 = arith.addf %261, %260 : vector<2x128xf32>
    %263 = arith.divf %261, %262 : vector<2x128xf32>
    %264 = vector.extract_strided_slice %258 {offsets = [0, 96], sizes = [2, 32], strides = [1, 1]} : vector<2x128xf32> to vector<2x32xf32>
    %265 = math.tanh %264 : vector<2x32xf32>
    %266 = vector.extract_strided_slice %263 {offsets = [0, 32], sizes = [2, 32], strides = [1, 1]} : vector<2x128xf32> to vector<2x32xf32>
    %267 = arith.mulf %266, %251 : vector<2x32xf32>
    %268 = vector.extract_strided_slice %263 {offsets = [0, 0], sizes = [2, 32], strides = [1, 1]} : vector<2x128xf32> to vector<2x32xf32>
    %269 = arith.mulf %268, %265 : vector<2x32xf32>
    %270 = arith.addf %267, %269 : vector<2x32xf32>
    %271 = vector.extract_strided_slice %263 {offsets = [0, 64], sizes = [2, 32], strides = [1, 1]} : vector<2x128xf32> to vector<2x32xf32>
    %272 = math.tanh %270 : vector<2x32xf32>
    %273 = arith.mulf %271, %272 : vector<2x32xf32>
    %274 = vector.extract_strided_slice %194 {offsets = [0, 4, 0], sizes = [2, 1, 128], strides = [1, 1, 1]} : vector<2x8x128xf32> to vector<2x1x128xf32>
    %275 = vector.shape_cast %274 : vector<2x1x128xf32> to vector<2x128xf32>
    %cst_58 = arith.constant dense<0.000000e+00> : vector<2x128xf32>
    %276 = tpu.matmul %273, %195, %cst_58 {dimension_numbers = #tpu.dot_dimension_numbers<[1], [0], [0], [1], [0, 0, 1, 1], [], []>, precision = #tpu.contract_precision<fp32>} : vector<2x32xf32>, vector<32x128xf32>, vector<2x128xf32> -> vector<2x128xf32>
    %277 = arith.addf %275, %276 : vector<2x128xf32>
    %278 = arith.negf %277 : vector<2x128xf32>
    %279 = math.exp %278 : vector<2x128xf32>
    %cst_59 = arith.constant 1.000000e+00 : f32
    %280 = vector.broadcast %cst_59 : f32 to vector<2x128xf32>
    %281 = arith.addf %280, %279 : vector<2x128xf32>
    %282 = arith.divf %280, %281 : vector<2x128xf32>
    %283 = vector.extract_strided_slice %277 {offsets = [0, 96], sizes = [2, 32], strides = [1, 1]} : vector<2x128xf32> to vector<2x32xf32>
    %284 = math.tanh %283 : vector<2x32xf32>
    %285 = vector.extract_strided_slice %282 {offsets = [0, 32], sizes = [2, 32], strides = [1, 1]} : vector<2x128xf32> to vector<2x32xf32>
    %286 = arith.mulf %285, %270 : vector<2x32xf32>
    %287 = vector.extract_strided_slice %282 {offsets = [0, 0], sizes = [2, 32], strides = [1, 1]} : vector<2x128xf32> to vector<2x32xf32>
    %288 = arith.mulf %287, %284 : vector<2x32xf32>
    %289 = arith.addf %286, %288 : vector<2x32xf32>
    %290 = vector.extract_strided_slice %282 {offsets = [0, 64], sizes = [2, 32], strides = [1, 1]} : vector<2x128xf32> to vector<2x32xf32>
    %291 = math.tanh %289 : vector<2x32xf32>
    %292 = arith.mulf %290, %291 : vector<2x32xf32>
    %293 = vector.extract_strided_slice %194 {offsets = [0, 5, 0], sizes = [2, 1, 128], strides = [1, 1, 1]} : vector<2x8x128xf32> to vector<2x1x128xf32>
    %294 = vector.shape_cast %293 : vector<2x1x128xf32> to vector<2x128xf32>
    %cst_60 = arith.constant dense<0.000000e+00> : vector<2x128xf32>
    %295 = tpu.matmul %292, %195, %cst_60 {dimension_numbers = #tpu.dot_dimension_numbers<[1], [0], [0], [1], [0, 0, 1, 1], [], []>, precision = #tpu.contract_precision<fp32>} : vector<2x32xf32>, vector<32x128xf32>, vector<2x128xf32> -> vector<2x128xf32>
    %296 = arith.addf %294, %295 : vector<2x128xf32>
    %297 = arith.negf %296 : vector<2x128xf32>
    %298 = math.exp %297 : vector<2x128xf32>
    %cst_61 = arith.constant 1.000000e+00 : f32
    %299 = vector.broadcast %cst_61 : f32 to vector<2x128xf32>
    %300 = arith.addf %299, %298 : vector<2x128xf32>
    %301 = arith.divf %299, %300 : vector<2x128xf32>
    %302 = vector.extract_strided_slice %296 {offsets = [0, 96], sizes = [2, 32], strides = [1, 1]} : vector<2x128xf32> to vector<2x32xf32>
    %303 = math.tanh %302 : vector<2x32xf32>
    %304 = vector.extract_strided_slice %301 {offsets = [0, 32], sizes = [2, 32], strides = [1, 1]} : vector<2x128xf32> to vector<2x32xf32>
    %305 = arith.mulf %304, %289 : vector<2x32xf32>
    %306 = vector.extract_strided_slice %301 {offsets = [0, 0], sizes = [2, 32], strides = [1, 1]} : vector<2x128xf32> to vector<2x32xf32>
    %307 = arith.mulf %306, %303 : vector<2x32xf32>
    %308 = arith.addf %305, %307 : vector<2x32xf32>
    %309 = vector.extract_strided_slice %301 {offsets = [0, 64], sizes = [2, 32], strides = [1, 1]} : vector<2x128xf32> to vector<2x32xf32>
    %310 = math.tanh %308 : vector<2x32xf32>
    %311 = arith.mulf %309, %310 : vector<2x32xf32>
    %312 = vector.extract_strided_slice %194 {offsets = [0, 6, 0], sizes = [2, 1, 128], strides = [1, 1, 1]} : vector<2x8x128xf32> to vector<2x1x128xf32>
    %313 = vector.shape_cast %312 : vector<2x1x128xf32> to vector<2x128xf32>
    %cst_62 = arith.constant dense<0.000000e+00> : vector<2x128xf32>
    %314 = tpu.matmul %311, %195, %cst_62 {dimension_numbers = #tpu.dot_dimension_numbers<[1], [0], [0], [1], [0, 0, 1, 1], [], []>, precision = #tpu.contract_precision<fp32>} : vector<2x32xf32>, vector<32x128xf32>, vector<2x128xf32> -> vector<2x128xf32>
    %315 = arith.addf %313, %314 : vector<2x128xf32>
    %316 = arith.negf %315 : vector<2x128xf32>
    %317 = math.exp %316 : vector<2x128xf32>
    %cst_63 = arith.constant 1.000000e+00 : f32
    %318 = vector.broadcast %cst_63 : f32 to vector<2x128xf32>
    %319 = arith.addf %318, %317 : vector<2x128xf32>
    %320 = arith.divf %318, %319 : vector<2x128xf32>
    %321 = vector.extract_strided_slice %315 {offsets = [0, 96], sizes = [2, 32], strides = [1, 1]} : vector<2x128xf32> to vector<2x32xf32>
    %322 = math.tanh %321 : vector<2x32xf32>
    %323 = vector.extract_strided_slice %320 {offsets = [0, 32], sizes = [2, 32], strides = [1, 1]} : vector<2x128xf32> to vector<2x32xf32>
    %324 = arith.mulf %323, %308 : vector<2x32xf32>
    %325 = vector.extract_strided_slice %320 {offsets = [0, 0], sizes = [2, 32], strides = [1, 1]} : vector<2x128xf32> to vector<2x32xf32>
    %326 = arith.mulf %325, %322 : vector<2x32xf32>
    %327 = arith.addf %324, %326 : vector<2x32xf32>
    %328 = vector.extract_strided_slice %320 {offsets = [0, 64], sizes = [2, 32], strides = [1, 1]} : vector<2x128xf32> to vector<2x32xf32>
    %329 = math.tanh %327 : vector<2x32xf32>
    %330 = arith.mulf %328, %329 : vector<2x32xf32>
    %331 = vector.extract_strided_slice %194 {offsets = [0, 7, 0], sizes = [2, 1, 128], strides = [1, 1, 1]} : vector<2x8x128xf32> to vector<2x1x128xf32>
    %332 = vector.shape_cast %331 : vector<2x1x128xf32> to vector<2x128xf32>
    %cst_64 = arith.constant dense<0.000000e+00> : vector<2x128xf32>
    %333 = tpu.matmul %330, %195, %cst_64 {dimension_numbers = #tpu.dot_dimension_numbers<[1], [0], [0], [1], [0, 0, 1, 1], [], []>, precision = #tpu.contract_precision<fp32>} : vector<2x32xf32>, vector<32x128xf32>, vector<2x128xf32> -> vector<2x128xf32>
    %334 = arith.addf %332, %333 : vector<2x128xf32>
    %335 = arith.negf %334 : vector<2x128xf32>
    %336 = math.exp %335 : vector<2x128xf32>
    %cst_65 = arith.constant 1.000000e+00 : f32
    %337 = vector.broadcast %cst_65 : f32 to vector<2x128xf32>
    %338 = arith.addf %337, %336 : vector<2x128xf32>
    %339 = arith.divf %337, %338 : vector<2x128xf32>
    %340 = vector.extract_strided_slice %334 {offsets = [0, 96], sizes = [2, 32], strides = [1, 1]} : vector<2x128xf32> to vector<2x32xf32>
    %341 = math.tanh %340 : vector<2x32xf32>
    %342 = vector.extract_strided_slice %339 {offsets = [0, 32], sizes = [2, 32], strides = [1, 1]} : vector<2x128xf32> to vector<2x32xf32>
    %343 = arith.mulf %342, %327 : vector<2x32xf32>
    %344 = vector.extract_strided_slice %339 {offsets = [0, 0], sizes = [2, 32], strides = [1, 1]} : vector<2x128xf32> to vector<2x32xf32>
    %345 = arith.mulf %344, %341 : vector<2x32xf32>
    %346 = arith.addf %343, %345 : vector<2x32xf32>
    %347 = vector.extract_strided_slice %339 {offsets = [0, 64], sizes = [2, 32], strides = [1, 1]} : vector<2x128xf32> to vector<2x32xf32>
    %348 = math.tanh %346 : vector<2x32xf32>
    %349 = arith.mulf %347, %348 : vector<2x32xf32>
    %c120 = arith.constant 120 : index
    %c0_66 = arith.constant 0 : index
    %350 = vector.load %arg1[%c120, %c0_66] : memref<160x128xf32, #tpu.memory_space<vmem>>, vector<32x128xf32>
    %c152 = arith.constant 152 : index
    %c0_67 = arith.constant 0 : index
    %351 = vector.load %arg1[%c152, %c0_67] : memref<160x128xf32, #tpu.memory_space<vmem>>, vector<1x128xf32>
    %cst_68 = arith.constant dense<0.000000e+00> : vector<2x128xf32>
    %352 = tpu.matmul %349, %350, %cst_68 {dimension_numbers = #tpu.dot_dimension_numbers<[1], [0], [0], [1], [0, 0, 1, 1], [], []>, precision = #tpu.contract_precision<fp32>} : vector<2x32xf32>, vector<32x128xf32>, vector<2x128xf32> -> vector<2x128xf32>
    %353 = vector.broadcast %351 : vector<1x128xf32> to vector<2x128xf32>
    %354 = arith.addf %352, %353 : vector<2x128xf32>
    %355 = vector.extract_strided_slice %354 {offsets = [0, 0], sizes = [2, 4], strides = [1, 1]} : vector<2x128xf32> to vector<2x4xf32>
    %c0_69 = arith.constant 0 : index
    %c0_70 = arith.constant 0 : index
    %356 = vector.load %arg2[%c0_69, %c0_70] : memref<2x4xf32, #tpu.memory_space<vmem>>, vector<2x4xf32>
    tpu.vector_store %arg2[%c0_69, %c0_70], %355 {strides = array<i32>} : memref<2x4xf32, #tpu.memory_space<vmem>>, vector<2x4xf32>,
    return
  }
}

</mosaic_0001>

<bundles_post_ra>
// kernel: lstm_model_forward.1
= control target key start
LH: loop header
LB: loop body
LE: loop exit
PB: predicated region body
PF: predicated region fallthrough
CT: control target
= control target key end

     0   :  { %7 = vsyncpa [#allocation4], 0  ;;  %s14690_s0 = inlined_call_operand.vmem [shape: f32[2,8,4], index: 0, kind: input, shape index: {}]   ;;  %s14691_s1 = inlined_call_operand.hbm [shape: f32[160,128], index: 1, kind: input, shape index: {}]   ;;  %s14692_s2 = inlined_call_operand.hbm [shape: f32[2,4], index: 2, kind: output, shape index: {}]  }
   0x1   :  { %8 = vsyncpa [#allocation5], 0  ;;  %s13512_s9 = smov [#allocation3]   ;;  %s13464_s13 = scalar_lea.hbm %s14691_s1, 2560 }
   0x2   :  { %s16_s10 = sshll.u32 %s13512_s9, 4  ;;  %p13465_p0 = scmp.ne.s32.totalorder %s14691_s1, %s13464_s13  ;;  %s17_s10 = int_to_ptr.vmem [resolvable:$true] %s16_s10 }
   0x3   :  { %p13468_p1 = scmp.lt.u32.totalorder %s13464_s13, %s14691_s1 }
   0x5   :  { %p13470_p2 = pnand %p13468_p1, %p13465_p0 }
   0x7   :  { %13473 = shalt.err (!%p13470_p2)
}
   0x8   :  { %s13474_s18 = scalar_lea.vmem %s17_s10, 2560  ;;  %p13479_p4 = scmp.lt.s32.totalorder %s17_s10, %s17_s10 }
   0x9   :  { %p13475_p3 = scmp.ne.s32.totalorder %s17_s10, %s13474_s18  ;;  %p13480_p5 = scmp.lt.s32.totalorder %s13474_s18, %s13474_s18 }
   0xb   :  { %p13481_p6 = por %p13480_p5, %p13479_p4 }
   0xd   :  { %p13482_p7 = pnand %p13481_p6, %p13475_p3 }
   0xf   :  { %13485 = shalt.err (!%p13482_p7)
}
  0x10   :  { %s13513_s19 = smov 128   ;;  %s13514_s20 = smov 8  }
  0x11   :  { %22 = dma.hbm_to_vmem [thread:$0]  %s14691_s1, 2560, %s17_s10, [#allocation4], %s13513_s19, %s13513_s19, %s13514_s20  }
  0x12   :  { %13508 = dma.done.wait [#allocation4], 2560  }
  0x13   :  { %13509 = vsyncadd [#allocation4], 4294964736  ;;  %vm41_vm0 = vcmask 1043456   ;;  %vm34_vm1 = vcmask 31744   ;;  %v28_v0 = vld [vmem:[#allocation3] sm:$0xf] }
  0x14   :  { %v26_v1 = vld [vmem:[%s14690_s0] sm:$0xff]  ;;  %v27_v2 = vld [vmem:[%s14690_s0 + $0x8] sm:$0xff]  ;;  %v43_v3 = vsel %vm41_vm0, %v28_v0, 0  ;;  %v534_v6 = vld [vmem:[#allocation3 + $0x8] sm:$0xff]  ;;  %v13515_v24 = vmov 0.0|0.0   ;;  %vm13516_vm2 = vmmov 0  }
  0x15   :  { %v36_v4 = vsel %vm34_vm1, %v26_v1, 0  ;;  %v39_v5 = vsel %vm34_vm1, %v27_v2, 0  ;;  %v535_v7 = vld [vmem:[#allocation3 + $0x10] sm:$0xff]  ;;  %v536_v8 = vld [vmem:[#allocation3 + $0x18] sm:$0xff]  ;;  %v13554_v9 = vand.u32 4294901760, %v43_v3  ;;  %v543_v12 = vand.u32 4294901760, %v534_v6 }
  0x16   :  { %v13556_v10 = vand.u32 4294901760, %v36_v4  ;;  %v13558_v11 = vand.u32 4294901760, %v39_v5  ;;  %v537_v13 = vld [vmem:[#allocation3 + $0x20] sm:$0xff]  ;;  %v546_v14 = vand.u32 4294901760, %v535_v7  ;;  %v549_v15 = vand.u32 4294901760, %v536_v8  ;;  %s13518_s0 = smov 32  }
  0x17   :  { %v552_v16 = vand.u32 4294901760, %v537_v13  ;;  %11127 = vmatprep.subr.mxu1 %v13554_v9  ;;  %v133_v18 = vsub.f32 %v43_v3, %v13554_v9  ;;  %v13568_v20 = vsub.f32 %v534_v6, %v543_v12  ;;  %v13517_v46 = vmov 0.0   ;;  %v10528_v57 = vld [vmem:[#allocation3 + $0x28] ss:$0 sm:$0xff]  ;;  %s13519_s1 = smov 64   ;;  %s13520_s27 = smov [#allocation6]  }
  0x18   :  { %v112_v17 = vsub.f32 %v36_v4, %v13556_v10  ;;  %v13564_v19 = vsub.f32 %v39_v5, %v13558_v11  ;;  %11134 = vmatprep.mubr.f32.mxu0 %v13556_v10  ;;  %11128 = vmatpush3.msra.mxu1 %v13554_v9  ;;  %v13570_v21 = vsub.f32 %v535_v7, %v546_v14  ;;  %vm1093_vm3 = vcmask 1041409   ;;  %s10519_s28 = sshll.u32 %s13520_s27, 4  ;;  %s10520_s28 = int_to_ptr.vmem [resolvable:$true] %s10519_s28 }
  0x19   :  { %v134_v23 = vand.u32 4294901760, %v133_v18  ;;  %12345 = vmatprep.subr.bf16.mxu1 %v13515_v24  ;;  %v13574_v26 = vsub.f32 %v536_v8, %v549_v15  ;;  %v624_v27 = vand.u32 4294901760, %v13568_v20  ;;  %v13578_v29 = vsub.f32 %v537_v13, %v552_v16  ;;  %s13486_s29 = scalar_lea.vmem %s10520_s28, 32  ;;  %p13491_p9 = scmp.lt.s32.totalorder %s10520_s28, %s10520_s28 }
  0x1a   :  { %v113_v22 = vand.u32 4294901760, %v112_v17  ;;  %v123_v25 = vand.u32 4294901760, %v13564_v19  ;;  %v631_v28 = vand.u32 4294901760, %v13570_v21  ;;  %v13581_v33 = vpack.c.bf16 %v546_v14, %v543_v12  ;;  %p13487_p8 = scmp.ne.s32.totalorder %s10520_s28, %s13486_s29  ;;  %p13492_p10 = scmp.lt.s32.totalorder %s13486_s29, %s13486_s29 }
  0x1b   :  { %v135_v31 = vsub.f32 %v133_v18, %v134_v23  ;;  %v625_v34 = vsub.f32 %v13568_v20, %v624_v27  ;;  %v638_v36 = vand.u32 4294901760, %v13574_v26  ;;  %v645_v40 = vand.u32 4294901760, %v13578_v29 }
  0x1c   :  { %v114_v30 = vsub.f32 %v112_v17, %v113_v22  ;;  %v124_v32 = vsub.f32 %v13564_v19, %v123_v25  ;;  %v632_v35 = vsub.f32 %v13570_v21, %v631_v28  ;;  %v13591_v41 = vpack.c.bf16 %v552_v16, %v549_v15  ;;  %p13493_p11 = por %p13492_p10, %p13491_p9 }
  0x1d   :  { %v136_v38 = vand.u32 4294901760, %v135_v31  ;;  %v626_v42 = vand.u32 4294901760, %v625_v34  ;;  %v639_v44 = vsub.f32 %v13574_v26, %v638_v36  ;;  %v646_v45 = vsub.f32 %v13578_v29, %v645_v40 }
  0x1e   :  { %v115_v37 = vand.u32 4294901760, %v114_v30  ;;  %v125_v39 = vand.u32 4294901760, %v124_v32  ;;  %v633_v43 = vand.u32 4294901760, %v632_v35  ;;  %v13619_v51 = vpack.c.bf16 %v13570_v21, %v13568_v20  ;;  %p13494_p12 = pnand %p13493_p11, %p13487_p8 }
  0x1f   :  { %11132 = vmatprep.subr.mxu0 %v136_v38  ;;  %v640_v48 = vand.u32 4294901760, %v639_v44  ;;  %v647_v49 = vand.u32 4294901760, %v646_v45  ;;  %v13626_v52 = vpack.c.bf16 %v13578_v29, %v13574_v26  ;;  %v13649_v53 = vpack.c.bf16 %v631_v28, %v624_v27 }
  0x20   :  { %11129 = vmatprep.mubr.f32.mxu1 %v115_v37  ;;  %11133 = vmatpush3.msra.mxu0 %v136_v38  ;;  %v13603_v47 = vpack.c.bf16 %v633_v43, %v626_v42  ;;  %v13657_v54 = vpack.c.bf16 %v645_v40, %v638_v36  ;;  %vm538_vm4 = vcmask 261120   ;;  %vm1089_vm5 = vcmask 253952  }
  0x21   :  { %11130 = vmatmul.mubr.f32.vlgmr.msra.gmra.mrb[0].mxu1 %v125_v39  ;;  %11135 = vmatmul.mubr.f32.vlgmr.msra.gmra.mrb[0].mxu0 %v13558_v11  ;;  %v13610_v50 = vpack.c.bf16 %v647_v49, %v640_v48  ;;  %vm1652_vm6 = vcmask 254977   ;;  %vm2215_vm7 = vcmask 256002   ;;  %vm2779_vm8 = vcmask 257027  }
  0x22   :  { %12347 = vmatpush3.bf16.msra.mxu1 %v13581_v33  ;;  %11165 = vmatprep.mubr.msk.f32.mxu1 %vm13516_vm2, %v13517_v46  ;;  %vm3343_vm9 = vcmask 258052   ;;  %vm3907_vm10 = vcmask 259077   ;;  %vm4471_vm11 = vcmask 260102   ;;  %vm5035_vm12 = vcmask 261127  }
  0x23   :  { %12348 = vmatprep.subr.bf16.mxu1 %v13515_v24  ;;  %11137 = vmatprep.subr.mxu0 %v133_v18  ;;  %vm10511_vm13 = vcmask 25600  }
  0x24   :  { %11139 = vmatprep.mubr.f32.mxu0 %v112_v17  ;;  %11138 = vmatpush3.msra.mxu0 %v133_v18 }
  0x25   :  { %11142 = vmatprep.subr.mxu0 %v13554_v9 }
  0x26   :  { %12350 = vmatpush3.bf16.msra.mxu1 %v13591_v41 }
  0x27   :  { %12351 = vmatprep.subr.bf16.mxu1 %v13515_v24 }
  0x29   :  { %11166 = vmatmul.mubr.f32.vlgmr.msra.gmra.mrb[2].mxu1 %v13517_v46  ;;  %11140 = vmatmul.mubr.f32.vlgmr.msra.gmra.mrb[0].mxu0 %v13564_v19 }
  0x2a   :  { %12353 = vmatpush3.bf16.msra.mxu1 %v13603_v47  ;;  %11176 = vmatprep.mubr.msk.f32.mxu1 %vm13516_vm2, %v13517_v46 }
  0x2b   :  { %12354 = vmatprep.subr.bf16.mxu1 %v13515_v24  ;;  %11143 = vmatpush3.msra.mxu0 %v13554_v9 }
  0x2c   :  { %11144 = vmatprep.mubr.f32.mxu0 %v113_v22  ;;  %11147 = vmatprep.subr.mxu0 %v134_v23 }
  0x2e   :  { %12356 = vmatpush3.bf16.msra.mxu1 %v13610_v50 }
  0x2f   :  { %12357 = vmatprep.subr.bf16.mxu1 %v13515_v24 }
  0x31   :  { %11177 = vmatmul.mubr.f32.vlgmr.msra.gmra.mrb[2].mxu1 %v13517_v46  ;;  %11145 = vmatmul.mubr.f32.vlgmr.msra.gmra.mrb[0].mxu0 %v123_v25 }
  0x32   :  { %12359 = vmatpush3.bf16.msra.mxu1 %v13619_v51  ;;  %11187 = vmatprep.mubr.msk.f32.mxu1 %vm13516_vm2, %v13517_v46 }
  0x33   :  { %12360 = vmatprep.subr.bf16.mxu1 %v13515_v24  ;;  %11148 = vmatpush3.msra.mxu0 %v134_v23 }
  0x34   :  { %11149 = vmatprep.mubr.f32.mxu0 %v13556_v10  ;;  %11152 = vmatprep.subr.mxu0 %v13554_v9 }
  0x36   :  { %12362 = vmatpush3.bf16.msra.mxu1 %v13626_v52 }
  0x37   :  { %12363 = vmatprep.subr.bf16.mxu1 %v13515_v24 }
  0x39   :  { %11188 = vmatmul.mubr.f32.vlgmr.msra.gmra.mrb[2].mxu1 %v13517_v46  ;;  %11150 = vmatmul.mubr.f32.vlgmr.msra.gmra.mrb[0].mxu0 %v13558_v11 }
  0x3a   :  { %12365 = vmatpush3.bf16.msra.mxu1 %v13581_v33  ;;  %11198 = vmatprep.mubr.msk.f32.mxu1 %vm13516_vm2, %v13517_v46 }
  0x3b   :  { %12366 = vmatprep.subr.bf16.mxu1 %v13515_v24  ;;  %11153 = vmatpush3.msra.mxu0 %v13554_v9 }
  0x3c   :  { %11154 = vmatprep.mubr.f32.mxu0 %v13556_v10  ;;  %12387 = vmatprep.subr.bf16.mxu0 %v13515_v24 }
  0x3e   :  { %12368 = vmatpush3.bf16.msra.mxu1 %v13591_v41 }
  0x3f   :  { %12369 = vmatprep.subr.bf16.mxu1 %v13515_v24 }
  0x41   :  { %11199 = vmatmul.mubr.f32.vlgmr.msra.gmra.mrb[2].mxu1 %v13517_v46  ;;  %11155 = vmatmul.mubr.f32.vlgmr.msra.gmra.mrb[0].mxu0 %v13558_v11 }
  0x42   :  { %12371 = vmatpush3.bf16.msra.mxu1 %v13649_v53  ;;  %11209 = vmatprep.mubr.msk.f32.mxu1 %vm13516_vm2, %v13517_v46 }
  0x43   :  { %12372 = vmatprep.subr.bf16.mxu1 %v13515_v24  ;;  %12389 = vmatpush3.bf16.msra.mxu0 %v13603_v47 }
  0x44   :  { %11242 = vmatprep.mubr.msk.f32.mxu0 %vm13516_vm2, %v13517_v46  ;;  %12390 = vmatprep.subr.bf16.mxu0 %v13515_v24 }
  0x46   :  { %12374 = vmatpush3.bf16.msra.mxu1 %v13657_v54 }
  0x47   :  { %12375 = vmatprep.subr.bf16.mxu1 %v13515_v24  ;;  %12392 = vmatpush3.bf16.msra.mxu0 %v13610_v50 }
  0x48   :  { %12393 = vmatprep.subr.bf16.mxu0 %v13515_v24 }
  0x49   :  { %11210 = vmatmul.mubr.f32.vlgmr.msra.gmra.mrb[2].mxu1 %v13517_v46 }
  0x4a   :  { %12377 = vmatpush3.bf16.msra.mxu1 %v13581_v33  ;;  %11220 = vmatprep.mubr.msk.f32.mxu1 %vm13516_vm2, %v13517_v46 }
  0x4b   :  { %12378 = vmatprep.subr.bf16.mxu1 %v13515_v24 }
  0x4e   :  { %12380 = vmatpush3.bf16.msra.mxu1 %v13591_v41 }
  0x4f   :  { %12381 = vmatprep.subr.bf16.mxu1 %v13515_v24 }
  0x51   :  { %11221 = vmatmul.mubr.f32.vlgmr.msra.gmra.mrb[2].mxu1 %v13517_v46 }
  0x52   :  { %12383 = vmatpush3.bf16.msra.mxu1 %v13581_v33  ;;  %11231 = vmatprep.mubr.msk.f32.mxu1 %vm13516_vm2, %v13517_v46 }
  0x53   :  { %12384 = vmatprep.subr.bf16.mxu1 %v13515_v24 }
  0x56   :  { %12386 = vmatpush3.bf16.msra.mxu1 %v13591_v41 }
  0x57   :  { %12417 = vmatprep.subr.bf16.mxu1 %v13515_v24 }
  0xf4   :  { %v11131_v55 = vpop.f32.mrb[0].mxu1 }
  0xf5   :  { %v117_v56 = vpop.f32.mrb[1].mxu1  ;;  %v128_v58 = vadd.f32 %v11131_v55, %v10528_v57 }
  0xf6   :  { %v118_v59 = vadd.f32 %v10528_v57, %v117_v56 }
 0x114   :  { %v11156_v60 = vpop.f32.mrb[0].mxu0 }
 0x115   :  { %v13684_v61 = vadd.f32 %v11156_v60, %v128_v58  ;;  %v524_v62 = vpop.f32.mrb[1].mxu0 }
 0x116   :  { %v13686_v63 = vadd.f32 %v524_v62, %v118_v59 }
 0x124   :  { %v1023_v0 = vpop.f32.mrb[2].mxu1 }
 0x125   :  { %v1028_v1 = vrot.slane %v1023_v0, 1  ;;  %v11222_v2 = vpop.f32.mrb[3].mxu1  ;;  %v1031_v4 = vadd.f32 %v13686_v63, %v1023_v0 }
 0x127   :  { %v1032_v3 = vadd.f32 %v13684_v61, %v1028_v1  ;;  %v10529_v8 = vmul.f32 -1.442695, %v1031_v4 }
 0x129   :  { %13208 = vtanh.f32 %v1032_v3  ;;  %v10530_v7 = vmul.f32 -1.442695, %v1032_v3 }
 0x12a   :  { %13210 = vtanh.f32 %v1031_v4 }
 0x12b   :  { %13212 = vpow2.f32 %v10530_v7 }
 0x12c   :  { %13214 = vpow2.f32 %v10529_v8 }
 0x133   :  { %v13209_v5 = vpop.eup %13208 }
 0x134   :  { %1053 = vrot.lane.b32.xlu0 %v13209_v5, %s13518_s0  ;;  %v13211_v6 = vpop.eup %13210 }
 0x135   :  { %v13213_v9 = vpop.eup %13212 }
 0x136   :  { %v1040_v10 = vadd.f32 1.0, %v13213_v9  ;;  %v13215_v11 = vpop.eup %13214 }
 0x137   :  { %v1039_v12 = vadd.f32 1.0, %v13215_v11 }
 0x138   :  { %1051 = vrot.lane.b32.xlu0 %v13211_v6, %s13518_s0  ;;  %13216 = vrcp.f32 %v1040_v10 }
 0x139   :  { %13218 = vrcp.f32 %v1039_v12 }
 0x142   :  { %v13217_v13 = vpop.eup %13216 }
 0x143   :  { %v13219_v16 = vpop.eup %13218  ;;  %v1048_v19 = vmul.f32 0.0, %v13217_v13 }
 0x144   :  { %v1047_v22 = vmul.f32 0.0, %v13219_v16 }
 0x1a6   :  { %v1054_v14 = vpop.permute.xlu0 %1053 }
 0x1a7   :  { %v1058_v15 = vmul.f32 %v13217_v13, %v1054_v14 }
 0x1a9   :  { %1063 = vrot.lane.b32.xlu1 %v1058_v15, %s13518_s0 }
 0x1aa   :  { %v1052_v17 = vpop.permute.xlu0 %1051 }
 0x1ab   :  { %v1057_v18 = vmul.f32 %v13219_v16, %v1052_v17 }
 0x1ad   :  { %1061 = vrot.lane.b32.xlu1 %v1057_v18, %s13518_s0 }
 0x21b   :  { %v1064_v20 = vpop.permute.xlu1 %1063 }
 0x21c   :  { %v13694_v21 = vadd.f32 %v1064_v20, %v1048_v19 }
 0x21e   :  { %13220 = vtanh.f32 %v13694_v21  ;;  %v1607_v10 = vrot.slane %v13694_v21, 7 }
 0x21f   :  { %v1062_v23 = vpop.permute.xlu1 %1061 }
 0x220   :  { %v13697_v25 = vadd.f32 %v1062_v23, %v1047_v22 }
 0x222   :  { %13222 = vtanh.f32 %v13697_v25  ;;  %v1606_v12 = vrot.slane %v13697_v25, 7 }
 0x228   :  { %v13221_v26 = vpop.eup %13220 }
 0x229   :  { %1075 = vrot.lane.b32.xlu0 %v13221_v26, %s13518_s0 }
 0x22c   :  { %v13223_v27 = vpop.eup %13222 }
 0x22d   :  { %1073 = vrot.lane.b32.xlu1 %v13223_v27, %s13518_s0 }
 0x29b   :  { %v1076_v28 = vpop.permute.xlu0 %1075 }
 0x29c   :  { %v13702_v29 = vmul.f32 %v13217_v13, %v1076_v28 }
 0x29e   :  { %v1092_v31 = vrot.slane %v13702_v29, 7 }
 0x29f   :  { %v1074_v30 = vpop.permute.xlu1 %1073 }
 0x2a0   :  { %v13705_v32 = vmul.f32 %v13219_v16, %v1074_v30 }
 0x2a2   :  { %v1094_v34 = vsel %vm1093_vm3, %v1092_v31, %v13705_v32 }
 0x2a3   :  { %1095 = vrot.lane.b32.xlu0 %v1094_v34, %s13519_s1 }
 0x315   :  { %v1096_v35 = vpop.permute.xlu0 %1095 }
 0x316   :  { %v1097_v36 = vsel %vm538_vm4, %v1096_v35, 0 }
 0x317   :  { %v1168_v37 = vand.u32 4294901760, %v1097_v36 }
 0x319   :  { %v1169_v38 = vsub.f32 %v1097_v36, %v1168_v37  ;;  %11243 = vmatmul.mubr.f32.vlgmr.msra.gmra.mrb[2].mxu0 %v1168_v37 }
 0x31a   :  { %12395 = vmatpush3.bf16.msra.mxu0 %v13619_v51  ;;  %11253 = vmatprep.mubr.msk.f32.mxu0 %vm13516_vm2, %v13517_v46 }
 0x31b   :  { %v1170_v39 = vand.u32 4294901760, %v1169_v38  ;;  %12396 = vmatprep.subr.bf16.mxu0 %v13515_v24 }
 0x31d   :  { %v1171_v40 = vsub.f32 %v1169_v38, %v1170_v39 }
 0x31e   :  { %12398 = vmatpush3.bf16.msra.mxu0 %v13626_v52 }
 0x31f   :  { %v1172_v42 = vand.u32 4294901760, %v1171_v40  ;;  %12399 = vmatprep.subr.bf16.mxu0 %v13515_v24 }
 0x321   :  { %11232 = vmatmul.mubr.f32.vlgmr.msra.gmra.mrb[4].mxu1 %v1172_v42  ;;  %11254 = vmatmul.mubr.f32.vlgmr.msra.gmra.mrb[2].mxu0 %v1169_v38 }
 0x322   :  { %12401 = vmatpush3.bf16.msra.mxu0 %v13581_v33  ;;  %11264 = vmatprep.mubr.msk.f32.mxu0 %vm13516_vm2, %v13517_v46 }
 0x323   :  { %12402 = vmatprep.subr.bf16.mxu0 %v13515_v24  ;;  %12419 = vmatpush3.bf16.msra.mxu1 %v13581_v33 }
 0x324   :  { %12420 = vmatprep.subr.bf16.mxu1 %v13515_v24  ;;  %11297 = vmatprep.mubr.msk.f32.mxu1 %vm13516_vm2, %v13517_v46 }
 0x326   :  { %12404 = vmatpush3.bf16.msra.mxu0 %v13591_v41 }
 0x327   :  { %12405 = vmatprep.subr.bf16.mxu0 %v13515_v24  ;;  %12422 = vmatpush3.bf16.msra.mxu1 %v13591_v41 }
 0x328   :  { %12423 = vmatprep.subr.bf16.mxu1 %v13515_v24 }
 0x329   :  { %11265 = vmatmul.mubr.f32.vlgmr.msra.gmra.mrb[2].mxu0 %v1170_v39 }
 0x32a   :  { %12407 = vmatpush3.bf16.msra.mxu0 %v13649_v53  ;;  %11275 = vmatprep.mubr.msk.f32.mxu0 %vm13516_vm2, %v13517_v46 }
 0x32b   :  { %12408 = vmatprep.subr.bf16.mxu0 %v13515_v24 }
 0x32e   :  { %12410 = vmatpush3.bf16.msra.mxu0 %v13657_v54 }
 0x32f   :  { %12411 = vmatprep.subr.bf16.mxu0 %v13515_v24 }
 0x331   :  { %11276 = vmatmul.mubr.f32.vlgmr.msra.gmra.mrb[2].mxu0 %v1168_v37 }
 0x332   :  { %12413 = vmatpush3.bf16.msra.mxu0 %v13581_v33  ;;  %11286 = vmatprep.mubr.msk.f32.mxu0 %vm13516_vm2, %v13517_v46 }
 0x333   :  { %12414 = vmatprep.subr.bf16.mxu0 %v13515_v24 }
 0x336   :  { %12416 = vmatpush3.bf16.msra.mxu0 %v13591_v41 }
 0x337   :  { %12453 = vmatprep.subr.bf16.mxu0 %v13515_v24 }
 0x339   :  { %11287 = vmatmul.mubr.f32.vlgmr.msra.gmra.mrb[2].mxu0 %v1168_v37 }
 0x33a   :  { %12455 = vmatpush3.bf16.msra.mxu0 %v13581_v33  ;;  %11363 = vmatprep.mubr.msk.f32.mxu0 %vm13516_vm2, %v13517_v46 }
 0x33b   :  { %12456 = vmatprep.subr.bf16.mxu0 %v13515_v24 }
 0x33e   :  { %12458 = vmatpush3.bf16.msra.mxu0 %v13591_v41 }
 0x33f   :  { %12459 = vmatprep.subr.bf16.mxu0 %v13515_v24 }
 0x3f4   :  { %v1174_v43 = vpop.f32.mrb[4].mxu1 }
 0x3f5   :  { %v11233_v44 = vpop.f32.mrb[5].mxu1 }
 0x40c   :  { %v1580_v45 = vpop.f32.mrb[2].mxu0 }
 0x40d   :  { %v13009_v48 = vadd.f32 %v1580_v45, %v1174_v43  ;;  %v11288_v49 = vpop.f32.mrb[3].mxu0 }
 0x40f   :  { %v1585_v55 = vrot.slane %v13009_v48, 7  ;;  %v1589_v56 = vadd.f32 %v13009_v48, %v13684_v61 }
 0x411   :  { %v1588_v57 = vadd.f32 %v13686_v63, %v1585_v55  ;;  %13224 = vtanh.f32 %v1589_v56  ;;  %v10532_v60 = vmul.f32 -1.442695, %v1589_v56 }
 0x413   :  { %13226 = vtanh.f32 %v1588_v57  ;;  %v10531_v62 = vmul.f32 -1.442695, %v1588_v57 }
 0x414   :  { %13228 = vpow2.f32 %v10532_v60 }
 0x415   :  { %13230 = vpow2.f32 %v10531_v62 }
 0x41b   :  { %v13225_v58 = vpop.eup %13224 }
 0x41c   :  { %1616 = vrot.lane.b32.xlu0 %v13225_v58, %s13518_s0 }
 0x41d   :  { %v13227_v59 = vpop.eup %13226 }
 0x41e   :  { %1614 = vrot.lane.b32.xlu1 %v13227_v59, %s13518_s0  ;;  %v13229_v0 = vpop.eup %13228 }
 0x41f   :  { %v13231_v1 = vpop.eup %13230  ;;  %v1597_v2 = vadd.f32 1.0, %v13229_v0 }
 0x420   :  { %v1596_v3 = vadd.f32 1.0, %v13231_v1 }
 0x421   :  { %13232 = vrcp.f32 %v1597_v2 }
 0x422   :  { %13234 = vrcp.f32 %v1596_v3 }
 0x42b   :  { %v13233_v4 = vpop.eup %13232 }
 0x42c   :  { %v13235_v7 = vpop.eup %13234  ;;  %v1611_v11 = vmul.f32 %v13233_v4, %v1607_v10 }
 0x42d   :  { %v1610_v15 = vmul.f32 %v13235_v7, %v1606_v12 }
 0x48e   :  { %v1617_v5 = vpop.permute.xlu0 %1616 }
 0x48f   :  { %v1621_v6 = vmul.f32 %v13233_v4, %v1617_v5 }
 0x490   :  { %v1615_v8 = vpop.permute.xlu1 %1614 }
 0x491   :  { %1626 = vrot.lane.b32.xlu0 %v1621_v6, %s13518_s0  ;;  %v1620_v9 = vmul.f32 %v13235_v7, %v1615_v8 }
 0x493   :  { %1624 = vrot.lane.b32.xlu1 %v1620_v9, %s13518_s0 }
 0x503   :  { %v1627_v13 = vpop.permute.xlu0 %1626 }
 0x504   :  { %v13755_v14 = vadd.f32 %v1627_v13, %v1611_v11 }
 0x505   :  { %v1625_v16 = vpop.permute.xlu1 %1624 }
 0x506   :  { %13236 = vtanh.f32 %v13755_v14  ;;  %v13758_v17 = vadd.f32 %v1625_v16, %v1610_v15 }
 0x508   :  { %13238 = vtanh.f32 %v13758_v17  ;;  %v2169_v3 = vrot.slane %v13758_v17, 7 }
 0x510   :  { %v13237_v18 = vpop.eup %13236 }
 0x511   :  { %1638 = vrot.lane.b32.xlu0 %v13237_v18, %s13518_s0 }
 0x512   :  { %v13239_v19 = vpop.eup %13238 }
 0x513   :  { %1636 = vrot.lane.b32.xlu1 %v13239_v19, %s13518_s0 }
 0x583   :  { %v1639_v20 = vpop.permute.xlu0 %1638 }
 0x584   :  { %v13765_v23 = vmul.f32 %v13233_v4, %v1639_v20  ;;  %v2170_v4 = vrot.slane %v13755_v14, 7 }
 0x585   :  { %v1637_v21 = vpop.permute.xlu1 %1636 }
 0x586   :  { %v13763_v22 = vmul.f32 %v13235_v7, %v1637_v21 }
 0x588   :  { %v1655_v25 = vrot.slane %v13763_v22, 1 }
 0x58a   :  { %v1656_v26 = vsel %vm1093_vm3, %v13765_v23, %v1655_v25 }
 0x58b   :  { %1657 = vrot.lane.b32.xlu1 %v1656_v26, %s13519_s1 }
 0x5fd   :  { %v1658_v27 = vpop.permute.xlu1 %1657 }
 0x5fe   :  { %v1659_v28 = vsel %vm538_vm4, %v1658_v27, 0 }
 0x5ff   :  { %v1730_v30 = vand.u32 4294901760, %v1659_v28 }
 0x601   :  { %v1731_v31 = vsub.f32 %v1659_v28, %v1730_v30 }
 0x603   :  { %v1732_v34 = vand.u32 4294901760, %v1731_v31 }
 0x605   :  { %v1733_v35 = vsub.f32 %v1731_v31, %v1732_v34 }
 0x607   :  { %v1734_v36 = vand.u32 4294901760, %v1733_v35 }
 0x609   :  { %11298 = vmatmul.mubr.f32.vlgmr.msra.gmra.mrb[6].mxu1 %v1734_v36 }
 0x60a   :  { %12425 = vmatpush3.bf16.msra.mxu1 %v13603_v47  ;;  %11308 = vmatprep.mubr.msk.f32.mxu1 %vm13516_vm2, %v13517_v46 }
 0x60b   :  { %12426 = vmatprep.subr.bf16.mxu1 %v13515_v24 }
 0x60e   :  { %12428 = vmatpush3.bf16.msra.mxu1 %v13610_v50 }
 0x60f   :  { %12429 = vmatprep.subr.bf16.mxu1 %v13515_v24 }
 0x611   :  { %11309 = vmatmul.mubr.f32.vlgmr.msra.gmra.mrb[6].mxu1 %v1730_v30 }
 0x612   :  { %12431 = vmatpush3.bf16.msra.mxu1 %v13619_v51  ;;  %11319 = vmatprep.mubr.msk.f32.mxu1 %vm13516_vm2, %v13517_v46 }
 0x613   :  { %12432 = vmatprep.subr.bf16.mxu1 %v13515_v24 }
 0x616   :  { %12434 = vmatpush3.bf16.msra.mxu1 %v13626_v52 }
 0x617   :  { %12435 = vmatprep.subr.bf16.mxu1 %v13515_v24 }
 0x619   :  { %11320 = vmatmul.mubr.f32.vlgmr.msra.gmra.mrb[6].mxu1 %v1731_v31 }
 0x61a   :  { %12437 = vmatpush3.bf16.msra.mxu1 %v13581_v33  ;;  %11330 = vmatprep.mubr.msk.f32.mxu1 %vm13516_vm2, %v13517_v46 }
 0x61b   :  { %12438 = vmatprep.subr.bf16.mxu1 %v13515_v24 }
 0x61e   :  { %12440 = vmatpush3.bf16.msra.mxu1 %v13591_v41 }
 0x61f   :  { %12441 = vmatprep.subr.bf16.mxu1 %v13515_v24 }
 0x621   :  { %11331 = vmatmul.mubr.f32.vlgmr.msra.gmra.mrb[6].mxu1 %v1732_v34 }
 0x622   :  { %12443 = vmatpush3.bf16.msra.mxu1 %v13649_v53  ;;  %11341 = vmatprep.mubr.msk.f32.mxu1 %vm13516_vm2, %v13517_v46 }
 0x623   :  { %12444 = vmatprep.subr.bf16.mxu1 %v13515_v24 }
 0x626   :  { %12446 = vmatpush3.bf16.msra.mxu1 %v13657_v54 }
 0x627   :  { %12447 = vmatprep.subr.bf16.mxu1 %v13515_v24 }
 0x629   :  { %11342 = vmatmul.mubr.f32.vlgmr.msra.gmra.mrb[6].mxu1 %v1730_v30 }
 0x62a   :  { %12449 = vmatpush3.bf16.msra.mxu1 %v13581_v33  ;;  %11352 = vmatprep.mubr.msk.f32.mxu1 %vm13516_vm2, %v13517_v46 }
 0x62b   :  { %12450 = vmatprep.subr.bf16.mxu1 %v13515_v24 }
 0x62e   :  { %12452 = vmatpush3.bf16.msra.mxu1 %v13591_v41 }
 0x62f   :  { %12489 = vmatprep.subr.bf16.mxu1 %v13515_v24 }
 0x631   :  { %11353 = vmatmul.mubr.f32.vlgmr.msra.gmra.mrb[6].mxu1 %v1730_v30 }
 0x632   :  { %12491 = vmatpush3.bf16.msra.mxu1 %v13581_v33  ;;  %11429 = vmatprep.mubr.msk.f32.mxu1 %vm13516_vm2, %v13517_v46 }
 0x633   :  { %12492 = vmatprep.subr.bf16.mxu1 %v13515_v24 }
 0x636   :  { %12494 = vmatpush3.bf16.msra.mxu1 %v13591_v41 }
 0x637   :  { %12495 = vmatprep.subr.bf16.mxu1 %v13515_v24 }
 0x704   :  { %v2142_v37 = vpop.f32.mrb[6].mxu1 }
 0x705   :  { %v2147_v38 = vrot.slane %v2142_v37, 6  ;;  %v2148_v39 = vrot.slane %v2142_v37, 7  ;;  %v11354_v40 = vpop.f32.mrb[7].mxu1 }
 0x707   :  { %v2151_v42 = vadd.f32 %v13686_v63, %v2147_v38  ;;  %v2152_v43 = vadd.f32 %v13684_v61, %v2148_v39 }
 0x709   :  { %13240 = vtanh.f32 %v2151_v42  ;;  %v10533_v48 = vmul.f32 -1.442695, %v2151_v42  ;;  %v10534_v49 = vmul.f32 -1.442695, %v2152_v43 }
 0x70a   :  { %13242 = vtanh.f32 %v2152_v43 }
 0x70b   :  { %13244 = vpow2.f32 %v10533_v48 }
 0x70c   :  { %13246 = vpow2.f32 %v10534_v49 }
 0x713   :  { %v13241_v44 = vpop.eup %13240 }
 0x714   :  { %v13243_v45 = vpop.eup %13242  ;;  %2177 = vrot.lane.b32.xlu0 %v13241_v44, %s13518_s0 }
 0x715   :  { %2179 = vrot.lane.b32.xlu1 %v13243_v45, %s13518_s0  ;;  %v13245_v55 = vpop.eup %13244 }
 0x716   :  { %v13247_v56 = vpop.eup %13246  ;;  %v2159_v57 = vadd.f32 1.0, %v13245_v55 }
 0x717   :  { %v2160_v58 = vadd.f32 1.0, %v13247_v56 }
 0x718   :  { %13248 = vrcp.f32 %v2159_v57 }
 0x719   :  { %13250 = vrcp.f32 %v2160_v58 }
 0x722   :  { %v13249_v59 = vpop.eup %13248 }
 0x723   :  { %v13251_v62 = vpop.eup %13250  ;;  %v2173_v5 = vmul.f32 %v13249_v59, %v2169_v3 }
 0x724   :  { %v2174_v6 = vmul.f32 %v13251_v62, %v2170_v4 }
 0x786   :  { %v2178_v60 = vpop.permute.xlu0 %2177 }
 0x787   :  { %v2180_v0 = vpop.permute.xlu1 %2179  ;;  %v2183_v1 = vmul.f32 %v13249_v59, %v2178_v60 }
 0x788   :  { %v2184_v2 = vmul.f32 %v13251_v62, %v2180_v0 }
 0x789   :  { %2187 = vrot.lane.b32.xlu0 %v2183_v1, %s13518_s0 }
 0x78a   :  { %2189 = vrot.lane.b32.xlu1 %v2184_v2, %s13518_s0 }
 0x7fb   :  { %v2188_v7 = vpop.permute.xlu0 %2187 }
 0x7fc   :  { %v2190_v8 = vpop.permute.xlu1 %2189  ;;  %v13816_v9 = vadd.f32 %v2188_v7, %v2173_v5 }
 0x7fd   :  { %v13818_v10 = vadd.f32 %v2190_v8, %v2174_v6 }
 0x7fe   :  { %13252 = vtanh.f32 %v13816_v9 }
 0x7ff   :  { %13254 = vtanh.f32 %v13818_v10  ;;  %v2734_v0 = vrot.slane %v13818_v10, 7 }
 0x808   :  { %v13253_v11 = vpop.eup %13252 }
 0x809   :  { %v13255_v12 = vpop.eup %13254  ;;  %2199 = vrot.lane.b32.xlu0 %v13253_v11, %s13518_s0 }
 0x80a   :  { %2201 = vrot.lane.b32.xlu1 %v13255_v12, %s13518_s0 }
 0x87b   :  { %v2200_v13 = vpop.permute.xlu0 %2199 }
 0x87c   :  { %v2202_v14 = vpop.permute.xlu1 %2201  ;;  %v13824_v15 = vmul.f32 %v13249_v59, %v2200_v13 }
 0x87d   :  { %v13826_v16 = vmul.f32 %v13251_v62, %v2202_v14  ;;  %v2733_v62 = vrot.slane %v13816_v9, 7 }
 0x87e   :  { %v2218_v17 = vrot.slane %v13824_v15, 2 }
 0x87f   :  { %v2219_v18 = vrot.slane %v13826_v16, 1 }
 0x881   :  { %v2220_v19 = vsel %vm1093_vm3, %v2219_v18, %v2218_v17 }
 0x882   :  { %2221 = vrot.lane.b32.xlu0 %v2220_v19, %s13519_s1 }
 0x8f4   :  { %v2222_v20 = vpop.permute.xlu0 %2221 }
 0x8f5   :  { %v2223_v21 = vsel %vm538_vm4, %v2222_v20, 0 }
 0x8f6   :  { %v2294_v25 = vand.u32 4294901760, %v2223_v21 }
 0x8f8   :  { %v2295_v26 = vsub.f32 %v2223_v21, %v2294_v25 }
 0x8fa   :  { %v2296_v27 = vand.u32 4294901760, %v2295_v26 }
 0x8fc   :  { %v2297_v28 = vsub.f32 %v2295_v26, %v2296_v27 }
 0x8fe   :  { %v2298_v30 = vand.u32 4294901760, %v2297_v28 }
 0x900   :  { %11364 = vmatmul.mubr.f32.vlgmr.msra.gmra.mrb[4].mxu0 %v2298_v30 }
 0x901   :  { %12461 = vmatpush3.bf16.msra.mxu0 %v13603_v47  ;;  %11374 = vmatprep.mubr.msk.f32.mxu0 %vm13516_vm2, %v13517_v46 }
 0x902   :  { %12462 = vmatprep.subr.bf16.mxu0 %v13515_v24 }
 0x905   :  { %12464 = vmatpush3.bf16.msra.mxu0 %v13610_v50 }
 0x906   :  { %12465 = vmatprep.subr.bf16.mxu0 %v13515_v24 }
 0x908   :  { %11375 = vmatmul.mubr.f32.vlgmr.msra.gmra.mrb[4].mxu0 %v2294_v25 }
 0x909   :  { %12467 = vmatpush3.bf16.msra.mxu0 %v13619_v51  ;;  %11385 = vmatprep.mubr.msk.f32.mxu0 %vm13516_vm2, %v13517_v46 }
 0x90a   :  { %12468 = vmatprep.subr.bf16.mxu0 %v13515_v24 }
 0x90d   :  { %12470 = vmatpush3.bf16.msra.mxu0 %v13626_v52 }
 0x90e   :  { %12471 = vmatprep.subr.bf16.mxu0 %v13515_v24 }
 0x910   :  { %11386 = vmatmul.mubr.f32.vlgmr.msra.gmra.mrb[4].mxu0 %v2295_v26 }
 0x911   :  { %12473 = vmatpush3.bf16.msra.mxu0 %v13581_v33  ;;  %11396 = vmatprep.mubr.msk.f32.mxu0 %vm13516_vm2, %v13517_v46 }
 0x912   :  { %12474 = vmatprep.subr.bf16.mxu0 %v13515_v24 }
 0x915   :  { %12476 = vmatpush3.bf16.msra.mxu0 %v13591_v41 }
 0x916   :  { %12477 = vmatprep.subr.bf16.mxu0 %v13515_v24 }
 0x918   :  { %11397 = vmatmul.mubr.f32.vlgmr.msra.gmra.mrb[4].mxu0 %v2296_v27 }
 0x919   :  { %12479 = vmatpush3.bf16.msra.mxu0 %v13649_v53  ;;  %11407 = vmatprep.mubr.msk.f32.mxu0 %vm13516_vm2, %v13517_v46 }
 0x91a   :  { %12480 = vmatprep.subr.bf16.mxu0 %v13515_v24 }
 0x91d   :  { %12482 = vmatpush3.bf16.msra.mxu0 %v13657_v54 }
 0x91e   :  { %12483 = vmatprep.subr.bf16.mxu0 %v13515_v24 }
 0x920   :  { %11408 = vmatmul.mubr.f32.vlgmr.msra.gmra.mrb[4].mxu0 %v2294_v25 }
 0x921   :  { %12485 = vmatpush3.bf16.msra.mxu0 %v13581_v33  ;;  %11418 = vmatprep.mubr.msk.f32.mxu0 %vm13516_vm2, %v13517_v46 }
 0x922   :  { %12486 = vmatprep.subr.bf16.mxu0 %v13515_v24 }
 0x925   :  { %12488 = vmatpush3.bf16.msra.mxu0 %v13591_v41 }
 0x926   :  { %12525 = vmatprep.subr.bf16.mxu0 %v13515_v24 }
 0x928   :  { %11419 = vmatmul.mubr.f32.vlgmr.msra.gmra.mrb[4].mxu0 %v2294_v25 }
 0x929   :  { %12527 = vmatpush3.bf16.msra.mxu0 %v13581_v33  ;;  %11495 = vmatprep.mubr.msk.f32.mxu0 %vm13516_vm2, %v13517_v46 }
 0x92a   :  { %12528 = vmatprep.subr.bf16.mxu0 %v13515_v24 }
 0x92d   :  { %12530 = vmatpush3.bf16.msra.mxu0 %v13591_v41 }
 0x92e   :  { %12531 = vmatprep.subr.bf16.mxu0 %v13515_v24 }
 0x9fb   :  { %v2706_v31 = vpop.f32.mrb[4].mxu0 }
 0x9fc   :  { %v2711_v34 = vrot.slane %v2706_v31, 5  ;;  %v2712_v35 = vrot.slane %v2706_v31, 6  ;;  %v11420_v36 = vpop.f32.mrb[5].mxu0 }
 0x9fe   :  { %v2715_v37 = vadd.f32 %v13686_v63, %v2711_v34  ;;  %v2716_v38 = vadd.f32 %v13684_v61, %v2712_v35 }
 0xa00   :  { %13256 = vtanh.f32 %v2715_v37  ;;  %v10535_v42 = vmul.f32 -1.442695, %v2715_v37  ;;  %v10536_v43 = vmul.f32 -1.442695, %v2716_v38 }
 0xa01   :  { %13258 = vtanh.f32 %v2716_v38 }
 0xa02   :  { %13260 = vpow2.f32 %v10535_v42 }
 0xa03   :  { %13262 = vpow2.f32 %v10536_v43 }
 0xa0a   :  { %v13257_v39 = vpop.eup %13256 }
 0xa0b   :  { %v13259_v40 = vpop.eup %13258  ;;  %2741 = vrot.lane.b32.xlu1 %v13257_v39, %s13518_s0 }
 0xa0c   :  { %2743 = vrot.lane.b32.xlu0 %v13259_v40, %s13518_s0  ;;  %v13261_v44 = vpop.eup %13260 }
 0xa0d   :  { %v13263_v45 = vpop.eup %13262  ;;  %v2723_v48 = vadd.f32 1.0, %v13261_v44 }
 0xa0e   :  { %v2724_v49 = vadd.f32 1.0, %v13263_v45 }
 0xa0f   :  { %13264 = vrcp.f32 %v2723_v48 }
 0xa10   :  { %13266 = vrcp.f32 %v2724_v49 }
 0xa19   :  { %v13265_v55 = vpop.eup %13264 }
 0xa1a   :  { %v13267_v57 = vpop.eup %13266  ;;  %v2737_v1 = vmul.f32 %v13265_v55, %v2733_v62 }
 0xa1b   :  { %v2738_v2 = vmul.f32 %v13267_v57, %v2734_v0 }
 0xa7d   :  { %v2742_v56 = vpop.permute.xlu1 %2741 }
 0xa7e   :  { %v2744_v58 = vpop.permute.xlu0 %2743  ;;  %v2747_v59 = vmul.f32 %v13265_v55, %v2742_v56 }
 0xa7f   :  { %v2748_v60 = vmul.f32 %v13267_v57, %v2744_v58 }
 0xa80   :  { %2751 = vrot.lane.b32.xlu1 %v2747_v59, %s13518_s0 }
 0xa81   :  { %2753 = vrot.lane.b32.xlu0 %v2748_v60, %s13518_s0 }
 0xaf2   :  { %v2752_v3 = vpop.permute.xlu1 %2751 }
 0xaf3   :  { %v2754_v4 = vpop.permute.xlu0 %2753  ;;  %v13877_v5 = vadd.f32 %v2752_v3, %v2737_v1 }
 0xaf4   :  { %v13879_v6 = vadd.f32 %v2754_v4, %v2738_v2 }
 0xaf5   :  { %13268 = vtanh.f32 %v13877_v5  ;;  %v3297_v59 = vrot.slane %v13877_v5, 7 }
 0xaf6   :  { %13270 = vtanh.f32 %v13879_v6  ;;  %v3298_v60 = vrot.slane %v13879_v6, 7 }
 0xaff   :  { %v13269_v7 = vpop.eup %13268 }
 0xb00   :  { %v13271_v8 = vpop.eup %13270  ;;  %2763 = vrot.lane.b32.xlu1 %v13269_v7, %s13518_s0 }
 0xb01   :  { %2765 = vrot.lane.b32.xlu0 %v13271_v8, %s13518_s0 }
 0xb72   :  { %v2764_v9 = vpop.permute.xlu1 %2763 }
 0xb73   :  { %v2766_v10 = vpop.permute.xlu0 %2765  ;;  %v13885_v11 = vmul.f32 %v13265_v55, %v2764_v9 }
 0xb74   :  { %v13887_v12 = vmul.f32 %v13267_v57, %v2766_v10 }
 0xb75   :  { %v2782_v13 = vrot.slane %v13885_v11, 3 }
 0xb76   :  { %v2783_v14 = vrot.slane %v13887_v12, 2 }
 0xb78   :  { %v2784_v17 = vsel %vm1093_vm3, %v2783_v14, %v2782_v13 }
 0xb79   :  { %2785 = vrot.lane.b32.xlu1 %v2784_v17, %s13519_s1 }
 0xbeb   :  { %v2786_v18 = vpop.permute.xlu1 %2785 }
 0xbec   :  { %v2787_v19 = vsel %vm538_vm4, %v2786_v18, 0 }
 0xbed   :  { %v2858_v20 = vand.u32 4294901760, %v2787_v19 }
 0xbef   :  { %v2859_v21 = vsub.f32 %v2787_v19, %v2858_v20 }
 0xbf1   :  { %v2860_v25 = vand.u32 4294901760, %v2859_v21 }
 0xbf3   :  { %v2861_v26 = vsub.f32 %v2859_v21, %v2860_v25 }
 0xbf5   :  { %v2862_v27 = vand.u32 4294901760, %v2861_v26 }
 0xbf7   :  { %11430 = vmatmul.mubr.f32.vlgmr.msra.gmra.mrb[8].mxu1 %v2862_v27 }
 0xbf8   :  { %12497 = vmatpush3.bf16.msra.mxu1 %v13603_v47  ;;  %11440 = vmatprep.mubr.msk.f32.mxu1 %vm13516_vm2, %v13517_v46 }
 0xbf9   :  { %12498 = vmatprep.subr.bf16.mxu1 %v13515_v24 }
 0xbfc   :  { %12500 = vmatpush3.bf16.msra.mxu1 %v13610_v50 }
 0xbfd   :  { %12501 = vmatprep.subr.bf16.mxu1 %v13515_v24 }
 0xbff   :  { %11441 = vmatmul.mubr.f32.vlgmr.msra.gmra.mrb[8].mxu1 %v2858_v20 }
 0xc00   :  { %12503 = vmatpush3.bf16.msra.mxu1 %v13619_v51  ;;  %11451 = vmatprep.mubr.msk.f32.mxu1 %vm13516_vm2, %v13517_v46 }
 0xc01   :  { %12504 = vmatprep.subr.bf16.mxu1 %v13515_v24 }
 0xc04   :  { %12506 = vmatpush3.bf16.msra.mxu1 %v13626_v52 }
 0xc05   :  { %12507 = vmatprep.subr.bf16.mxu1 %v13515_v24 }
 0xc07   :  { %11452 = vmatmul.mubr.f32.vlgmr.msra.gmra.mrb[8].mxu1 %v2859_v21 }
 0xc08   :  { %12509 = vmatpush3.bf16.msra.mxu1 %v13581_v33  ;;  %11462 = vmatprep.mubr.msk.f32.mxu1 %vm13516_vm2, %v13517_v46 }
 0xc09   :  { %12510 = vmatprep.subr.bf16.mxu1 %v13515_v24 }
 0xc0c   :  { %12512 = vmatpush3.bf16.msra.mxu1 %v13591_v41 }
 0xc0d   :  { %12513 = vmatprep.subr.bf16.mxu1 %v13515_v24 }
 0xc0f   :  { %11463 = vmatmul.mubr.f32.vlgmr.msra.gmra.mrb[8].mxu1 %v2860_v25 }
 0xc10   :  { %12515 = vmatpush3.bf16.msra.mxu1 %v13649_v53  ;;  %11473 = vmatprep.mubr.msk.f32.mxu1 %vm13516_vm2, %v13517_v46 }
 0xc11   :  { %12516 = vmatprep.subr.bf16.mxu1 %v13515_v24 }
 0xc14   :  { %12518 = vmatpush3.bf16.msra.mxu1 %v13657_v54 }
 0xc15   :  { %12519 = vmatprep.subr.bf16.mxu1 %v13515_v24 }
 0xc17   :  { %11474 = vmatmul.mubr.f32.vlgmr.msra.gmra.mrb[8].mxu1 %v2858_v20 }
 0xc18   :  { %12521 = vmatpush3.bf16.msra.mxu1 %v13581_v33  ;;  %11484 = vmatprep.mubr.msk.f32.mxu1 %vm13516_vm2, %v13517_v46 }
 0xc19   :  { %12522 = vmatprep.subr.bf16.mxu1 %v13515_v24 }
 0xc1c   :  { %12524 = vmatpush3.bf16.msra.mxu1 %v13591_v41 }
 0xc1d   :  { %12561 = vmatprep.subr.bf16.mxu1 %v13515_v24 }
 0xc1f   :  { %11485 = vmatmul.mubr.f32.vlgmr.msra.gmra.mrb[8].mxu1 %v2858_v20 }
 0xc20   :  { %12563 = vmatpush3.bf16.msra.mxu1 %v13581_v33  ;;  %11561 = vmatprep.mubr.msk.f32.mxu1 %vm13516_vm2, %v13517_v46 }
 0xc21   :  { %12564 = vmatprep.subr.bf16.mxu1 %v13515_v24 }
 0xc24   :  { %12566 = vmatpush3.bf16.msra.mxu1 %v13591_v41 }
 0xc25   :  { %12567 = vmatprep.subr.bf16.mxu1 %v13515_v24 }
 0xcf2   :  { %v3270_v28 = vpop.f32.mrb[8].mxu1 }
 0xcf3   :  { %v3275_v30 = vrot.slane %v3270_v28, 4  ;;  %v3276_v31 = vrot.slane %v3270_v28, 5  ;;  %v11486_v34 = vpop.f32.mrb[9].mxu1 }
 0xcf5   :  { %v3279_v35 = vadd.f32 %v13686_v63, %v3275_v30  ;;  %v3280_v36 = vadd.f32 %v13684_v61, %v3276_v31 }
 0xcf7   :  { %13272 = vtanh.f32 %v3279_v35  ;;  %v10537_v39 = vmul.f32 -1.442695, %v3279_v35  ;;  %v10538_v40 = vmul.f32 -1.442695, %v3280_v36 }
 0xcf8   :  { %13274 = vtanh.f32 %v3280_v36 }
 0xcf9   :  { %13276 = vpow2.f32 %v10537_v39 }
 0xcfa   :  { %13278 = vpow2.f32 %v10538_v40 }
 0xd01   :  { %v13273_v37 = vpop.eup %13272 }
 0xd02   :  { %v13275_v38 = vpop.eup %13274  ;;  %3305 = vrot.lane.b32.xlu0 %v13273_v37, %s13518_s0 }
 0xd03   :  { %3307 = vrot.lane.b32.xlu1 %v13275_v38, %s13518_s0  ;;  %v13277_v42 = vpop.eup %13276 }
 0xd04   :  { %v13279_v43 = vpop.eup %13278  ;;  %v3287_v44 = vadd.f32 1.0, %v13277_v42 }
 0xd05   :  { %v3288_v45 = vadd.f32 1.0, %v13279_v43 }
 0xd06   :  { %13280 = vrcp.f32 %v3287_v44 }
 0xd07   :  { %13282 = vrcp.f32 %v3288_v45 }
 0xd10   :  { %v13281_v48 = vpop.eup %13280 }
 0xd11   :  { %v13283_v55 = vpop.eup %13282  ;;  %v3301_v62 = vmul.f32 %v13281_v48, %v3297_v59 }
 0xd12   :  { %v3302_v0 = vmul.f32 %v13283_v55, %v3298_v60 }
 0xd74   :  { %v3306_v49 = vpop.permute.xlu0 %3305 }
 0xd75   :  { %v3308_v56 = vpop.permute.xlu1 %3307  ;;  %v3311_v57 = vmul.f32 %v13281_v48, %v3306_v49 }
 0xd76   :  { %v3312_v58 = vmul.f32 %v13283_v55, %v3308_v56 }
 0xd77   :  { %3315 = vrot.lane.b32.xlu0 %v3311_v57, %s13518_s0 }
 0xd78   :  { %3317 = vrot.lane.b32.xlu1 %v3312_v58, %s13518_s0 }
 0xde9   :  { %v3316_v1 = vpop.permute.xlu0 %3315 }
 0xdea   :  { %v3318_v2 = vpop.permute.xlu1 %3317  ;;  %v13938_v3 = vadd.f32 %v3316_v1, %v3301_v62 }
 0xdeb   :  { %v13940_v4 = vadd.f32 %v3318_v2, %v3302_v0 }
 0xdec   :  { %13284 = vtanh.f32 %v13938_v3  ;;  %v3861_v59 = vrot.slane %v13938_v3, 7 }
 0xded   :  { %13286 = vtanh.f32 %v13940_v4  ;;  %v3862_v60 = vrot.slane %v13940_v4, 7 }
 0xdf6   :  { %v13285_v7 = vpop.eup %13284 }
 0xdf7   :  { %v13287_v8 = vpop.eup %13286  ;;  %3327 = vrot.lane.b32.xlu0 %v13285_v7, %s13518_s0 }
 0xdf8   :  { %3329 = vrot.lane.b32.xlu1 %v13287_v8, %s13518_s0 }
 0xe69   :  { %v3328_v5 = vpop.permute.xlu0 %3327 }
 0xe6a   :  { %v3330_v6 = vpop.permute.xlu1 %3329  ;;  %v13946_v9 = vmul.f32 %v13281_v48, %v3328_v5 }
 0xe6b   :  { %v13948_v10 = vmul.f32 %v13283_v55, %v3330_v6 }
 0xe6c   :  { %v3346_v13 = vrot.slane %v13946_v9, 4 }
 0xe6d   :  { %v3347_v14 = vrot.slane %v13948_v10, 3 }
 0xe6f   :  { %v3348_v17 = vsel %vm1093_vm3, %v3347_v14, %v3346_v13 }
 0xe70   :  { %3349 = vrot.lane.b32.xlu0 %v3348_v17, %s13519_s1 }
 0xee2   :  { %v3350_v18 = vpop.permute.xlu0 %3349 }
 0xee3   :  { %v3351_v19 = vsel %vm538_vm4, %v3350_v18, 0 }
 0xee4   :  { %v3422_v20 = vand.u32 4294901760, %v3351_v19 }
 0xee6   :  { %v3423_v21 = vsub.f32 %v3351_v19, %v3422_v20 }
 0xee8   :  { %v3424_v25 = vand.u32 4294901760, %v3423_v21 }
 0xeea   :  { %v3425_v26 = vsub.f32 %v3423_v21, %v3424_v25 }
 0xeec   :  { %v3426_v27 = vand.u32 4294901760, %v3425_v26 }
 0xeee   :  { %11496 = vmatmul.mubr.f32.vlgmr.msra.gmra.mrb[6].mxu0 %v3426_v27 }
 0xeef   :  { %12533 = vmatpush3.bf16.msra.mxu0 %v13603_v47  ;;  %11506 = vmatprep.mubr.msk.f32.mxu0 %vm13516_vm2, %v13517_v46 }
 0xef0   :  { %12534 = vmatprep.subr.bf16.mxu0 %v13515_v24 }
 0xef3   :  { %12536 = vmatpush3.bf16.msra.mxu0 %v13610_v50 }
 0xef4   :  { %12537 = vmatprep.subr.bf16.mxu0 %v13515_v24 }
 0xef6   :  { %11507 = vmatmul.mubr.f32.vlgmr.msra.gmra.mrb[6].mxu0 %v3422_v20 }
 0xef7   :  { %12539 = vmatpush3.bf16.msra.mxu0 %v13619_v51  ;;  %11517 = vmatprep.mubr.msk.f32.mxu0 %vm13516_vm2, %v13517_v46 }
 0xef8   :  { %12540 = vmatprep.subr.bf16.mxu0 %v13515_v24 }
 0xefb   :  { %12542 = vmatpush3.bf16.msra.mxu0 %v13626_v52 }
 0xefc   :  { %12543 = vmatprep.subr.bf16.mxu0 %v13515_v24 }
 0xefe   :  { %11518 = vmatmul.mubr.f32.vlgmr.msra.gmra.mrb[6].mxu0 %v3423_v21 }
 0xeff   :  { %12545 = vmatpush3.bf16.msra.mxu0 %v13581_v33  ;;  %11528 = vmatprep.mubr.msk.f32.mxu0 %vm13516_vm2, %v13517_v46 }
 0xf00   :  { %12546 = vmatprep.subr.bf16.mxu0 %v13515_v24 }
 0xf03   :  { %12548 = vmatpush3.bf16.msra.mxu0 %v13591_v41 }
 0xf04   :  { %12549 = vmatprep.subr.bf16.mxu0 %v13515_v24 }
 0xf06   :  { %11529 = vmatmul.mubr.f32.vlgmr.msra.gmra.mrb[6].mxu0 %v3424_v25 }
 0xf07   :  { %12551 = vmatpush3.bf16.msra.mxu0 %v13649_v53  ;;  %11539 = vmatprep.mubr.msk.f32.mxu0 %vm13516_vm2, %v13517_v46 }
 0xf08   :  { %12552 = vmatprep.subr.bf16.mxu0 %v13515_v24 }
 0xf0b   :  { %12554 = vmatpush3.bf16.msra.mxu0 %v13657_v54 }
 0xf0c   :  { %12555 = vmatprep.subr.bf16.mxu0 %v13515_v24 }
 0xf0e   :  { %11540 = vmatmul.mubr.f32.vlgmr.msra.gmra.mrb[6].mxu0 %v3422_v20 }
 0xf0f   :  { %12557 = vmatpush3.bf16.msra.mxu0 %v13581_v33  ;;  %11550 = vmatprep.mubr.msk.f32.mxu0 %vm13516_vm2, %v13517_v46 }
 0xf10   :  { %12558 = vmatprep.subr.bf16.mxu0 %v13515_v24 }
 0xf13   :  { %12560 = vmatpush3.bf16.msra.mxu0 %v13591_v41 }
 0xf14   :  { %12597 = vmatprep.subr.bf16.mxu0 %v13515_v24 }
 0xf16   :  { %11551 = vmatmul.mubr.f32.vlgmr.msra.gmra.mrb[6].mxu0 %v3422_v20 }
 0xf17   :  { %12599 = vmatpush3.bf16.msra.mxu0 %v13581_v33  ;;  %11627 = vmatprep.mubr.msk.f32.mxu0 %vm13516_vm2, %v13517_v46 }
 0xf18   :  { %12600 = vmatprep.subr.bf16.mxu0 %v13515_v24 }
 0xf1b   :  { %12602 = vmatpush3.bf16.msra.mxu0 %v13591_v41 }
 0xf1c   :  { %12603 = vmatprep.subr.bf16.mxu0 %v13515_v24 }
 0xfe9   :  { %v3834_v28 = vpop.f32.mrb[6].mxu0 }
 0xfea   :  { %v3839_v30 = vrot.slane %v3834_v28, 3  ;;  %v3840_v31 = vrot.slane %v3834_v28, 4  ;;  %v11552_v34 = vpop.f32.mrb[7].mxu0 }
 0xfec   :  { %v3843_v35 = vadd.f32 %v13686_v63, %v3839_v30  ;;  %v3844_v36 = vadd.f32 %v13684_v61, %v3840_v31 }
 0xfee   :  { %13288 = vtanh.f32 %v3843_v35  ;;  %v10539_v39 = vmul.f32 -1.442695, %v3843_v35  ;;  %v10540_v40 = vmul.f32 -1.442695, %v3844_v36 }
 0xfef   :  { %13290 = vtanh.f32 %v3844_v36 }
 0xff0   :  { %13292 = vpow2.f32 %v10539_v39 }
 0xff1   :  { %13294 = vpow2.f32 %v10540_v40 }
 0xff8   :  { %v13289_v37 = vpop.eup %13288 }
 0xff9   :  { %v13291_v38 = vpop.eup %13290  ;;  %3869 = vrot.lane.b32.xlu1 %v13289_v37, %s13518_s0 }
 0xffa   :  { %3871 = vrot.lane.b32.xlu0 %v13291_v38, %s13518_s0  ;;  %v13293_v42 = vpop.eup %13292 }
 0xffb   :  { %v13295_v43 = vpop.eup %13294  ;;  %v3851_v44 = vadd.f32 1.0, %v13293_v42 }
 0xffc   :  { %v3852_v45 = vadd.f32 1.0, %v13295_v43 }
 0xffd   :  { %13296 = vrcp.f32 %v3851_v44 }
 0xffe   :  { %13298 = vrcp.f32 %v3852_v45 }
0x1007   :  { %v13297_v48 = vpop.eup %13296 }
0x1008   :  { %v13299_v55 = vpop.eup %13298  ;;  %v3865_v62 = vmul.f32 %v13297_v48, %v3861_v59 }
0x1009   :  { %v3866_v0 = vmul.f32 %v13299_v55, %v3862_v60 }
0x106b   :  { %v3870_v49 = vpop.permute.xlu1 %3869 }
0x106c   :  { %v3872_v56 = vpop.permute.xlu0 %3871  ;;  %v3875_v57 = vmul.f32 %v13297_v48, %v3870_v49 }
0x106d   :  { %v3876_v58 = vmul.f32 %v13299_v55, %v3872_v56 }
0x106e   :  { %3879 = vrot.lane.b32.xlu1 %v3875_v57, %s13518_s0 }
0x106f   :  { %3881 = vrot.lane.b32.xlu0 %v3876_v58, %s13518_s0 }
0x10e0   :  { %v3880_v1 = vpop.permute.xlu1 %3879 }
0x10e1   :  { %v3882_v2 = vpop.permute.xlu0 %3881  ;;  %v13999_v7 = vadd.f32 %v3880_v1, %v3865_v62 }
0x10e2   :  { %v14001_v8 = vadd.f32 %v3882_v2, %v3866_v0 }
0x10e3   :  { %13300 = vtanh.f32 %v13999_v7  ;;  %v4425_v62 = vrot.slane %v13999_v7, 7 }
0x10e4   :  { %13302 = vtanh.f32 %v14001_v8  ;;  %v4426_v0 = vrot.slane %v14001_v8, 7 }
0x10ed   :  { %v13301_v5 = vpop.eup %13300 }
0x10ee   :  { %v13303_v6 = vpop.eup %13302  ;;  %3891 = vrot.lane.b32.xlu1 %v13301_v5, %s13518_s0 }
0x10ef   :  { %3893 = vrot.lane.b32.xlu0 %v13303_v6, %s13518_s0 }
0x1160   :  { %v3892_v3 = vpop.permute.xlu1 %3891 }
0x1161   :  { %v3894_v4 = vpop.permute.xlu0 %3893  ;;  %v14007_v13 = vmul.f32 %v13297_v48, %v3892_v3 }
0x1162   :  { %v14009_v14 = vmul.f32 %v13299_v55, %v3894_v4 }
0x1163   :  { %v3910_v17 = vrot.slane %v14007_v13, 5 }
0x1164   :  { %v3911_v18 = vrot.slane %v14009_v14, 4 }
0x1166   :  { %v3912_v19 = vsel %vm1093_vm3, %v3911_v18, %v3910_v17 }
0x1167   :  { %3913 = vrot.lane.b32.xlu1 %v3912_v19, %s13519_s1 }
0x11d9   :  { %v3914_v20 = vpop.permute.xlu1 %3913 }
0x11da   :  { %v3915_v21 = vsel %vm538_vm4, %v3914_v20, 0 }
0x11db   :  { %v3986_v25 = vand.u32 4294901760, %v3915_v21 }
0x11dd   :  { %v3987_v26 = vsub.f32 %v3915_v21, %v3986_v25 }
0x11df   :  { %v3988_v27 = vand.u32 4294901760, %v3987_v26 }
0x11e1   :  { %v3989_v28 = vsub.f32 %v3987_v26, %v3988_v27 }
0x11e3   :  { %v3990_v30 = vand.u32 4294901760, %v3989_v28 }
0x11e5   :  { %11562 = vmatmul.mubr.f32.vlgmr.msra.gmra.mrb[10].mxu1 %v3990_v30 }
0x11e6   :  { %12569 = vmatpush3.bf16.msra.mxu1 %v13603_v47  ;;  %11572 = vmatprep.mubr.msk.f32.mxu1 %vm13516_vm2, %v13517_v46 }
0x11e7   :  { %12570 = vmatprep.subr.bf16.mxu1 %v13515_v24 }
0x11ea   :  { %12572 = vmatpush3.bf16.msra.mxu1 %v13610_v50 }
0x11eb   :  { %12573 = vmatprep.subr.bf16.mxu1 %v13515_v24 }
0x11ed   :  { %11573 = vmatmul.mubr.f32.vlgmr.msra.gmra.mrb[10].mxu1 %v3986_v25 }
0x11ee   :  { %12575 = vmatpush3.bf16.msra.mxu1 %v13619_v51  ;;  %11583 = vmatprep.mubr.msk.f32.mxu1 %vm13516_vm2, %v13517_v46 }
0x11ef   :  { %12576 = vmatprep.subr.bf16.mxu1 %v13515_v24 }
0x11f2   :  { %12578 = vmatpush3.bf16.msra.mxu1 %v13626_v52 }
0x11f3   :  { %12579 = vmatprep.subr.bf16.mxu1 %v13515_v24 }
0x11f5   :  { %11584 = vmatmul.mubr.f32.vlgmr.msra.gmra.mrb[10].mxu1 %v3987_v26 }
0x11f6   :  { %12581 = vmatpush3.bf16.msra.mxu1 %v13581_v33  ;;  %11594 = vmatprep.mubr.msk.f32.mxu1 %vm13516_vm2, %v13517_v46 }
0x11f7   :  { %12582 = vmatprep.subr.bf16.mxu1 %v13515_v24 }
0x11fa   :  { %12584 = vmatpush3.bf16.msra.mxu1 %v13591_v41 }
0x11fb   :  { %12585 = vmatprep.subr.bf16.mxu1 %v13515_v24 }
0x11fd   :  { %11595 = vmatmul.mubr.f32.vlgmr.msra.gmra.mrb[10].mxu1 %v3988_v27 }
0x11fe   :  { %12587 = vmatpush3.bf16.msra.mxu1 %v13649_v53  ;;  %11605 = vmatprep.mubr.msk.f32.mxu1 %vm13516_vm2, %v13517_v46 }
0x11ff   :  { %12588 = vmatprep.subr.bf16.mxu1 %v13515_v24 }
0x1202   :  { %12590 = vmatpush3.bf16.msra.mxu1 %v13657_v54 }
0x1203   :  { %12591 = vmatprep.subr.bf16.mxu1 %v13515_v24 }
0x1205   :  { %11606 = vmatmul.mubr.f32.vlgmr.msra.gmra.mrb[10].mxu1 %v3986_v25 }
0x1206   :  { %12593 = vmatpush3.bf16.msra.mxu1 %v13581_v33  ;;  %11616 = vmatprep.mubr.msk.f32.mxu1 %vm13516_vm2, %v13517_v46 }
0x1207   :  { %12594 = vmatprep.subr.bf16.mxu1 %v13515_v24 }
0x120a   :  { %12596 = vmatpush3.bf16.msra.mxu1 %v13591_v41 }
0x120d   :  { %11617 = vmatmul.mubr.f32.vlgmr.msra.gmra.mrb[10].mxu1 %v3986_v25 }
0x12e0   :  { %v4398_v31 = vpop.f32.mrb[10].mxu1 }
0x12e1   :  { %v4403_v34 = vrot.slane %v4398_v31, 2  ;;  %v4404_v35 = vrot.slane %v4398_v31, 3  ;;  %v11618_v36 = vpop.f32.mrb[11].mxu1 }
0x12e3   :  { %v4407_v37 = vadd.f32 %v13686_v63, %v4403_v34  ;;  %v4408_v38 = vadd.f32 %v13684_v61, %v4404_v35 }
0x12e5   :  { %13304 = vtanh.f32 %v4407_v37  ;;  %v10541_v42 = vmul.f32 -1.442695, %v4407_v37  ;;  %v10542_v43 = vmul.f32 -1.442695, %v4408_v38 }
0x12e6   :  { %13306 = vtanh.f32 %v4408_v38 }
0x12e7   :  { %13308 = vpow2.f32 %v10541_v42 }
0x12e8   :  { %13310 = vpow2.f32 %v10542_v43 }
0x12ef   :  { %v13305_v39 = vpop.eup %13304 }
0x12f0   :  { %v13307_v40 = vpop.eup %13306  ;;  %4433 = vrot.lane.b32.xlu0 %v13305_v39, %s13518_s0 }
0x12f1   :  { %4435 = vrot.lane.b32.xlu1 %v13307_v40, %s13518_s0  ;;  %v13309_v44 = vpop.eup %13308 }
0x12f2   :  { %v13311_v45 = vpop.eup %13310  ;;  %v4415_v48 = vadd.f32 1.0, %v13309_v44 }
0x12f3   :  { %v4416_v49 = vadd.f32 1.0, %v13311_v45 }
0x12f4   :  { %13312 = vrcp.f32 %v4415_v48 }
0x12f5   :  { %13314 = vrcp.f32 %v4416_v49 }
0x12fe   :  { %v13313_v55 = vpop.eup %13312 }
0x12ff   :  { %v13315_v57 = vpop.eup %13314  ;;  %v4429_v1 = vmul.f32 %v13313_v55, %v4425_v62 }
0x1300   :  { %v4430_v2 = vmul.f32 %v13315_v57, %v4426_v0 }
0x1362   :  { %v4434_v56 = vpop.permute.xlu0 %4433 }
0x1363   :  { %v4436_v58 = vpop.permute.xlu1 %4435  ;;  %v4439_v59 = vmul.f32 %v13313_v55, %v4434_v56 }
0x1364   :  { %v4440_v60 = vmul.f32 %v13315_v57, %v4436_v58 }
0x1365   :  { %4443 = vrot.lane.b32.xlu0 %v4439_v59, %s13518_s0 }
0x1366   :  { %4445 = vrot.lane.b32.xlu1 %v4440_v60, %s13518_s0 }
0x13d7   :  { %v4444_v5 = vpop.permute.xlu0 %4443 }
0x13d8   :  { %v4446_v6 = vpop.permute.xlu1 %4445  ;;  %v14053_v3 = vadd.f32 %v4444_v5, %v4429_v1  ;;  %v5585_v5 = vld [vmem:[#allocation3 + $0x60] sm:$0xff] }
0x13d9   :  { %v14055_v4 = vadd.f32 %v4446_v6, %v4430_v2  ;;  %v5586_v6 = vld [vmem:[#allocation3 + $0x68] sm:$0xff] }
0x13da   :  { %13316 = vtanh.f32 %v14053_v3 }
0x13db   :  { %13318 = vtanh.f32 %v14055_v4  ;;  %v4990_v56 = vrot.slane %v14055_v4, 7 }
0x13e4   :  { %v13317_v17 = vpop.eup %13316 }
0x13e5   :  { %v13319_v18 = vpop.eup %13318  ;;  %4455 = vrot.lane.b32.xlu0 %v13317_v17, %s13518_s0 }
0x13e6   :  { %4457 = vrot.lane.b32.xlu1 %v13319_v18, %s13518_s0 }
0x1457   :  { %v4456_v7 = vpop.permute.xlu0 %4455 }
0x1458   :  { %v4458_v8 = vpop.permute.xlu1 %4457  ;;  %v14061_v19 = vmul.f32 %v13313_v55, %v4456_v7  ;;  %v4989_v55 = vrot.slane %v14053_v3, 7  ;;  %v5594_v3 = vand.u32 4294901760, %v5585_v5 }
0x1459   :  { %v14063_v20 = vmul.f32 %v13315_v57, %v4458_v8 }
0x145a   :  { %v4474_v21 = vrot.slane %v14061_v19, 6  ;;  %v5682_v18 = vsub.f32 %v5585_v5, %v5594_v3 }
0x145b   :  { %v4475_v25 = vrot.slane %v14063_v20, 5 }
0x145d   :  { %v4476_v26 = vsel %vm1093_vm3, %v4475_v25, %v4474_v21 }
0x145e   :  { %4477 = vrot.lane.b32.xlu0 %v4476_v26, %s13519_s1 }
0x14d0   :  { %v4478_v27 = vpop.permute.xlu0 %4477 }
0x14d1   :  { %v4479_v28 = vsel %vm538_vm4, %v4478_v27, 0 }
0x14d2   :  { %v4550_v30 = vand.u32 4294901760, %v4479_v28 }
0x14d4   :  { %v4551_v31 = vsub.f32 %v4479_v28, %v4550_v30 }
0x14d6   :  { %v4552_v34 = vand.u32 4294901760, %v4551_v31 }
0x14d8   :  { %v4553_v35 = vsub.f32 %v4551_v31, %v4552_v34 }
0x14da   :  { %v4554_v36 = vand.u32 4294901760, %v4553_v35 }
0x14dc   :  { %11628 = vmatmul.mubr.f32.vlgmr.msra.gmra.mrb[8].mxu0 %v4554_v36  ;;  %v5040_v36 = vld [vmem:[#allocation3 + $0x30] sm:$0xff] }
0x14dd   :  { %12605 = vmatpush3.bf16.msra.mxu0 %v13603_v47  ;;  %11638 = vmatprep.mubr.msk.f32.mxu0 %vm13516_vm2, %v13517_v46 }
0x14de   :  { %12606 = vmatprep.subr.bf16.mxu0 %v13515_v24 }
0x14e1   :  { %12608 = vmatpush3.bf16.msra.mxu0 %v13610_v50 }
0x14e2   :  { %12609 = vmatprep.subr.bf16.mxu0 %v13515_v24 }
0x14e4   :  { %11639 = vmatmul.mubr.f32.vlgmr.msra.gmra.mrb[8].mxu0 %v4550_v30 }
0x14e5   :  { %12611 = vmatpush3.bf16.msra.mxu0 %v13619_v51  ;;  %11649 = vmatprep.mubr.msk.f32.mxu0 %vm13516_vm2, %v13517_v46 }
0x14e6   :  { %12612 = vmatprep.subr.bf16.mxu0 %v13515_v24 }
0x14e9   :  { %12614 = vmatpush3.bf16.msra.mxu0 %v13626_v52 }
0x14ea   :  { %12615 = vmatprep.subr.bf16.mxu0 %v13515_v24 }
0x14ec   :  { %11650 = vmatmul.mubr.f32.vlgmr.msra.gmra.mrb[8].mxu0 %v4551_v31 }
0x14ed   :  { %12617 = vmatpush3.bf16.msra.mxu0 %v13581_v33  ;;  %11660 = vmatprep.mubr.msk.f32.mxu0 %vm13516_vm2, %v13517_v46 }
0x14ee   :  { %12618 = vmatprep.subr.bf16.mxu0 %v13515_v24 }
0x14f1   :  { %12620 = vmatpush3.bf16.msra.mxu0 %v13591_v41 }
0x14f2   :  { %12621 = vmatprep.subr.bf16.mxu0 %v13515_v24 }
0x14f4   :  { %11661 = vmatmul.mubr.f32.vlgmr.msra.gmra.mrb[8].mxu0 %v4552_v34 }
0x14f5   :  { %12623 = vmatpush3.bf16.msra.mxu0 %v13649_v53  ;;  %11671 = vmatprep.mubr.msk.f32.mxu0 %vm13516_vm2, %v13517_v46 }
0x14f6   :  { %12624 = vmatprep.subr.bf16.mxu0 %v13515_v24 }
0x14f9   :  { %12626 = vmatpush3.bf16.msra.mxu0 %v13657_v54 }
0x14fa   :  { %12627 = vmatprep.subr.bf16.mxu0 %v13515_v24 }
0x14fc   :  { %11672 = vmatmul.mubr.f32.vlgmr.msra.gmra.mrb[8].mxu0 %v4550_v30 }
0x14fd   :  { %12629 = vmatpush3.bf16.msra.mxu0 %v13581_v33  ;;  %11682 = vmatprep.mubr.msk.f32.mxu0 %vm13516_vm2, %v13517_v46 }
0x14fe   :  { %12630 = vmatprep.subr.bf16.mxu0 %v13515_v24 }
0x1501   :  { %12632 = vmatpush3.bf16.msra.mxu0 %v13591_v41 }
0x1502   :  { %12681 = vmatprep.subr.bf16.mxu0 %v13515_v24 }
0x1504   :  { %11683 = vmatmul.mubr.f32.vlgmr.msra.gmra.mrb[8].mxu0 %v4550_v30 }
0x1505   :  { %11759 = vmatprep.mubr.msk.f32.mxu0 %vm13516_vm2, %v13517_v46 }
0x15d7   :  { %v4962_v47 = vpop.f32.mrb[8].mxu0 }
0x15d8   :  { %v4967_v50 = vrot.slane %v4962_v47, 1  ;;  %v4968_v51 = vrot.slane %v4962_v47, 2  ;;  %v11684_v52 = vpop.f32.mrb[9].mxu0  ;;  %v5041_v47 = vld [vmem:[#allocation3 + $0x38] sm:$0xff] }
0x15d9   :  { %v5059_v52 = vand.u32 4294901760, %v5041_v47 }
0x15da   :  { %v4971_v53 = vadd.f32 %v13686_v63, %v4967_v50  ;;  %v4972_v33 = vadd.f32 %v13684_v61, %v4968_v51  ;;  %v5042_v50 = vld [vmem:[#allocation3 + $0x40] sm:$0xff]  ;;  %v5056_v51 = vand.u32 4294901760, %v5040_v36 }
0x15dc   :  { %13320 = vtanh.f32 %v4971_v53  ;;  %v10543_v41 = vmul.f32 -1.442695, %v4971_v53  ;;  %v10544_v38 = vmul.f32 -1.442695, %v4972_v33  ;;  %v5043_v53 = vld [vmem:[#allocation3 + $0x48] sm:$0xff] }
0x15dd   :  { %13322 = vtanh.f32 %v4972_v33  ;;  %v5062_v33 = vand.u32 4294901760, %v5042_v50 }
0x15de   :  { %13324 = vpow2.f32 %v10543_v41  ;;  %v14194_v41 = vpack.c.bf16 %v5059_v52, %v5056_v51 }
0x15df   :  { %13326 = vpow2.f32 %v10544_v38 }
0x15e0   :  { %12634 = vmatprep.subr.bf16.mxu1 %v14194_v41 }
0x15e1   :  { %12636 = vmatpush3.bf16.msra.mxu1 %v14194_v41 }
0x15e6   :  { %v13321_v54 = vpop.eup %13320 }
0x15e7   :  { %v13323_v37 = vpop.eup %13322  ;;  %4997 = vrot.lane.b32.xlu1 %v13321_v54, %s13518_s0 }
0x15e8   :  { %4999 = vrot.lane.b32.xlu0 %v13323_v37, %s13518_s0  ;;  %v13325_v39 = vpop.eup %13324  ;;  %v5065_v37 = vand.u32 4294901760, %v5043_v53 }
0x15e9   :  { %v13327_v40 = vpop.eup %13326  ;;  %v4979_v42 = vadd.f32 1.0, %v13325_v39 }
0x15ea   :  { %v4980_v43 = vadd.f32 1.0, %v13327_v40  ;;  %v14196_v38 = vpack.c.bf16 %v5065_v37, %v5062_v33 }
0x15eb   :  { %13328 = vrcp.f32 %v4979_v42 }
0x15ec   :  { %13330 = vrcp.f32 %v4980_v43  ;;  %12638 = vmatprep.subr.bf16.mxu1 %v14196_v38 }
0x15ed   :  { %12640 = vmatpush3.bf16.msra.mxu1 %v14196_v38 }
0x15f5   :  { %v14106_v63 = vpop.eup %13328 }
0x15f6   :  { %v14108_v44 = vpop.eup %13330  ;;  %v4993_v57 = vmul.f32 %v14106_v63, %v4989_v55 }
0x15f7   :  { %v4994_v58 = vmul.f32 %v14108_v44, %v4990_v56 }
0x1659   :  { %v4998_v61 = vpop.permute.xlu1 %4997 }
0x165a   :  { %v5000_v45 = vpop.permute.xlu0 %4999  ;;  %v5003_v48 = vmul.f32 %v14106_v63, %v4998_v61  ;;  %v14208_v61 = vsub.f32 %v5040_v36, %v5056_v51 }
0x165b   :  { %v5004_v49 = vmul.f32 %v14108_v44, %v5000_v45  ;;  %v14210_v45 = vsub.f32 %v5041_v47, %v5059_v52 }
0x165c   :  { %5007 = vrot.lane.b32.xlu1 %v5003_v48, %s13518_s0 }
0x165d   :  { %5009 = vrot.lane.b32.xlu0 %v5004_v49, %s13518_s0  ;;  %v5147_v49 = vand.u32 4294901760, %v14208_v61  ;;  %v5154_v55 = vand.u32 4294901760, %v14210_v45 }
0x16ce   :  { %v5008_v59 = vpop.permute.xlu1 %5007 }
0x16cf   :  { %v5010_v60 = vpop.permute.xlu0 %5009  ;;  %v5013_v62 = vadd.f32 %v5008_v59, %v4993_v57  ;;  %v5155_v57 = vsub.f32 %v14210_v45, %v5154_v55  ;;  %v5167_v59 = vsub.f32 %v5043_v53, %v5065_v37 }
0x16d0   :  { %v5014_v0 = vadd.f32 %v5010_v60, %v4994_v58  ;;  %v5160_v58 = vsub.f32 %v5042_v50, %v5062_v33 }
0x16d1   :  { %13332 = vtanh.f32 %v5013_v62 }
0x16d2   :  { %13334 = vtanh.f32 %v5014_v0  ;;  %v5156_v0 = vand.u32 4294901760, %v5155_v57 }
0x16db   :  { %v13333_v1 = vpop.eup %13332 }
0x16dc   :  { %v13335_v2 = vpop.eup %13334  ;;  %5019 = vrot.lane.b32.xlu1 %v13333_v1, %s13518_s0  ;;  %v5161_v1 = vand.u32 4294901760, %v5160_v58 }
0x16dd   :  { %5021 = vrot.lane.b32.xlu0 %v13335_v2, %s13518_s0  ;;  %v5168_v2 = vand.u32 4294901760, %v5167_v59 }
0x16de   :  { %v5162_v5 = vsub.f32 %v5160_v58, %v5161_v1 }
0x16e0   :  { %1083 = vrot.lane.b32.xlu1 %v13705_v32, %s13519_s1  ;;  %v5583_v32 = vld [vmem:[#allocation3 + $0x50] sm:$0xff] }
0x16e1   :  { %1646 = vrot.lane.b32.xlu0 %v13763_v22, %s13519_s1  ;;  %v5584_v22 = vld [vmem:[#allocation3 + $0x58] sm:$0xff] }
0x16e4   :  { %2209 = vrot.lane.b32.xlu1 %v13824_v15, %s13519_s1  ;;  %v5588_v15 = vand.u32 4294901760, %v5583_v32 }
0x16e5   :  { %2773 = vrot.lane.b32.xlu0 %v13885_v11, %s13519_s1  ;;  %v5591_v11 = vand.u32 4294901760, %v5584_v22 }
0x16e6   :  { %v5668_v4 = vsub.f32 %v5583_v32, %v5588_v15 }
0x16e7   :  { %v5675_v17 = vsub.f32 %v5584_v22, %v5591_v11 }
0x16e8   :  { %3337 = vrot.lane.b32.xlu1 %v13946_v9, %s13519_s1  ;;  %v5597_v9 = vand.u32 4294901760, %v5586_v6  ;;  %v5669_v7 = vand.u32 4294901760, %v5668_v4 }
0x16e9   :  { %3901 = vrot.lane.b32.xlu0 %v14007_v13, %s13519_s1  ;;  %v14140_v13 = vpack.c.bf16 %v5591_v11, %v5588_v15  ;;  %v5676_v8 = vand.u32 4294901760, %v5675_v17  ;;  %v5169_v15 = vsub.f32 %v5167_v59, %v5168_v2 }
0x16ea   :  { %v5670_v21 = vsub.f32 %v5668_v4, %v5669_v7 }
0x16eb   :  { %12683 = vmatpush3.bf16.msra.mxu0 %v14140_v13  ;;  %v5677_v25 = vsub.f32 %v5675_v17, %v5676_v8  ;;  %v14188_v35 = vpack.c.bf16 %v5676_v8, %v5669_v7  ;;  %v12653_v8 = vpack.c.bf16 %v5167_v59, %v5160_v58 }
0x16ec   :  { %4465 = vrot.lane.b32.xlu1 %v14061_v19, %s13519_s1  ;;  %v5683_v19 = vand.u32 4294901760, %v5682_v18  ;;  %12684 = vmatprep.subr.bf16.mxu0 %v13515_v24 }
0x16ed   :  { %1648 = vrot.lane.b32.xlu0 %v13765_v23, %s13519_s1  ;;  %v5689_v23 = vsub.f32 %v5586_v6, %v5597_v9  ;;  %v5678_v28 = vand.u32 4294901760, %v5677_v25  ;;  %v5163_v6 = vand.u32 4294901760, %v5162_v5 }
0x16ee   :  { %v5684_v26 = vsub.f32 %v5682_v18, %v5683_v19 }
0x16f0   :  { %1085 = vrot.lane.b32.xlu1 %v13702_v29, %s13519_s1  ;;  %v14145_v29 = vpack.c.bf16 %v5597_v9, %v5594_v3  ;;  %v5685_v30 = vand.u32 4294901760, %v5684_v26  ;;  %v5170_v3 = vand.u32 4294901760, %v5169_v15  ;;  %v12665_v26 = vpack.c.bf16 %v5154_v55, %v5147_v49 }
0x16f1   :  { %2775 = vrot.lane.b32.xlu0 %v13887_v12, %s13519_s1  ;;  %v5690_v12 = vand.u32 4294901760, %v5689_v23 }
0x16f2   :  { %12686 = vmatpush3.bf16.msra.mxu0 %v14145_v29 }
0x16f3   :  { %v5691_v27 = vsub.f32 %v5689_v23, %v5690_v12  ;;  %12687 = vmatprep.subr.bf16.mxu0 %v13515_v24  ;;  %v14191_v54 = vpack.c.bf16 %v5690_v12, %v5683_v19 }
0x16f4   :  { %2211 = vrot.lane.b32.xlu1 %v13826_v16, %s13519_s1  ;;  %v5671_v16 = vand.u32 4294901760, %v5670_v21 }
0x16f5   :  { %3903 = vrot.lane.b32.xlu0 %v14009_v14, %s13519_s1  ;;  %v5692_v31 = vand.u32 4294901760, %v5691_v27  ;;  %11760 = vmatmul.mubr.f32.vlgmr.msra.gmra.mrb[10].mxu0 %v13517_v46  ;;  %v12669_v27 = vpack.c.bf16 %v5168_v2, %v5161_v1 }
0x16f6   :  { %v14154_v34 = vpack.c.bf16 %v5678_v28, %v5671_v16  ;;  %11770 = vmatprep.mubr.msk.f32.mxu0 %vm13516_vm2, %v13517_v46 }
0x16f7   :  { %v14160_v14 = vpack.c.bf16 %v5692_v31, %v5685_v30 }
0x16f8   :  { %3339 = vrot.lane.b32.xlu1 %v13948_v10, %s13519_s1  ;;  %12689 = vmatpush3.bf16.msra.mxu0 %v14154_v34  ;;  %v14166_v10 = vpack.c.bf16 %v5675_v17, %v5668_v4  ;;  %v12645_v4 = vpack.c.bf16 %v5170_v3, %v5163_v6 }
0x16f9   :  { %12690 = vmatprep.subr.bf16.mxu0 %v13515_v24 }
0x16fc   :  { %4467 = vrot.lane.b32.xlu1 %v14063_v20, %s13519_s1  ;;  %12692 = vmatpush3.bf16.msra.mxu0 %v14160_v14  ;;  %v14171_v20 = vpack.c.bf16 %v5689_v23, %v5682_v18  ;;  %v12649_v23 = vpack.c.bf16 %v14210_v45, %v14208_v61  ;;  %v10545_v45 = vld [vmem:[#allocation3 + $0x70] ss:$0 sm:$0xff] }
0x16fd   :  { %12693 = vmatprep.subr.bf16.mxu0 %v13515_v24 }
0x16ff   :  { %11771 = vmatmul.mubr.f32.vlgmr.msra.gmra.mrb[10].mxu0 %v13517_v46 }
0x1700   :  { %12695 = vmatpush3.bf16.msra.mxu0 %v14166_v10  ;;  %11781 = vmatprep.mubr.msk.f32.mxu0 %vm13516_vm2, %v13517_v46 }
0x1701   :  { %12696 = vmatprep.subr.bf16.mxu0 %v13515_v24 }
0x1704   :  { %12698 = vmatpush3.bf16.msra.mxu0 %v14171_v20 }
0x1705   :  { %12699 = vmatprep.subr.bf16.mxu0 %v13515_v24 }
0x1707   :  { %11782 = vmatmul.mubr.f32.vlgmr.msra.gmra.mrb[10].mxu0 %v13517_v46 }
0x1708   :  { %12701 = vmatpush3.bf16.msra.mxu0 %v14140_v13  ;;  %11792 = vmatprep.mubr.msk.f32.mxu0 %vm13516_vm2, %v13517_v46 }
0x1709   :  { %12702 = vmatprep.subr.bf16.mxu0 %v13515_v24 }
0x170c   :  { %12704 = vmatpush3.bf16.msra.mxu0 %v14145_v29 }
0x170d   :  { %12705 = vmatprep.subr.bf16.mxu0 %v13515_v24 }
0x170f   :  { %11793 = vmatmul.mubr.f32.vlgmr.msra.gmra.mrb[10].mxu0 %v13517_v46 }
0x1710   :  { %11803 = vmatprep.mubr.msk.f32.mxu0 %vm13516_vm2, %v13517_v46  ;;  %12707 = vmatpush3.bf16.msra.mxu0 %v14188_v35 }
0x1711   :  { %12708 = vmatprep.subr.bf16.mxu0 %v13515_v24 }
0x1714   :  { %12710 = vmatpush3.bf16.msra.mxu0 %v14191_v54 }
0x1715   :  { %12711 = vmatprep.subr.bf16.mxu0 %v13515_v24 }
0x1717   :  { %11804 = vmatmul.mubr.f32.vlgmr.msra.gmra.mrb[10].mxu0 %v13517_v46 }
0x1718   :  { %12713 = vmatpush3.bf16.msra.mxu0 %v14140_v13  ;;  %11814 = vmatprep.mubr.msk.f32.mxu0 %vm13516_vm2, %v13517_v46 }
0x1719   :  { %12714 = vmatprep.subr.bf16.mxu0 %v13515_v24 }
0x171c   :  { %12716 = vmatpush3.bf16.msra.mxu0 %v14145_v29 }
0x171d   :  { %12753 = vmatprep.subr.bf16.mxu0 %v13515_v24 }
0x171f   :  { %11815 = vmatmul.mubr.f32.vlgmr.msra.gmra.mrb[10].mxu0 %v13517_v46 }
0x1720   :  { %12755 = vmatpush3.bf16.msra.mxu0 %v14140_v13  ;;  %11891 = vmatprep.mubr.msk.f32.mxu0 %vm13516_vm2, %v13517_v46 }
0x1721   :  { %12756 = vmatprep.subr.bf16.mxu0 %v13515_v24 }
0x1724   :  { %12758 = vmatpush3.bf16.msra.mxu0 %v14145_v29 }
0x1725   :  { %12759 = vmatprep.subr.bf16.mxu0 %v13515_v24 }
0x174e   :  { %v5020_v39 = vpop.permute.xlu1 %5019 }
0x174f   :  { %v5022_v40 = vpop.permute.xlu0 %5021  ;;  %v5025_v42 = vmul.f32 %v14106_v63, %v5020_v39 }
0x1750   :  { %v5026_v63 = vmul.f32 %v14108_v44, %v5022_v40  ;;  %v5148_v44 = vsub.f32 %v14208_v61, %v5147_v49 }
0x1751   :  { %5029 = vrot.lane.b32.xlu0 %v5025_v42, %s13519_s1 }
0x1752   :  { %v1084_v43 = vpop.permute.xlu1 %1083  ;;  %v5149_v62 = vand.u32 4294901760, %v5148_v44 }
0x1753   :  { %v1647_v48 = vpop.permute.xlu0 %1646  ;;  %1090 = vst.msk [vmem:[#allocation2] sm:$0x1] %vm1089_vm5, %v1084_v43 }
0x1754   :  { %1653 = vst.msk [vmem:[#allocation2] sm:$0x2] %vm1652_vm6, %v1647_v48  ;;  %v12641_v22 = vpack.c.bf16 %v5156_v0, %v5149_v62 }
0x1755   :  { %5031 = vrot.lane.b32.xlu0 %v5026_v63, %s13519_s1 }
0x1756   :  { %v2210_v56 = vpop.permute.xlu1 %2209  ;;  %12642 = vmatprep.subr.bf16.mxu1 %v12641_v22 }
0x1757   :  { %v2774_v60 = vpop.permute.xlu0 %2773  ;;  %2216 = vst.msk [vmem:[#allocation2] sm:$0x4] %vm2215_vm7, %v2210_v56 }
0x1758   :  { %2780 = vst.msk [vmem:[#allocation2] sm:$0x8] %vm2779_vm8, %v2774_v60 }
0x175a   :  { %v3338_v32 = vpop.permute.xlu1 %3337 }
0x175b   :  { %v3902_v11 = vpop.permute.xlu0 %3901  ;;  %3344 = vst.msk [vmem:[#allocation2] sm:$0x10] %vm3343_vm9, %v3338_v32 }
0x175c   :  { %3908 = vst.msk [vmem:[#allocation2] sm:$0x20] %vm3907_vm10, %v3902_v11 }
0x175e   :  { %v4466_v9 = vpop.permute.xlu1 %4465 }
0x175f   :  { %v1649_v17 = vpop.permute.xlu0 %1648  ;;  %4472 = vst.msk [vmem:[#allocation2] sm:$0x40] %vm4471_vm11, %v4466_v9 }
0x1760   :  { %1654 = vst.msk [vmem:[#allocation2 + $0x8] sm:$0x2] %vm1652_vm6, %v1649_v17 }
0x1762   :  { %v1086_v18 = vpop.permute.xlu1 %1085 }
0x1763   :  { %v2776_v7 = vpop.permute.xlu0 %2775  ;;  %1091 = vst.msk [vmem:[#allocation2 + $0x8] sm:$0x1] %vm1089_vm5, %v1086_v18 }
0x1764   :  { %2781 = vst.msk [vmem:[#allocation2 + $0x8] sm:$0x8] %vm2779_vm8, %v2776_v7 }
0x1766   :  { %v2212_v19 = vpop.permute.xlu1 %2211 }
0x1767   :  { %v3904_v12 = vpop.permute.xlu0 %3903  ;;  %2217 = vst.msk [vmem:[#allocation2 + $0x8] sm:$0x4] %vm2215_vm7, %v2212_v19 }
0x1768   :  { %3909 = vst.msk [vmem:[#allocation2 + $0x8] sm:$0x20] %vm3907_vm10, %v3904_v12 }
0x176a   :  { %v3340_v21 = vpop.permute.xlu1 %3339 }
0x176b   :  { %3345 = vst.msk [vmem:[#allocation2 + $0x8] sm:$0x10] %vm3343_vm9, %v3340_v21 }
0x176e   :  { %v4468_v25 = vpop.permute.xlu1 %4467 }
0x176f   :  { %4473 = vst.msk [vmem:[#allocation2 + $0x8] sm:$0x40] %vm4471_vm11, %v4468_v25 }
0x17c3   :  { %v5030_v16 = vpop.permute.xlu0 %5029 }
0x17c4   :  { %5036 = vst.msk [vmem:[#allocation2] sm:$0x80] %vm5035_vm12, %v5030_v16 }
0x17c7   :  { %v5032_v28 = vpop.permute.xlu0 %5031 }
0x17c8   :  { %5037 = vst.msk [vmem:[#allocation2 + $0x8] sm:$0x80] %vm5035_vm12, %v5032_v28 }
0x17cb   :  { %v5038_v30 = vld [vmem:[#allocation2] sm:$0xff] }
0x17cc   :  { %v5050_v31 = vsel %vm538_vm4, %v5038_v30, 0 }
0x17cd   :  { %v5124_v36 = vand.u32 4294901760, %v5050_v31 }
0x17cf   :  { %v5125_v47 = vsub.f32 %v5050_v31, %v5124_v36  ;;  %v5039_v50 = vld [vmem:[#allocation2 + $0x8] sm:$0xff] }
0x17d0   :  { %v5053_v51 = vsel %vm538_vm4, %v5039_v50, 0 }
0x17d1   :  { %v5126_v52 = vand.u32 4294901760, %v5125_v47  ;;  %v5134_v53 = vand.u32 4294901760, %v5053_v51 }
0x17d3   :  { %v5127_v33 = vsub.f32 %v5125_v47, %v5126_v52  ;;  %v5135_v37 = vsub.f32 %v5053_v51, %v5134_v53 }
0x17d5   :  { %v5128_v39 = vand.u32 4294901760, %v5127_v33  ;;  %v5136_v40 = vand.u32 4294901760, %v5135_v37 }
0x17d7   :  { %11693 = vmatprep.mubr.f32.mxu1 %v5128_v39  ;;  %v5137_v42 = vsub.f32 %v5135_v37, %v5136_v40 }
0x17d9   :  { %v5138_v43 = vand.u32 4294901760, %v5137_v42 }
0x17db   :  { %11694 = vmatmul.mubr.f32.vlgmr.msra.gmra.mrb[12].mxu1 %v5138_v43 }
0x17dc   :  { %12644 = vmatpush3.bf16.msra.mxu1 %v12641_v22  ;;  %11704 = vmatprep.mubr.f32.mxu1 %v5124_v36 }
0x17dd   :  { %12646 = vmatprep.subr.bf16.mxu1 %v12645_v4 }
0x17e0   :  { %12648 = vmatpush3.bf16.msra.mxu1 %v12645_v4 }
0x17e1   :  { %12650 = vmatprep.subr.bf16.mxu1 %v12649_v23 }
0x17e3   :  { %11705 = vmatmul.mubr.f32.vlgmr.msra.gmra.mrb[12].mxu1 %v5134_v53 }
0x17e4   :  { %12652 = vmatpush3.bf16.msra.mxu1 %v12649_v23  ;;  %11715 = vmatprep.mubr.f32.mxu1 %v5125_v47 }
0x17e5   :  { %12654 = vmatprep.subr.bf16.mxu1 %v12653_v8 }
0x17e8   :  { %12656 = vmatpush3.bf16.msra.mxu1 %v12653_v8 }
0x17e9   :  { %12658 = vmatprep.subr.bf16.mxu1 %v14194_v41 }
0x17eb   :  { %11716 = vmatmul.mubr.f32.vlgmr.msra.gmra.mrb[12].mxu1 %v5135_v37 }
0x17ec   :  { %12660 = vmatpush3.bf16.msra.mxu1 %v14194_v41  ;;  %11726 = vmatprep.mubr.f32.mxu1 %v5126_v52 }
0x17ed   :  { %12662 = vmatprep.subr.bf16.mxu1 %v14196_v38 }
0x17f0   :  { %12664 = vmatpush3.bf16.msra.mxu1 %v14196_v38 }
0x17f1   :  { %12666 = vmatprep.subr.bf16.mxu1 %v12665_v26 }
0x17f3   :  { %11727 = vmatmul.mubr.f32.vlgmr.msra.gmra.mrb[12].mxu1 %v5136_v40 }
0x17f4   :  { %12668 = vmatpush3.bf16.msra.mxu1 %v12665_v26  ;;  %11737 = vmatprep.mubr.f32.mxu1 %v5124_v36 }
0x17f5   :  { %12670 = vmatprep.subr.bf16.mxu1 %v12669_v27 }
0x17f8   :  { %12672 = vmatpush3.bf16.msra.mxu1 %v12669_v27 }
0x17f9   :  { %12674 = vmatprep.subr.bf16.mxu1 %v14194_v41 }
0x17fb   :  { %11738 = vmatmul.mubr.f32.vlgmr.msra.gmra.mrb[12].mxu1 %v5134_v53 }
0x17fc   :  { %12676 = vmatpush3.bf16.msra.mxu1 %v14194_v41  ;;  %11748 = vmatprep.mubr.f32.mxu1 %v5124_v36  ;;  %v6068_v41 = vpop.f32.mrb[10].mxu0 }
0x17fd   :  { %12678 = vmatprep.subr.bf16.mxu1 %v14196_v38  ;;  %v11816_v61 = vpop.f32.mrb[11].mxu0  ;;  %v6073_v48 = vrot.slane %v6068_v41, 1 }
0x1800   :  { %12680 = vmatpush3.bf16.msra.mxu1 %v14196_v38 }
0x1801   :  { %12717 = vmatprep.subr.bf16.mxu1 %v13515_v24 }
0x1803   :  { %11749 = vmatmul.mubr.f32.vlgmr.msra.gmra.mrb[12].mxu1 %v5134_v53 }
0x1804   :  { %12719 = vmatpush3.bf16.msra.mxu1 %v14140_v13  ;;  %11825 = vmatprep.mubr.msk.f32.mxu1 %vm13516_vm2, %v13517_v46 }
0x1805   :  { %12720 = vmatprep.subr.bf16.mxu1 %v13515_v24 }
0x1808   :  { %12722 = vmatpush3.bf16.msra.mxu1 %v14145_v29 }
0x1809   :  { %12723 = vmatprep.subr.bf16.mxu1 %v13515_v24 }
0x18d6   :  { %v11750_v63 = vpop.f32.mrb[12].mxu1 }
0x18d7   :  { %v14263_v38 = vadd.f32 %v11750_v63, %v10545_v45  ;;  %v5573_v49 = vpop.f32.mrb[13].mxu1 }
0x18d8   :  { %v14265_v55 = vadd.f32 %v10545_v45, %v5573_v49 }
0x18d9   :  { %v6077_v56 = vadd.f32 %v14263_v38, %v6073_v48 }
0x18da   :  { %v6076_v44 = vadd.f32 %v14265_v55, %v6068_v41 }
0x18db   :  { %13336 = vtanh.f32 %v6077_v56  ;;  %v10547_v59 = vmul.f32 -1.442695, %v6077_v56 }
0x18dc   :  { %13338 = vtanh.f32 %v6076_v44  ;;  %v10546_v60 = vmul.f32 -1.442695, %v6076_v44 }
0x18dd   :  { %13340 = vpow2.f32 %v10547_v59 }
0x18de   :  { %13342 = vpow2.f32 %v10546_v60 }
0x18e5   :  { %v13337_v57 = vpop.eup %13336 }
0x18e6   :  { %v13339_v58 = vpop.eup %13338  ;;  %6098 = vrot.lane.b32.xlu1 %v13337_v57, %s13518_s0 }
0x18e7   :  { %6096 = vrot.lane.b32.xlu0 %v13339_v58, %s13518_s0  ;;  %v13341_v62 = vpop.eup %13340 }
0x18e8   :  { %v13343_v0 = vpop.eup %13342  ;;  %v6085_v1 = vadd.f32 1.0, %v13341_v62 }
0x18e9   :  { %v6084_v2 = vadd.f32 1.0, %v13343_v0 }
0x18ea   :  { %13344 = vrcp.f32 %v6085_v1 }
0x18eb   :  { %13346 = vrcp.f32 %v6084_v2 }
0x18f4   :  { %v13345_v32 = vpop.eup %13344 }
0x18f5   :  { %v13347_v5 = vpop.eup %13346  ;;  %v6093_v3 = vmul.f32 0.0, %v13345_v32 }
0x18f6   :  { %v6092_v4 = vmul.f32 0.0, %v13347_v5 }
0x1958   :  { %v6099_v22 = vpop.permute.xlu1 %6098 }
0x1959   :  { %v6103_v15 = vmul.f32 %v13345_v32, %v6099_v22  ;;  %v6097_v11 = vpop.permute.xlu0 %6096 }
0x195a   :  { %v6102_v6 = vmul.f32 %v13347_v5, %v6097_v11 }
0x195b   :  { %6108 = vrot.lane.b32.xlu1 %v6103_v15, %s13518_s0 }
0x195c   :  { %6106 = vrot.lane.b32.xlu0 %v6102_v6, %s13518_s0 }
0x19cd   :  { %v6109_v9 = vpop.permute.xlu1 %6108 }
0x19ce   :  { %v14273_v17 = vadd.f32 %v6109_v9, %v6093_v3  ;;  %v6107_v18 = vpop.permute.xlu0 %6106 }
0x19cf   :  { %v14275_v23 = vadd.f32 %v6107_v18, %v6092_v4 }
0x19d0   :  { %13348 = vtanh.f32 %v14273_v17  ;;  %v6642_v59 = vrot.slane %v14273_v17, 7 }
0x19d1   :  { %13350 = vtanh.f32 %v14275_v23  ;;  %v6641_v62 = vrot.slane %v14275_v23, 7 }
0x19da   :  { %v13349_v7 = vpop.eup %13348 }
0x19db   :  { %v13351_v8 = vpop.eup %13350  ;;  %6120 = vrot.lane.b32.xlu1 %v13349_v7, %s13518_s0 }
0x19dc   :  { %6118 = vrot.lane.b32.xlu0 %v13351_v8, %s13518_s0 }
0x1a4d   :  { %v6121_v19 = vpop.permute.xlu1 %6120 }
0x1a4e   :  { %v6125_v12 = vmul.f32 %v13345_v32, %v6121_v19  ;;  %v6119_v21 = vpop.permute.xlu0 %6118 }
0x1a4f   :  { %v6124_v25 = vmul.f32 %v13347_v5, %v6119_v21 }
0x1a50   :  { %v6128_v26 = vrot.slane %v6125_v12, 7 }
0x1a52   :  { %v6129_v27 = vsel %vm1093_vm3, %v6128_v26, %v6124_v25 }
0x1a53   :  { %6130 = vrot.lane.b32.xlu1 %v6129_v27, %s13519_s1 }
0x1ac5   :  { %v6131_v16 = vpop.permute.xlu1 %6130 }
0x1ac6   :  { %v6132_v28 = vsel %vm538_vm4, %v6131_v16, 0 }
0x1ac7   :  { %v6203_v30 = vand.u32 4294901760, %v6132_v28 }
0x1ac9   :  { %v6204_v31 = vsub.f32 %v6132_v28, %v6203_v30 }
0x1acb   :  { %v6205_v36 = vand.u32 4294901760, %v6204_v31 }
0x1acd   :  { %v6206_v47 = vsub.f32 %v6204_v31, %v6205_v36 }
0x1acf   :  { %v6207_v50 = vand.u32 4294901760, %v6206_v47 }
0x1ad1   :  { %11826 = vmatmul.mubr.f32.vlgmr.msra.gmra.mrb[14].mxu1 %v6207_v50 }
0x1ad2   :  { %12725 = vmatpush3.bf16.msra.mxu1 %v14154_v34  ;;  %11836 = vmatprep.mubr.msk.f32.mxu1 %vm13516_vm2, %v13517_v46 }
0x1ad3   :  { %12726 = vmatprep.subr.bf16.mxu1 %v13515_v24 }
0x1ad6   :  { %12728 = vmatpush3.bf16.msra.mxu1 %v14160_v14 }
0x1ad7   :  { %12729 = vmatprep.subr.bf16.mxu1 %v13515_v24 }
0x1ad9   :  { %11837 = vmatmul.mubr.f32.vlgmr.msra.gmra.mrb[14].mxu1 %v6203_v30 }
0x1ada   :  { %12731 = vmatpush3.bf16.msra.mxu1 %v14166_v10  ;;  %11847 = vmatprep.mubr.msk.f32.mxu1 %vm13516_vm2, %v13517_v46 }
0x1adb   :  { %12732 = vmatprep.subr.bf16.mxu1 %v13515_v24 }
0x1ade   :  { %12734 = vmatpush3.bf16.msra.mxu1 %v14171_v20 }
0x1adf   :  { %12735 = vmatprep.subr.bf16.mxu1 %v13515_v24 }
0x1ae1   :  { %11848 = vmatmul.mubr.f32.vlgmr.msra.gmra.mrb[14].mxu1 %v6204_v31 }
0x1ae2   :  { %12737 = vmatpush3.bf16.msra.mxu1 %v14140_v13  ;;  %11858 = vmatprep.mubr.msk.f32.mxu1 %vm13516_vm2, %v13517_v46 }
0x1ae3   :  { %12738 = vmatprep.subr.bf16.mxu1 %v13515_v24 }
0x1ae6   :  { %12740 = vmatpush3.bf16.msra.mxu1 %v14145_v29 }
0x1ae7   :  { %12741 = vmatprep.subr.bf16.mxu1 %v13515_v24 }
0x1ae9   :  { %11859 = vmatmul.mubr.f32.vlgmr.msra.gmra.mrb[14].mxu1 %v6205_v36 }
0x1aea   :  { %12743 = vmatpush3.bf16.msra.mxu1 %v14188_v35  ;;  %11869 = vmatprep.mubr.msk.f32.mxu1 %vm13516_vm2, %v13517_v46 }
0x1aeb   :  { %12744 = vmatprep.subr.bf16.mxu1 %v13515_v24 }
0x1aee   :  { %12746 = vmatpush3.bf16.msra.mxu1 %v14191_v54 }
0x1aef   :  { %12747 = vmatprep.subr.bf16.mxu1 %v13515_v24 }
0x1af1   :  { %11870 = vmatmul.mubr.f32.vlgmr.msra.gmra.mrb[14].mxu1 %v6203_v30 }
0x1af2   :  { %12749 = vmatpush3.bf16.msra.mxu1 %v14140_v13  ;;  %11880 = vmatprep.mubr.msk.f32.mxu1 %vm13516_vm2, %v13517_v46 }
0x1af3   :  { %12750 = vmatprep.subr.bf16.mxu1 %v13515_v24 }
0x1af6   :  { %12752 = vmatpush3.bf16.msra.mxu1 %v14145_v29 }
0x1af7   :  { %12789 = vmatprep.subr.bf16.mxu1 %v13515_v24 }
0x1af9   :  { %11881 = vmatmul.mubr.f32.vlgmr.msra.gmra.mrb[14].mxu1 %v6203_v30 }
0x1afa   :  { %12791 = vmatpush3.bf16.msra.mxu1 %v14140_v13  ;;  %11957 = vmatprep.mubr.msk.f32.mxu1 %vm13516_vm2, %v13517_v46 }
0x1afb   :  { %12792 = vmatprep.subr.bf16.mxu1 %v13515_v24 }
0x1afe   :  { %12794 = vmatpush3.bf16.msra.mxu1 %v14145_v29 }
0x1aff   :  { %12795 = vmatprep.subr.bf16.mxu1 %v13515_v24 }
0x1bcc   :  { %v6615_v51 = vpop.f32.mrb[14].mxu1 }
0x1bcd   :  { %v6620_v52 = vrot.slane %v6615_v51, 7  ;;  %v6624_v53 = vadd.f32 %v14263_v38, %v6615_v51  ;;  %v11882_v33 = vpop.f32.mrb[15].mxu1 }
0x1bcf   :  { %v6623_v37 = vadd.f32 %v14265_v55, %v6620_v52  ;;  %13352 = vtanh.f32 %v6624_v53  ;;  %v10549_v42 = vmul.f32 -1.442695, %v6624_v53 }
0x1bd1   :  { %13354 = vtanh.f32 %v6623_v37  ;;  %v10548_v43 = vmul.f32 -1.442695, %v6623_v37 }
0x1bd2   :  { %13356 = vpow2.f32 %v10549_v42 }
0x1bd3   :  { %13358 = vpow2.f32 %v10548_v43 }
0x1bd9   :  { %v13353_v39 = vpop.eup %13352 }
0x1bda   :  { %6651 = vrot.lane.b32.xlu1 %v13353_v39, %s13518_s0 }
0x1bdb   :  { %v13355_v40 = vpop.eup %13354 }
0x1bdc   :  { %6649 = vrot.lane.b32.xlu0 %v13355_v40, %s13518_s0  ;;  %v13357_v41 = vpop.eup %13356 }
0x1bdd   :  { %v13359_v61 = vpop.eup %13358  ;;  %v6632_v45 = vadd.f32 1.0, %v13357_v41 }
0x1bde   :  { %v6631_v63 = vadd.f32 1.0, %v13359_v61 }
0x1bdf   :  { %13360 = vrcp.f32 %v6632_v45 }
0x1be0   :  { %13362 = vrcp.f32 %v6631_v63 }
0x1be9   :  { %v13361_v48 = vpop.eup %13360 }
0x1bea   :  { %v13363_v44 = vpop.eup %13362  ;;  %v6646_v60 = vmul.f32 %v13361_v48, %v6642_v59 }
0x1beb   :  { %v6645_v2 = vmul.f32 %v13363_v44, %v6641_v62 }
0x1c4c   :  { %v6652_v49 = vpop.permute.xlu1 %6651 }
0x1c4d   :  { %v6656_v56 = vmul.f32 %v13361_v48, %v6652_v49 }
0x1c4e   :  { %v6650_v57 = vpop.permute.xlu0 %6649 }
0x1c4f   :  { %6661 = vrot.lane.b32.xlu1 %v6656_v56, %s13518_s0  ;;  %v6655_v58 = vmul.f32 %v13363_v44, %v6650_v57 }
0x1c51   :  { %6659 = vrot.lane.b32.xlu0 %v6655_v58, %s13518_s0 }
0x1cc1   :  { %v6662_v0 = vpop.permute.xlu1 %6661 }
0x1cc2   :  { %v14328_v1 = vadd.f32 %v6662_v0, %v6646_v60 }
0x1cc3   :  { %v6660_v32 = vpop.permute.xlu0 %6659 }
0x1cc4   :  { %13364 = vtanh.f32 %v14328_v1  ;;  %v14331_v22 = vadd.f32 %v6660_v32, %v6645_v2  ;;  %v7196_v45 = vrot.slane %v14328_v1, 7 }
0x1cc6   :  { %13366 = vtanh.f32 %v14331_v22  ;;  %v7195_v61 = vrot.slane %v14331_v22, 7 }
0x1cce   :  { %v13365_v5 = vpop.eup %13364 }
0x1ccf   :  { %6673 = vrot.lane.b32.xlu1 %v13365_v5, %s13518_s0 }
0x1cd0   :  { %v13367_v15 = vpop.eup %13366 }
0x1cd1   :  { %6671 = vrot.lane.b32.xlu0 %v13367_v15, %s13518_s0 }
0x1d41   :  { %v6674_v11 = vpop.permute.xlu1 %6673 }
0x1d42   :  { %v6678_v9 = vmul.f32 %v13361_v48, %v6674_v11 }
0x1d43   :  { %v6672_v6 = vpop.permute.xlu0 %6671 }
0x1d44   :  { %v6677_v3 = vmul.f32 %v13363_v44, %v6672_v6 }
0x1d46   :  { %v6681_v4 = vrot.slane %v6677_v3, 1 }
0x1d48   :  { %v6682_v17 = vsel %vm1093_vm3, %v6678_v9, %v6681_v4 }
0x1d49   :  { %6683 = vrot.lane.b32.xlu0 %v6682_v17, %s13519_s1 }
0x1dbb   :  { %v6684_v18 = vpop.permute.xlu0 %6683 }
0x1dbc   :  { %v6685_v23 = vsel %vm538_vm4, %v6684_v18, 0 }
0x1dbd   :  { %v6756_v7 = vand.u32 4294901760, %v6685_v23 }
0x1dbf   :  { %v6757_v8 = vsub.f32 %v6685_v23, %v6756_v7 }
0x1dc1   :  { %v6758_v19 = vand.u32 4294901760, %v6757_v8 }
0x1dc3   :  { %v6759_v12 = vsub.f32 %v6757_v8, %v6758_v19 }
0x1dc5   :  { %v6760_v21 = vand.u32 4294901760, %v6759_v12 }
0x1dc7   :  { %11892 = vmatmul.mubr.f32.vlgmr.msra.gmra.mrb[12].mxu0 %v6760_v21 }
0x1dc8   :  { %12761 = vmatpush3.bf16.msra.mxu0 %v14154_v34  ;;  %11902 = vmatprep.mubr.msk.f32.mxu0 %vm13516_vm2, %v13517_v46 }
0x1dc9   :  { %12762 = vmatprep.subr.bf16.mxu0 %v13515_v24 }
0x1dcc   :  { %12764 = vmatpush3.bf16.msra.mxu0 %v14160_v14 }
0x1dcd   :  { %12765 = vmatprep.subr.bf16.mxu0 %v13515_v24 }
0x1dcf   :  { %11903 = vmatmul.mubr.f32.vlgmr.msra.gmra.mrb[12].mxu0 %v6756_v7 }
0x1dd0   :  { %12767 = vmatpush3.bf16.msra.mxu0 %v14166_v10  ;;  %11913 = vmatprep.mubr.msk.f32.mxu0 %vm13516_vm2, %v13517_v46 }
0x1dd1   :  { %12768 = vmatprep.subr.bf16.mxu0 %v13515_v24 }
0x1dd4   :  { %12770 = vmatpush3.bf16.msra.mxu0 %v14171_v20 }
0x1dd5   :  { %12771 = vmatprep.subr.bf16.mxu0 %v13515_v24 }
0x1dd7   :  { %11914 = vmatmul.mubr.f32.vlgmr.msra.gmra.mrb[12].mxu0 %v6757_v8 }
0x1dd8   :  { %12773 = vmatpush3.bf16.msra.mxu0 %v14140_v13  ;;  %11924 = vmatprep.mubr.msk.f32.mxu0 %vm13516_vm2, %v13517_v46 }
0x1dd9   :  { %12774 = vmatprep.subr.bf16.mxu0 %v13515_v24 }
0x1ddc   :  { %12776 = vmatpush3.bf16.msra.mxu0 %v14145_v29 }
0x1ddd   :  { %12777 = vmatprep.subr.bf16.mxu0 %v13515_v24 }
0x1ddf   :  { %11925 = vmatmul.mubr.f32.vlgmr.msra.gmra.mrb[12].mxu0 %v6758_v19 }
0x1de0   :  { %12779 = vmatpush3.bf16.msra.mxu0 %v14188_v35  ;;  %11935 = vmatprep.mubr.msk.f32.mxu0 %vm13516_vm2, %v13517_v46 }
0x1de1   :  { %12780 = vmatprep.subr.bf16.mxu0 %v13515_v24 }
0x1de4   :  { %12782 = vmatpush3.bf16.msra.mxu0 %v14191_v54 }
0x1de5   :  { %12783 = vmatprep.subr.bf16.mxu0 %v13515_v24 }
0x1de7   :  { %11936 = vmatmul.mubr.f32.vlgmr.msra.gmra.mrb[12].mxu0 %v6756_v7 }
0x1de8   :  { %12785 = vmatpush3.bf16.msra.mxu0 %v14140_v13  ;;  %11946 = vmatprep.mubr.msk.f32.mxu0 %vm13516_vm2, %v13517_v46 }
0x1de9   :  { %12786 = vmatprep.subr.bf16.mxu0 %v13515_v24 }
0x1dec   :  { %12788 = vmatpush3.bf16.msra.mxu0 %v14145_v29 }
0x1ded   :  { %12825 = vmatprep.subr.bf16.mxu0 %v13515_v24 }
0x1def   :  { %11947 = vmatmul.mubr.f32.vlgmr.msra.gmra.mrb[12].mxu0 %v6756_v7 }
0x1df0   :  { %12827 = vmatpush3.bf16.msra.mxu0 %v14140_v13  ;;  %12023 = vmatprep.mubr.msk.f32.mxu0 %vm13516_vm2, %v13517_v46 }
0x1df1   :  { %12828 = vmatprep.subr.bf16.mxu0 %v13515_v24 }
0x1df4   :  { %12830 = vmatpush3.bf16.msra.mxu0 %v14145_v29 }
0x1df5   :  { %12831 = vmatprep.subr.bf16.mxu0 %v13515_v24 }
0x1ec2   :  { %v7168_v25 = vpop.f32.mrb[12].mxu0 }
0x1ec3   :  { %v7173_v26 = vrot.slane %v7168_v25, 6  ;;  %v7174_v27 = vrot.slane %v7168_v25, 7  ;;  %v11948_v16 = vpop.f32.mrb[13].mxu0 }
0x1ec5   :  { %v7177_v28 = vadd.f32 %v14265_v55, %v7173_v26  ;;  %v7178_v30 = vadd.f32 %v14263_v38, %v7174_v27 }
0x1ec7   :  { %13368 = vtanh.f32 %v7177_v28  ;;  %v10550_v47 = vmul.f32 -1.442695, %v7177_v28  ;;  %v10551_v50 = vmul.f32 -1.442695, %v7178_v30 }
0x1ec8   :  { %13370 = vtanh.f32 %v7178_v30 }
0x1ec9   :  { %13372 = vpow2.f32 %v10550_v47 }
0x1eca   :  { %13374 = vpow2.f32 %v10551_v50 }
0x1ed1   :  { %v13369_v31 = vpop.eup %13368 }
0x1ed2   :  { %v13371_v36 = vpop.eup %13370  ;;  %7203 = vrot.lane.b32.xlu1 %v13369_v31, %s13518_s0 }
0x1ed3   :  { %7205 = vrot.lane.b32.xlu0 %v13371_v36, %s13518_s0  ;;  %v13373_v51 = vpop.eup %13372 }
0x1ed4   :  { %v13375_v52 = vpop.eup %13374  ;;  %v7185_v53 = vadd.f32 1.0, %v13373_v51 }
0x1ed5   :  { %v7186_v33 = vadd.f32 1.0, %v13375_v52 }
0x1ed6   :  { %13376 = vrcp.f32 %v7185_v53 }
0x1ed7   :  { %13378 = vrcp.f32 %v7186_v33 }
0x1ee0   :  { %v13377_v37 = vpop.eup %13376 }
0x1ee1   :  { %v13379_v40 = vpop.eup %13378  ;;  %v7199_v63 = vmul.f32 %v13377_v37, %v7195_v61 }
0x1ee2   :  { %v7200_v48 = vmul.f32 %v13379_v40, %v7196_v45 }
0x1f44   :  { %v7204_v39 = vpop.permute.xlu1 %7203 }
0x1f45   :  { %v7206_v42 = vpop.permute.xlu0 %7205  ;;  %v7209_v43 = vmul.f32 %v13377_v37, %v7204_v39 }
0x1f46   :  { %v7210_v41 = vmul.f32 %v13379_v40, %v7206_v42 }
0x1f47   :  { %7213 = vrot.lane.b32.xlu1 %v7209_v43, %s13518_s0 }
0x1f48   :  { %7215 = vrot.lane.b32.xlu0 %v7210_v41, %s13518_s0 }
0x1fb9   :  { %v7214_v49 = vpop.permute.xlu1 %7213 }
0x1fba   :  { %v7216_v56 = vpop.permute.xlu0 %7215  ;;  %v14383_v44 = vadd.f32 %v7214_v49, %v7199_v63 }
0x1fbb   :  { %v14385_v57 = vadd.f32 %v7216_v56, %v7200_v48 }
0x1fbc   :  { %13380 = vtanh.f32 %v14383_v44  ;;  %v7750_v53 = vrot.slane %v14383_v44, 7 }
0x1fbd   :  { %13382 = vtanh.f32 %v14385_v57  ;;  %v7751_v33 = vrot.slane %v14385_v57, 7 }
0x1fc6   :  { %v13381_v58 = vpop.eup %13380 }
0x1fc7   :  { %v13383_v59 = vpop.eup %13382  ;;  %7225 = vrot.lane.b32.xlu1 %v13381_v58, %s13518_s0 }
0x1fc8   :  { %7227 = vrot.lane.b32.xlu0 %v13383_v59, %s13518_s0 }
0x2039   :  { %v7226_v60 = vpop.permute.xlu1 %7225 }
0x203a   :  { %v7228_v62 = vpop.permute.xlu0 %7227  ;;  %v7231_v0 = vmul.f32 %v13377_v37, %v7226_v60 }
0x203b   :  { %v7232_v1 = vmul.f32 %v13379_v40, %v7228_v62 }
0x203c   :  { %v7235_v2 = vrot.slane %v7231_v0, 2 }
0x203d   :  { %v7236_v32 = vrot.slane %v7232_v1, 1 }
0x203f   :  { %v7237_v22 = vsel %vm1093_vm3, %v7236_v32, %v7235_v2 }
0x2040   :  { %7238 = vrot.lane.b32.xlu1 %v7237_v22, %s13519_s1 }
0x20b2   :  { %v7239_v5 = vpop.permute.xlu1 %7238 }
0x20b3   :  { %v7240_v15 = vsel %vm538_vm4, %v7239_v5, 0 }
0x20b4   :  { %v7311_v11 = vand.u32 4294901760, %v7240_v15 }
0x20b6   :  { %v7312_v6 = vsub.f32 %v7240_v15, %v7311_v11 }
0x20b8   :  { %v7313_v3 = vand.u32 4294901760, %v7312_v6 }
0x20ba   :  { %v7314_v9 = vsub.f32 %v7312_v6, %v7313_v3 }
0x20bc   :  { %v7315_v4 = vand.u32 4294901760, %v7314_v9 }
0x20be   :  { %11958 = vmatmul.mubr.f32.vlgmr.msra.gmra.mrb[16].mxu1 %v7315_v4 }
0x20bf   :  { %12797 = vmatpush3.bf16.msra.mxu1 %v14154_v34  ;;  %11968 = vmatprep.mubr.msk.f32.mxu1 %vm13516_vm2, %v13517_v46 }
0x20c0   :  { %12798 = vmatprep.subr.bf16.mxu1 %v13515_v24 }
0x20c3   :  { %12800 = vmatpush3.bf16.msra.mxu1 %v14160_v14 }
0x20c4   :  { %12801 = vmatprep.subr.bf16.mxu1 %v13515_v24 }
0x20c6   :  { %11969 = vmatmul.mubr.f32.vlgmr.msra.gmra.mrb[16].mxu1 %v7311_v11 }
0x20c7   :  { %12803 = vmatpush3.bf16.msra.mxu1 %v14166_v10  ;;  %11979 = vmatprep.mubr.msk.f32.mxu1 %vm13516_vm2, %v13517_v46 }
0x20c8   :  { %12804 = vmatprep.subr.bf16.mxu1 %v13515_v24 }
0x20cb   :  { %12806 = vmatpush3.bf16.msra.mxu1 %v14171_v20 }
0x20cc   :  { %12807 = vmatprep.subr.bf16.mxu1 %v13515_v24 }
0x20ce   :  { %11980 = vmatmul.mubr.f32.vlgmr.msra.gmra.mrb[16].mxu1 %v7312_v6 }
0x20cf   :  { %12809 = vmatpush3.bf16.msra.mxu1 %v14140_v13  ;;  %11990 = vmatprep.mubr.msk.f32.mxu1 %vm13516_vm2, %v13517_v46 }
0x20d0   :  { %12810 = vmatprep.subr.bf16.mxu1 %v13515_v24 }
0x20d3   :  { %12812 = vmatpush3.bf16.msra.mxu1 %v14145_v29 }
0x20d4   :  { %12813 = vmatprep.subr.bf16.mxu1 %v13515_v24 }
0x20d6   :  { %11991 = vmatmul.mubr.f32.vlgmr.msra.gmra.mrb[16].mxu1 %v7313_v3 }
0x20d7   :  { %12815 = vmatpush3.bf16.msra.mxu1 %v14188_v35  ;;  %12001 = vmatprep.mubr.msk.f32.mxu1 %vm13516_vm2, %v13517_v46 }
0x20d8   :  { %12816 = vmatprep.subr.bf16.mxu1 %v13515_v24 }
0x20db   :  { %12818 = vmatpush3.bf16.msra.mxu1 %v14191_v54 }
0x20dc   :  { %12819 = vmatprep.subr.bf16.mxu1 %v13515_v24 }
0x20de   :  { %12002 = vmatmul.mubr.f32.vlgmr.msra.gmra.mrb[16].mxu1 %v7311_v11 }
0x20df   :  { %12821 = vmatpush3.bf16.msra.mxu1 %v14140_v13  ;;  %12012 = vmatprep.mubr.msk.f32.mxu1 %vm13516_vm2, %v13517_v46 }
0x20e0   :  { %12822 = vmatprep.subr.bf16.mxu1 %v13515_v24 }
0x20e3   :  { %12824 = vmatpush3.bf16.msra.mxu1 %v14145_v29 }
0x20e4   :  { %12861 = vmatprep.subr.bf16.mxu1 %v13515_v24 }
0x20e6   :  { %12013 = vmatmul.mubr.f32.vlgmr.msra.gmra.mrb[16].mxu1 %v7311_v11 }
0x20e7   :  { %12863 = vmatpush3.bf16.msra.mxu1 %v14140_v13  ;;  %12089 = vmatprep.mubr.msk.f32.mxu1 %vm13516_vm2, %v13517_v46 }
0x20e8   :  { %12864 = vmatprep.subr.bf16.mxu1 %v13515_v24 }
0x20eb   :  { %12866 = vmatpush3.bf16.msra.mxu1 %v14145_v29 }
0x20ec   :  { %12867 = vmatprep.subr.bf16.mxu1 %v13515_v24 }
0x21b9   :  { %v7723_v17 = vpop.f32.mrb[16].mxu1 }
0x21ba   :  { %v7728_v18 = vrot.slane %v7723_v17, 5  ;;  %v7729_v23 = vrot.slane %v7723_v17, 6  ;;  %v12014_v7 = vpop.f32.mrb[17].mxu1 }
0x21bc   :  { %v7732_v8 = vadd.f32 %v14265_v55, %v7728_v18  ;;  %v7733_v19 = vadd.f32 %v14263_v38, %v7729_v23 }
0x21be   :  { %13384 = vtanh.f32 %v7732_v8  ;;  %v10552_v25 = vmul.f32 -1.442695, %v7732_v8  ;;  %v10553_v26 = vmul.f32 -1.442695, %v7733_v19 }
0x21bf   :  { %13386 = vtanh.f32 %v7733_v19 }
0x21c0   :  { %13388 = vpow2.f32 %v10552_v25 }
0x21c1   :  { %13390 = vpow2.f32 %v10553_v26 }
0x21c8   :  { %v13385_v12 = vpop.eup %13384 }
0x21c9   :  { %v13387_v21 = vpop.eup %13386  ;;  %7758 = vrot.lane.b32.xlu0 %v13385_v12, %s13518_s0 }
0x21ca   :  { %7760 = vrot.lane.b32.xlu1 %v13387_v21, %s13518_s0  ;;  %v13389_v27 = vpop.eup %13388 }
0x21cb   :  { %v13391_v16 = vpop.eup %13390  ;;  %v7740_v28 = vadd.f32 1.0, %v13389_v27 }
0x21cc   :  { %v7741_v30 = vadd.f32 1.0, %v13391_v16 }
0x21cd   :  { %13392 = vrcp.f32 %v7740_v28 }
0x21ce   :  { %13394 = vrcp.f32 %v7741_v30 }
0x21d7   :  { %v13393_v31 = vpop.eup %13392 }
0x21d8   :  { %v13395_v47 = vpop.eup %13394  ;;  %v7754_v37 = vmul.f32 %v13393_v31, %v7750_v53 }
0x21d9   :  { %v7755_v39 = vmul.f32 %v13395_v47, %v7751_v33 }
0x223b   :  { %v7759_v36 = vpop.permute.xlu0 %7758 }
0x223c   :  { %v7761_v50 = vpop.permute.xlu1 %7760  ;;  %v7764_v51 = vmul.f32 %v13393_v31, %v7759_v36 }
0x223d   :  { %v7765_v52 = vmul.f32 %v13395_v47, %v7761_v50 }
0x223e   :  { %7768 = vrot.lane.b32.xlu0 %v7764_v51, %s13518_s0 }
0x223f   :  { %7770 = vrot.lane.b32.xlu1 %v7765_v52, %s13518_s0 }
0x22b0   :  { %v7769_v40 = vpop.permute.xlu0 %7768 }
0x22b1   :  { %v7771_v42 = vpop.permute.xlu1 %7770  ;;  %v14438_v43 = vadd.f32 %v7769_v40, %v7754_v37 }
0x22b2   :  { %v14440_v41 = vadd.f32 %v7771_v42, %v7755_v39 }
0x22b3   :  { %13396 = vtanh.f32 %v14438_v43  ;;  %v8305_v28 = vrot.slane %v14438_v43, 7 }
0x22b4   :  { %13398 = vtanh.f32 %v14440_v41  ;;  %v8306_v30 = vrot.slane %v14440_v41, 7 }
0x22bd   :  { %v13397_v61 = vpop.eup %13396 }
0x22be   :  { %v13399_v45 = vpop.eup %13398  ;;  %7780 = vrot.lane.b32.xlu0 %v13397_v61, %s13518_s0 }
0x22bf   :  { %7782 = vrot.lane.b32.xlu1 %v13399_v45, %s13518_s0 }
0x2330   :  { %v7781_v63 = vpop.permute.xlu0 %7780 }
0x2331   :  { %v7783_v48 = vpop.permute.xlu1 %7782  ;;  %v7786_v49 = vmul.f32 %v13393_v31, %v7781_v63 }
0x2332   :  { %v7787_v56 = vmul.f32 %v13395_v47, %v7783_v48 }
0x2333   :  { %v7790_v44 = vrot.slane %v7786_v49, 3 }
0x2334   :  { %v7791_v57 = vrot.slane %v7787_v56, 2 }
0x2336   :  { %v7792_v58 = vsel %vm1093_vm3, %v7791_v57, %v7790_v44 }
0x2337   :  { %7793 = vrot.lane.b32.xlu0 %v7792_v58, %s13519_s1 }
0x23a9   :  { %v7794_v59 = vpop.permute.xlu0 %7793 }
0x23aa   :  { %v7795_v60 = vsel %vm538_vm4, %v7794_v59, 0 }
0x23ab   :  { %v7866_v62 = vand.u32 4294901760, %v7795_v60 }
0x23ad   :  { %v7867_v0 = vsub.f32 %v7795_v60, %v7866_v62 }
0x23af   :  { %v7868_v1 = vand.u32 4294901760, %v7867_v0 }
0x23b1   :  { %v7869_v2 = vsub.f32 %v7867_v0, %v7868_v1 }
0x23b3   :  { %v7870_v32 = vand.u32 4294901760, %v7869_v2 }
0x23b5   :  { %12024 = vmatmul.mubr.f32.vlgmr.msra.gmra.mrb[14].mxu0 %v7870_v32 }
0x23b6   :  { %12833 = vmatpush3.bf16.msra.mxu0 %v14154_v34  ;;  %12034 = vmatprep.mubr.msk.f32.mxu0 %vm13516_vm2, %v13517_v46 }
0x23b7   :  { %12834 = vmatprep.subr.bf16.mxu0 %v13515_v24 }
0x23ba   :  { %12836 = vmatpush3.bf16.msra.mxu0 %v14160_v14 }
0x23bb   :  { %12837 = vmatprep.subr.bf16.mxu0 %v13515_v24 }
0x23bd   :  { %12035 = vmatmul.mubr.f32.vlgmr.msra.gmra.mrb[14].mxu0 %v7866_v62 }
0x23be   :  { %12839 = vmatpush3.bf16.msra.mxu0 %v14166_v10  ;;  %12045 = vmatprep.mubr.msk.f32.mxu0 %vm13516_vm2, %v13517_v46 }
0x23bf   :  { %12840 = vmatprep.subr.bf16.mxu0 %v13515_v24 }
0x23c2   :  { %12842 = vmatpush3.bf16.msra.mxu0 %v14171_v20 }
0x23c3   :  { %12843 = vmatprep.subr.bf16.mxu0 %v13515_v24 }
0x23c5   :  { %12046 = vmatmul.mubr.f32.vlgmr.msra.gmra.mrb[14].mxu0 %v7867_v0 }
0x23c6   :  { %12845 = vmatpush3.bf16.msra.mxu0 %v14140_v13  ;;  %12056 = vmatprep.mubr.msk.f32.mxu0 %vm13516_vm2, %v13517_v46 }
0x23c7   :  { %12846 = vmatprep.subr.bf16.mxu0 %v13515_v24 }
0x23ca   :  { %12848 = vmatpush3.bf16.msra.mxu0 %v14145_v29 }
0x23cb   :  { %12849 = vmatprep.subr.bf16.mxu0 %v13515_v24 }
0x23cd   :  { %12057 = vmatmul.mubr.f32.vlgmr.msra.gmra.mrb[14].mxu0 %v7868_v1 }
0x23ce   :  { %12851 = vmatpush3.bf16.msra.mxu0 %v14188_v35  ;;  %12067 = vmatprep.mubr.msk.f32.mxu0 %vm13516_vm2, %v13517_v46 }
0x23cf   :  { %12852 = vmatprep.subr.bf16.mxu0 %v13515_v24 }
0x23d2   :  { %12854 = vmatpush3.bf16.msra.mxu0 %v14191_v54 }
0x23d3   :  { %12855 = vmatprep.subr.bf16.mxu0 %v13515_v24 }
0x23d5   :  { %12068 = vmatmul.mubr.f32.vlgmr.msra.gmra.mrb[14].mxu0 %v7866_v62 }
0x23d6   :  { %12857 = vmatpush3.bf16.msra.mxu0 %v14140_v13  ;;  %12078 = vmatprep.mubr.msk.f32.mxu0 %vm13516_vm2, %v13517_v46 }
0x23d7   :  { %12858 = vmatprep.subr.bf16.mxu0 %v13515_v24 }
0x23da   :  { %12860 = vmatpush3.bf16.msra.mxu0 %v14145_v29 }
0x23db   :  { %12897 = vmatprep.subr.bf16.mxu0 %v13515_v24 }
0x23dd   :  { %12079 = vmatmul.mubr.f32.vlgmr.msra.gmra.mrb[14].mxu0 %v7866_v62 }
0x23de   :  { %12899 = vmatpush3.bf16.msra.mxu0 %v14140_v13  ;;  %12155 = vmatprep.mubr.msk.f32.mxu0 %vm13516_vm2, %v13517_v46 }
0x23df   :  { %12900 = vmatprep.subr.bf16.mxu0 %v13515_v24 }
0x23e2   :  { %12902 = vmatpush3.bf16.msra.mxu0 %v14145_v29 }
0x23e3   :  { %12903 = vmatprep.subr.bf16.mxu0 %v13515_v24 }
0x24b0   :  { %v8278_v22 = vpop.f32.mrb[14].mxu0 }
0x24b1   :  { %v8283_v5 = vrot.slane %v8278_v22, 4  ;;  %v8284_v15 = vrot.slane %v8278_v22, 5  ;;  %v12080_v11 = vpop.f32.mrb[15].mxu0 }
0x24b3   :  { %v8287_v6 = vadd.f32 %v14265_v55, %v8283_v5  ;;  %v8288_v3 = vadd.f32 %v14263_v38, %v8284_v15 }
0x24b5   :  { %13400 = vtanh.f32 %v8287_v6  ;;  %v10554_v17 = vmul.f32 -1.442695, %v8287_v6  ;;  %v10555_v18 = vmul.f32 -1.442695, %v8288_v3 }
0x24b6   :  { %13402 = vtanh.f32 %v8288_v3 }
0x24b7   :  { %13404 = vpow2.f32 %v10554_v17 }
0x24b8   :  { %13406 = vpow2.f32 %v10555_v18 }
0x24bf   :  { %v13401_v9 = vpop.eup %13400 }
0x24c0   :  { %v13403_v4 = vpop.eup %13402  ;;  %8313 = vrot.lane.b32.xlu1 %v13401_v9, %s13518_s0 }
0x24c1   :  { %8315 = vrot.lane.b32.xlu0 %v13403_v4, %s13518_s0  ;;  %v13405_v23 = vpop.eup %13404 }
0x24c2   :  { %v13407_v7 = vpop.eup %13406  ;;  %v8295_v8 = vadd.f32 1.0, %v13405_v23 }
0x24c3   :  { %v8296_v19 = vadd.f32 1.0, %v13407_v7 }
0x24c4   :  { %13408 = vrcp.f32 %v8295_v8 }
0x24c5   :  { %13410 = vrcp.f32 %v8296_v19 }
0x24ce   :  { %v13409_v12 = vpop.eup %13408 }
0x24cf   :  { %v13411_v25 = vpop.eup %13410  ;;  %v8309_v31 = vmul.f32 %v13409_v12, %v8305_v28 }
0x24d0   :  { %v8310_v36 = vmul.f32 %v13411_v25, %v8306_v30 }
0x2532   :  { %v8314_v21 = vpop.permute.xlu1 %8313 }
0x2533   :  { %v8316_v26 = vpop.permute.xlu0 %8315  ;;  %v8319_v27 = vmul.f32 %v13409_v12, %v8314_v21 }
0x2534   :  { %v8320_v16 = vmul.f32 %v13411_v25, %v8316_v26 }
0x2535   :  { %8323 = vrot.lane.b32.xlu1 %v8319_v27, %s13518_s0 }
0x2536   :  { %8325 = vrot.lane.b32.xlu0 %v8320_v16, %s13518_s0 }
0x25a7   :  { %v8324_v47 = vpop.permute.xlu1 %8323 }
0x25a8   :  { %v8326_v50 = vpop.permute.xlu0 %8325  ;;  %v14493_v51 = vadd.f32 %v8324_v47, %v8309_v31 }
0x25a9   :  { %v14495_v52 = vadd.f32 %v8326_v50, %v8310_v36 }
0x25aa   :  { %13412 = vtanh.f32 %v14493_v51  ;;  %v8860_v8 = vrot.slane %v14493_v51, 7 }
0x25ab   :  { %13414 = vtanh.f32 %v14495_v52  ;;  %v8861_v19 = vrot.slane %v14495_v52, 7 }
0x25b4   :  { %v13413_v53 = vpop.eup %13412 }
0x25b5   :  { %v13415_v33 = vpop.eup %13414  ;;  %8335 = vrot.lane.b32.xlu1 %v13413_v53, %s13518_s0 }
0x25b6   :  { %8337 = vrot.lane.b32.xlu0 %v13415_v33, %s13518_s0 }
0x2627   :  { %v8336_v37 = vpop.permute.xlu1 %8335 }
0x2628   :  { %v8338_v39 = vpop.permute.xlu0 %8337  ;;  %v8341_v40 = vmul.f32 %v13409_v12, %v8336_v37 }
0x2629   :  { %v8342_v42 = vmul.f32 %v13411_v25, %v8338_v39 }
0x262a   :  { %v8345_v43 = vrot.slane %v8341_v40, 4 }
0x262b   :  { %v8346_v41 = vrot.slane %v8342_v42, 3 }
0x262d   :  { %v8347_v61 = vsel %vm1093_vm3, %v8346_v41, %v8345_v43 }
0x262e   :  { %8348 = vrot.lane.b32.xlu1 %v8347_v61, %s13519_s1 }
0x26a0   :  { %v8349_v45 = vpop.permute.xlu1 %8348 }
0x26a1   :  { %v8350_v63 = vsel %vm538_vm4, %v8349_v45, 0 }
0x26a2   :  { %v8421_v48 = vand.u32 4294901760, %v8350_v63 }
0x26a4   :  { %v8422_v49 = vsub.f32 %v8350_v63, %v8421_v48 }
0x26a6   :  { %v8423_v56 = vand.u32 4294901760, %v8422_v49 }
0x26a8   :  { %v8424_v44 = vsub.f32 %v8422_v49, %v8423_v56 }
0x26aa   :  { %v8425_v57 = vand.u32 4294901760, %v8424_v44 }
0x26ac   :  { %12090 = vmatmul.mubr.f32.vlgmr.msra.gmra.mrb[18].mxu1 %v8425_v57 }
0x26ad   :  { %12869 = vmatpush3.bf16.msra.mxu1 %v14154_v34  ;;  %12100 = vmatprep.mubr.msk.f32.mxu1 %vm13516_vm2, %v13517_v46 }
0x26ae   :  { %12870 = vmatprep.subr.bf16.mxu1 %v13515_v24 }
0x26b1   :  { %12872 = vmatpush3.bf16.msra.mxu1 %v14160_v14 }
0x26b2   :  { %12873 = vmatprep.subr.bf16.mxu1 %v13515_v24 }
0x26b4   :  { %12101 = vmatmul.mubr.f32.vlgmr.msra.gmra.mrb[18].mxu1 %v8421_v48 }
0x26b5   :  { %12875 = vmatpush3.bf16.msra.mxu1 %v14166_v10  ;;  %12111 = vmatprep.mubr.msk.f32.mxu1 %vm13516_vm2, %v13517_v46 }
0x26b6   :  { %12876 = vmatprep.subr.bf16.mxu1 %v13515_v24 }
0x26b9   :  { %12878 = vmatpush3.bf16.msra.mxu1 %v14171_v20 }
0x26ba   :  { %12879 = vmatprep.subr.bf16.mxu1 %v13515_v24 }
0x26bc   :  { %12112 = vmatmul.mubr.f32.vlgmr.msra.gmra.mrb[18].mxu1 %v8422_v49 }
0x26bd   :  { %12881 = vmatpush3.bf16.msra.mxu1 %v14140_v13  ;;  %12122 = vmatprep.mubr.msk.f32.mxu1 %vm13516_vm2, %v13517_v46 }
0x26be   :  { %12882 = vmatprep.subr.bf16.mxu1 %v13515_v24 }
0x26c1   :  { %12884 = vmatpush3.bf16.msra.mxu1 %v14145_v29 }
0x26c2   :  { %12885 = vmatprep.subr.bf16.mxu1 %v13515_v24 }
0x26c4   :  { %12123 = vmatmul.mubr.f32.vlgmr.msra.gmra.mrb[18].mxu1 %v8423_v56 }
0x26c5   :  { %12887 = vmatpush3.bf16.msra.mxu1 %v14188_v35  ;;  %12133 = vmatprep.mubr.msk.f32.mxu1 %vm13516_vm2, %v13517_v46 }
0x26c6   :  { %12888 = vmatprep.subr.bf16.mxu1 %v13515_v24 }
0x26c9   :  { %12890 = vmatpush3.bf16.msra.mxu1 %v14191_v54 }
0x26ca   :  { %12891 = vmatprep.subr.bf16.mxu1 %v13515_v24 }
0x26cc   :  { %12134 = vmatmul.mubr.f32.vlgmr.msra.gmra.mrb[18].mxu1 %v8421_v48 }
0x26cd   :  { %12893 = vmatpush3.bf16.msra.mxu1 %v14140_v13  ;;  %12144 = vmatprep.mubr.msk.f32.mxu1 %vm13516_vm2, %v13517_v46 }
0x26ce   :  { %12894 = vmatprep.subr.bf16.mxu1 %v13515_v24 }
0x26d1   :  { %12896 = vmatpush3.bf16.msra.mxu1 %v14145_v29 }
0x26d2   :  { %12933 = vmatprep.subr.bf16.mxu1 %v13515_v24 }
0x26d4   :  { %12145 = vmatmul.mubr.f32.vlgmr.msra.gmra.mrb[18].mxu1 %v8421_v48 }
0x26d5   :  { %12935 = vmatpush3.bf16.msra.mxu1 %v14140_v13  ;;  %12221 = vmatprep.mubr.msk.f32.mxu1 %vm13516_vm2, %v13517_v46 }
0x26d6   :  { %12936 = vmatprep.subr.bf16.mxu1 %v13515_v24 }
0x26d9   :  { %12938 = vmatpush3.bf16.msra.mxu1 %v14145_v29 }
0x26da   :  { %12939 = vmatprep.subr.bf16.mxu1 %v13515_v24 }
0x27a7   :  { %v8833_v58 = vpop.f32.mrb[18].mxu1 }
0x27a8   :  { %v8838_v59 = vrot.slane %v8833_v58, 3  ;;  %v8839_v60 = vrot.slane %v8833_v58, 4  ;;  %v12146_v62 = vpop.f32.mrb[19].mxu1 }
0x27aa   :  { %v8842_v0 = vadd.f32 %v14265_v55, %v8838_v59  ;;  %v8843_v1 = vadd.f32 %v14263_v38, %v8839_v60 }
0x27ac   :  { %13416 = vtanh.f32 %v8842_v0  ;;  %v10556_v22 = vmul.f32 -1.442695, %v8842_v0  ;;  %v10557_v5 = vmul.f32 -1.442695, %v8843_v1 }
0x27ad   :  { %13418 = vtanh.f32 %v8843_v1 }
0x27ae   :  { %13420 = vpow2.f32 %v10556_v22 }
0x27af   :  { %13422 = vpow2.f32 %v10557_v5 }
0x27b6   :  { %v13417_v2 = vpop.eup %13416 }
0x27b7   :  { %v13419_v32 = vpop.eup %13418  ;;  %8868 = vrot.lane.b32.xlu0 %v13417_v2, %s13518_s0 }
0x27b8   :  { %8870 = vrot.lane.b32.xlu1 %v13419_v32, %s13518_s0  ;;  %v13421_v15 = vpop.eup %13420 }
0x27b9   :  { %v13423_v11 = vpop.eup %13422  ;;  %v8850_v6 = vadd.f32 1.0, %v13421_v15 }
0x27ba   :  { %v8851_v3 = vadd.f32 1.0, %v13423_v11 }
0x27bb   :  { %13424 = vrcp.f32 %v8850_v6 }
0x27bc   :  { %13426 = vrcp.f32 %v8851_v3 }
0x27c5   :  { %v13425_v9 = vpop.eup %13424 }
0x27c6   :  { %v13427_v17 = vpop.eup %13426  ;;  %v8864_v12 = vmul.f32 %v13425_v9, %v8860_v8 }
0x27c7   :  { %v8865_v21 = vmul.f32 %v13427_v17, %v8861_v19 }
0x2829   :  { %v8869_v4 = vpop.permute.xlu0 %8868 }
0x282a   :  { %v8871_v18 = vpop.permute.xlu1 %8870  ;;  %v8874_v23 = vmul.f32 %v13425_v9, %v8869_v4 }
0x282b   :  { %v8875_v7 = vmul.f32 %v13427_v17, %v8871_v18 }
0x282c   :  { %8878 = vrot.lane.b32.xlu0 %v8874_v23, %s13518_s0 }
0x282d   :  { %8880 = vrot.lane.b32.xlu1 %v8875_v7, %s13518_s0 }
0x289e   :  { %v8879_v25 = vpop.permute.xlu0 %8878 }
0x289f   :  { %v8881_v26 = vpop.permute.xlu1 %8880  ;;  %v14548_v27 = vadd.f32 %v8879_v25, %v8864_v12 }
0x28a0   :  { %v14550_v16 = vadd.f32 %v8881_v26, %v8865_v21 }
0x28a1   :  { %13428 = vtanh.f32 %v14548_v27  ;;  %v9415_v6 = vrot.slane %v14548_v27, 7 }
0x28a2   :  { %13430 = vtanh.f32 %v14550_v16  ;;  %v9416_v3 = vrot.slane %v14550_v16, 7 }
0x28ab   :  { %v13429_v28 = vpop.eup %13428 }
0x28ac   :  { %v13431_v30 = vpop.eup %13430  ;;  %8890 = vrot.lane.b32.xlu0 %v13429_v28, %s13518_s0 }
0x28ad   :  { %8892 = vrot.lane.b32.xlu1 %v13431_v30, %s13518_s0 }
0x291e   :  { %v8891_v31 = vpop.permute.xlu0 %8890 }
0x291f   :  { %v8893_v36 = vpop.permute.xlu1 %8892  ;;  %v8896_v47 = vmul.f32 %v13425_v9, %v8891_v31 }
0x2920   :  { %v8897_v50 = vmul.f32 %v13427_v17, %v8893_v36 }
0x2921   :  { %v8900_v51 = vrot.slane %v8896_v47, 5 }
0x2922   :  { %v8901_v52 = vrot.slane %v8897_v50, 4 }
0x2924   :  { %v8902_v53 = vsel %vm1093_vm3, %v8901_v52, %v8900_v51 }
0x2925   :  { %8903 = vrot.lane.b32.xlu0 %v8902_v53, %s13519_s1 }
0x2997   :  { %v8904_v33 = vpop.permute.xlu0 %8903 }
0x2998   :  { %v8905_v37 = vsel %vm538_vm4, %v8904_v33, 0 }
0x2999   :  { %v8976_v39 = vand.u32 4294901760, %v8905_v37 }
0x299b   :  { %v8977_v40 = vsub.f32 %v8905_v37, %v8976_v39 }
0x299d   :  { %v8978_v42 = vand.u32 4294901760, %v8977_v40 }
0x299f   :  { %v8979_v43 = vsub.f32 %v8977_v40, %v8978_v42 }
0x29a1   :  { %v8980_v41 = vand.u32 4294901760, %v8979_v43 }
0x29a3   :  { %12156 = vmatmul.mubr.f32.vlgmr.msra.gmra.mrb[16].mxu0 %v8980_v41 }
0x29a4   :  { %12905 = vmatpush3.bf16.msra.mxu0 %v14154_v34  ;;  %12166 = vmatprep.mubr.msk.f32.mxu0 %vm13516_vm2, %v13517_v46 }
0x29a5   :  { %12906 = vmatprep.subr.bf16.mxu0 %v13515_v24 }
0x29a8   :  { %12908 = vmatpush3.bf16.msra.mxu0 %v14160_v14 }
0x29a9   :  { %12909 = vmatprep.subr.bf16.mxu0 %v13515_v24 }
0x29ab   :  { %12167 = vmatmul.mubr.f32.vlgmr.msra.gmra.mrb[16].mxu0 %v8976_v39 }
0x29ac   :  { %12911 = vmatpush3.bf16.msra.mxu0 %v14166_v10  ;;  %12177 = vmatprep.mubr.msk.f32.mxu0 %vm13516_vm2, %v13517_v46 }
0x29ad   :  { %12912 = vmatprep.subr.bf16.mxu0 %v13515_v24 }
0x29b0   :  { %12914 = vmatpush3.bf16.msra.mxu0 %v14171_v20 }
0x29b1   :  { %12915 = vmatprep.subr.bf16.mxu0 %v13515_v24 }
0x29b3   :  { %12178 = vmatmul.mubr.f32.vlgmr.msra.gmra.mrb[16].mxu0 %v8977_v40 }
0x29b4   :  { %12917 = vmatpush3.bf16.msra.mxu0 %v14140_v13  ;;  %12188 = vmatprep.mubr.msk.f32.mxu0 %vm13516_vm2, %v13517_v46 }
0x29b5   :  { %12918 = vmatprep.subr.bf16.mxu0 %v13515_v24 }
0x29b8   :  { %12920 = vmatpush3.bf16.msra.mxu0 %v14145_v29 }
0x29b9   :  { %12921 = vmatprep.subr.bf16.mxu0 %v13515_v24 }
0x29bb   :  { %12189 = vmatmul.mubr.f32.vlgmr.msra.gmra.mrb[16].mxu0 %v8978_v42 }
0x29bc   :  { %12923 = vmatpush3.bf16.msra.mxu0 %v14188_v35  ;;  %12199 = vmatprep.mubr.msk.f32.mxu0 %vm13516_vm2, %v13517_v46 }
0x29bd   :  { %12924 = vmatprep.subr.bf16.mxu0 %v13515_v24 }
0x29c0   :  { %12926 = vmatpush3.bf16.msra.mxu0 %v14191_v54 }
0x29c1   :  { %12927 = vmatprep.subr.bf16.mxu0 %v13515_v24 }
0x29c3   :  { %12200 = vmatmul.mubr.f32.vlgmr.msra.gmra.mrb[16].mxu0 %v8976_v39 }
0x29c4   :  { %12929 = vmatpush3.bf16.msra.mxu0 %v14140_v13  ;;  %12210 = vmatprep.mubr.msk.f32.mxu0 %vm13516_vm2, %v13517_v46 }
0x29c5   :  { %12930 = vmatprep.subr.bf16.mxu0 %v13515_v24 }
0x29c8   :  { %12932 = vmatpush3.bf16.msra.mxu0 %v14145_v29 }
0x29c9   :  { %12969 = vmatprep.subr.bf16.mxu0 %v13515_v24 }
0x29cb   :  { %12211 = vmatmul.mubr.f32.vlgmr.msra.gmra.mrb[16].mxu0 %v8976_v39 }
0x29cc   :  { %12287 = vmatprep.mubr.msk.f32.mxu0 %vm13516_vm2, %v13517_v46 }
0x2a9e   :  { %v9388_v61 = vpop.f32.mrb[16].mxu0 }
0x2a9f   :  { %v9393_v45 = vrot.slane %v9388_v61, 2  ;;  %v9394_v63 = vrot.slane %v9388_v61, 3  ;;  %v12212_v48 = vpop.f32.mrb[17].mxu0 }
0x2aa1   :  { %v9397_v49 = vadd.f32 %v14265_v55, %v9393_v45  ;;  %v9398_v56 = vadd.f32 %v14263_v38, %v9394_v63 }
0x2aa3   :  { %13432 = vtanh.f32 %v9397_v49  ;;  %v10558_v58 = vmul.f32 -1.442695, %v9397_v49  ;;  %v10559_v59 = vmul.f32 -1.442695, %v9398_v56 }
0x2aa4   :  { %13434 = vtanh.f32 %v9398_v56 }
0x2aa5   :  { %13436 = vpow2.f32 %v10558_v58 }
0x2aa6   :  { %13438 = vpow2.f32 %v10559_v59 }
0x2aad   :  { %v13433_v44 = vpop.eup %13432 }
0x2aae   :  { %v13435_v57 = vpop.eup %13434  ;;  %9423 = vrot.lane.b32.xlu1 %v13433_v44, %s13518_s0 }
0x2aaf   :  { %9425 = vrot.lane.b32.xlu0 %v13435_v57, %s13518_s0  ;;  %v13437_v60 = vpop.eup %13436 }
0x2ab0   :  { %v13439_v62 = vpop.eup %13438  ;;  %v9405_v0 = vadd.f32 1.0, %v13437_v60 }
0x2ab1   :  { %v9406_v1 = vadd.f32 1.0, %v13439_v62 }
0x2ab2   :  { %13440 = vrcp.f32 %v9405_v0  ;;  %v10008_v0 = vld [vmem:[#allocation3 + $0x78] sm:$0xff] }
0x2ab3   :  { %13442 = vrcp.f32 %v9406_v1  ;;  %v10009_v1 = vld [vmem:[#allocation3 + $0x80] sm:$0xff] }
0x2abc   :  { %v13441_v2 = vpop.eup %13440 }
0x2abd   :  { %v13443_v22 = vpop.eup %13442  ;;  %v9419_v9 = vmul.f32 %v13441_v2, %v9415_v6  ;;  %v10011_v6 = vld [vmem:[#allocation3 + $0x90] sm:$0xff] }
0x2abe   :  { %v9420_v4 = vmul.f32 %v13443_v22, %v9416_v3 }
0x2b20   :  { %v9424_v32 = vpop.permute.xlu1 %9423 }
0x2b21   :  { %v9426_v5 = vpop.permute.xlu0 %9425  ;;  %v9429_v15 = vmul.f32 %v13441_v2, %v9424_v32  ;;  %v10030_v32 = vand.u32 4294901760, %v10009_v1 }
0x2b22   :  { %v9430_v11 = vmul.f32 %v13443_v22, %v9426_v5 }
0x2b23   :  { %9433 = vrot.lane.b32.xlu1 %v9429_v15, %s13518_s0  ;;  %v10114_v15 = vsub.f32 %v10009_v1, %v10030_v32 }
0x2b24   :  { %9435 = vrot.lane.b32.xlu0 %v9430_v11, %s13518_s0  ;;  %v10010_v11 = vld [vmem:[#allocation3 + $0x88] sm:$0xff] }
0x2b25   :  { %v10033_v3 = vand.u32 4294901760, %v10010_v11 }
0x2b95   :  { %v9434_v17 = vpop.permute.xlu1 %9433 }
0x2b96   :  { %v9436_v18 = vpop.permute.xlu0 %9435  ;;  %v14599_v23 = vadd.f32 %v9434_v17, %v9419_v9  ;;  %v10036_v9 = vand.u32 4294901760, %v10011_v6  ;;  %v10115_v17 = vand.u32 4294901760, %v10114_v15 }
0x2b97   :  { %v14601_v7 = vadd.f32 %v9436_v18, %v9420_v4 }
0x2b98   :  { %13444 = vtanh.f32 %v14599_v23  ;;  %v9970_v63 = vrot.slane %v14599_v23, 7  ;;  %v12973_v23 = vpack.c.bf16 %v10036_v9, %v10033_v3 }
0x2b99   :  { %13446 = vtanh.f32 %v14601_v7  ;;  %v9971_v48 = vrot.slane %v14601_v7, 7  ;;  %v10121_v7 = vsub.f32 %v10010_v11, %v10033_v3 }
0x2ba2   :  { %v13445_v8 = vpop.eup %13444 }
0x2ba3   :  { %v13447_v19 = vpop.eup %13446  ;;  %9445 = vrot.lane.b32.xlu1 %v13445_v8, %s13518_s0  ;;  %v10128_v8 = vsub.f32 %v10011_v6, %v10036_v9 }
0x2ba4   :  { %9447 = vrot.lane.b32.xlu0 %v13447_v19, %s13518_s0 }
0x2c15   :  { %v9446_v12 = vpop.permute.xlu1 %9445 }
0x2c16   :  { %v9448_v21 = vpop.permute.xlu0 %9447  ;;  %v9451_v25 = vmul.f32 %v13441_v2, %v9446_v12  ;;  %v10027_v2 = vand.u32 4294901760, %v10008_v0 }
0x2c17   :  { %v9452_v26 = vmul.f32 %v13443_v22, %v9448_v21 }
0x2c18   :  { %v9455_v27 = vrot.slane %v9451_v25, 6  ;;  %v14649_v22 = vpack.c.bf16 %v10030_v32, %v10027_v2  ;;  %v10107_v5 = vsub.f32 %v10008_v0, %v10027_v2  ;;  %v10116_v25 = vsub.f32 %v10114_v15, %v10115_v17 }
0x2c19   :  { %v9456_v16 = vrot.slane %v9452_v26, 5 }
0x2c1a   :  { %12971 = vmatpush3.bf16.msra.mxu0 %v14649_v22  ;;  %v10108_v4 = vand.u32 4294901760, %v10107_v5 }
0x2c1b   :  { %v9457_v28 = vsel %vm1093_vm3, %v9456_v16, %v9455_v27  ;;  %12972 = vmatprep.subr.bf16.mxu0 %v13515_v24  ;;  %v10122_v16 = vand.u32 4294901760, %v10121_v7 }
0x2c1c   :  { %9458 = vrot.lane.b32.xlu1 %v9457_v28, %s13519_s1  ;;  %v10109_v19 = vsub.f32 %v10107_v5, %v10108_v4  ;;  %v10129_v28 = vand.u32 4294901760, %v10128_v8 }
0x2c1e   :  { %12974 = vmatpush3.bf16.msra.mxu0 %v12973_v23  ;;  %v10110_v27 = vand.u32 4294901760, %v10109_v19 }
0x2c1f   :  { %12975 = vmatprep.subr.bf16.mxu0 %v13515_v24 }
0x2c8e   :  { %v9459_v30 = vpop.permute.xlu1 %9458 }
0x2c8f   :  { %v9460_v31 = vsel %vm538_vm4, %v9459_v30, 0 }
0x2c90   :  { %v9531_v36 = vand.u32 4294901760, %v9460_v31 }
0x2c92   :  { %v9532_v47 = vsub.f32 %v9460_v31, %v9531_v36  ;;  %v10117_v31 = vand.u32 4294901760, %v10116_v25 }
0x2c94   :  { %v9533_v50 = vand.u32 4294901760, %v9532_v47 }
0x2c96   :  { %v9534_v51 = vsub.f32 %v9532_v47, %v9533_v50 }
0x2c98   :  { %v9535_v52 = vand.u32 4294901760, %v9534_v51  ;;  %v12976_v51 = vpack.c.bf16 %v10117_v31, %v10110_v27 }
0x2c9a   :  { %12222 = vmatmul.mubr.f32.vlgmr.msra.gmra.mrb[20].mxu1 %v9535_v52 }
0x2c9b   :  { %12941 = vmatpush3.bf16.msra.mxu1 %v14154_v34  ;;  %12232 = vmatprep.mubr.msk.f32.mxu1 %vm13516_vm2, %v13517_v46 }
0x2c9c   :  { %12942 = vmatprep.subr.bf16.mxu1 %v13515_v24 }
0x2c9f   :  { %12944 = vmatpush3.bf16.msra.mxu1 %v14160_v14 }
0x2ca0   :  { %12945 = vmatprep.subr.bf16.mxu1 %v13515_v24 }
0x2ca2   :  { %12233 = vmatmul.mubr.f32.vlgmr.msra.gmra.mrb[20].mxu1 %v9531_v36 }
0x2ca3   :  { %12947 = vmatpush3.bf16.msra.mxu1 %v14166_v10  ;;  %12243 = vmatprep.mubr.msk.f32.mxu1 %vm13516_vm2, %v13517_v46 }
0x2ca4   :  { %12948 = vmatprep.subr.bf16.mxu1 %v13515_v24 }
0x2ca7   :  { %12950 = vmatpush3.bf16.msra.mxu1 %v14171_v20 }
0x2ca8   :  { %12951 = vmatprep.subr.bf16.mxu1 %v13515_v24 }
0x2caa   :  { %12244 = vmatmul.mubr.f32.vlgmr.msra.gmra.mrb[20].mxu1 %v9532_v47  ;;  %v10123_v47 = vsub.f32 %v10121_v7, %v10122_v16 }
0x2cab   :  { %12953 = vmatpush3.bf16.msra.mxu1 %v14140_v13  ;;  %12254 = vmatprep.mubr.msk.f32.mxu1 %vm13516_vm2, %v13517_v46 }
0x2cac   :  { %12954 = vmatprep.subr.bf16.mxu1 %v13515_v24 }
0x2caf   :  { %12956 = vmatpush3.bf16.msra.mxu1 %v14145_v29 }
0x2cb0   :  { %12957 = vmatprep.subr.bf16.mxu1 %v13515_v24 }
0x2cb2   :  { %12255 = vmatmul.mubr.f32.vlgmr.msra.gmra.mrb[20].mxu1 %v9533_v50  ;;  %v10130_v50 = vsub.f32 %v10128_v8, %v10129_v28 }
0x2cb3   :  { %12959 = vmatpush3.bf16.msra.mxu1 %v14188_v35  ;;  %12265 = vmatprep.mubr.msk.f32.mxu1 %vm13516_vm2, %v13517_v46 }
0x2cb4   :  { %12960 = vmatprep.subr.bf16.mxu1 %v13515_v24 }
0x2cb7   :  { %12962 = vmatpush3.bf16.msra.mxu1 %v14191_v54 }
0x2cb8   :  { %12963 = vmatprep.subr.bf16.mxu1 %v13515_v24 }
0x2cba   :  { %12266 = vmatmul.mubr.f32.vlgmr.msra.gmra.mrb[20].mxu1 %v9531_v36 }
0x2cbb   :  { %12965 = vmatpush3.bf16.msra.mxu1 %v14140_v13  ;;  %12276 = vmatprep.mubr.msk.f32.mxu1 %vm13516_vm2, %v13517_v46 }
0x2cbc   :  { %12966 = vmatprep.subr.bf16.mxu1 %v13515_v24 }
0x2cbf   :  { %12968 = vmatpush3.bf16.msra.mxu1 %v14145_v29 }
0x2cc2   :  { %12277 = vmatmul.mubr.f32.vlgmr.msra.gmra.mrb[20].mxu1 %v9531_v36 }
0x2d95   :  { %v9943_v34 = vpop.f32.mrb[20].mxu1 }
0x2d96   :  { %v9948_v14 = vrot.slane %v9943_v34, 1  ;;  %v9949_v10 = vrot.slane %v9943_v34, 2  ;;  %v12278_v20 = vpop.f32.mrb[21].mxu1  ;;  %v10124_v34 = vand.u32 4294901760, %v10123_v47 }
0x2d97   :  { %v12982_v20 = vpack.c.bf16 %v10114_v15, %v10107_v5 }
0x2d98   :  { %v9952_v35 = vadd.f32 %v14265_v55, %v9948_v14  ;;  %v9953_v54 = vadd.f32 %v14263_v38, %v9949_v10  ;;  %v10131_v14 = vand.u32 4294901760, %v10130_v50 }
0x2d9a   :  { %13448 = vtanh.f32 %v9952_v35  ;;  %v10560_v33 = vmul.f32 -1.442695, %v9952_v35  ;;  %v10561_v37 = vmul.f32 -1.442695, %v9953_v54  ;;  %v12979_v10 = vpack.c.bf16 %v10131_v14, %v10124_v34 }
0x2d9b   :  { %13450 = vtanh.f32 %v9953_v54  ;;  %v12985_v35 = vpack.c.bf16 %v10128_v8, %v10121_v7  ;;  %v12994_v54 = vpack.c.bf16 %v10115_v17, %v10108_v4 }
0x2d9c   :  { %13452 = vpow2.f32 %v10560_v33 }
0x2d9d   :  { %13454 = vpow2.f32 %v10561_v37 }
0x2da4   :  { %v13449_v53 = vpop.eup %13448 }
0x2da5   :  { %v13451_v13 = vpop.eup %13450  ;;  %9978 = vrot.lane.b32.xlu0 %v13449_v53, %s13518_s0  ;;  %v12997_v53 = vpack.c.bf16 %v10129_v28, %v10122_v16 }
0x2da6   :  { %9980 = vrot.lane.b32.xlu1 %v13451_v13, %s13518_s0  ;;  %v13453_v29 = vpop.eup %13452 }
0x2da7   :  { %v13455_v39 = vpop.eup %13454  ;;  %v9960_v40 = vadd.f32 1.0, %v13453_v29 }
0x2da8   :  { %v9961_v42 = vadd.f32 1.0, %v13455_v39 }
0x2da9   :  { %13456 = vrcp.f32 %v9960_v40 }
0x2daa   :  { %13458 = vrcp.f32 %v9961_v42 }
0x2db3   :  { %v13457_v55 = vpop.eup %13456 }
0x2db4   :  { %v13459_v43 = vpop.eup %13458  ;;  %v9974_v49 = vmul.f32 %v13457_v55, %v9970_v63 }
0x2db5   :  { %v9975_v56 = vmul.f32 %v13459_v43, %v9971_v48 }
0x2e17   :  { %v9979_v38 = vpop.permute.xlu0 %9978 }
0x2e18   :  { %v9981_v41 = vpop.permute.xlu1 %9980  ;;  %v9984_v61 = vmul.f32 %v13457_v55, %v9979_v38 }
0x2e19   :  { %v9985_v45 = vmul.f32 %v13459_v43, %v9981_v41 }
0x2e1a   :  { %9988 = vrot.lane.b32.xlu0 %v9984_v61, %s13518_s0 }
0x2e1b   :  { %9990 = vrot.lane.b32.xlu1 %v9985_v45, %s13518_s0 }
0x2e8c   :  { %v9989_v44 = vpop.permute.xlu0 %9988 }
0x2e8d   :  { %v9991_v57 = vpop.permute.xlu1 %9990  ;;  %v9994_v58 = vadd.f32 %v9989_v44, %v9974_v49 }
0x2e8e   :  { %v9995_v59 = vadd.f32 %v9991_v57, %v9975_v56 }
0x2e8f   :  { %13460 = vtanh.f32 %v9994_v58 }
0x2e90   :  { %13462 = vtanh.f32 %v9995_v59 }
0x2e99   :  { %v13461_v60 = vpop.eup %13460 }
0x2e9a   :  { %v13463_v62 = vpop.eup %13462  ;;  %10000 = vrot.lane.b32.xlu0 %v13461_v60, %s13518_s0 }
0x2e9b   :  { %10002 = vrot.lane.b32.xlu1 %v13463_v62, %s13518_s0 }
0x2f0c   :  { %v10001_v18 = vpop.permute.xlu0 %10000 }
0x2f0d   :  { %v10003_v12 = vpop.permute.xlu1 %10002  ;;  %v10006_v21 = vmul.f32 %v13457_v55, %v10001_v18  ;;  %v10562_v55 = vld [vmem:[#allocation3 + $0x98] ss:$0 sm:$0xff] }
0x2f0e   :  { %v10007_v26 = vmul.f32 %v13459_v43, %v10003_v12 }
0x2f0f   :  { %v10019_v30 = vrot.slane %v10006_v21, 7 }
0x2f10   :  { %v10020_v36 = vrot.slane %v10007_v26, 6 }
0x2f12   :  { %v10021_v52 = vsel %vm1093_vm3, %v10020_v36, %v10019_v30 }
0x2f13   :  { %10022 = vrot.lane.b32.xlu0 %v10021_v52, %s13519_s1 }
0x2f85   :  { %v10023_v13 = vpop.permute.xlu0 %10022 }
0x2f86   :  { %v10024_v33 = vsel %vm538_vm4, %v10023_v13, 0 }
0x2f87   :  { %v10095_v37 = vand.u32 4294901760, %v10024_v33 }
0x2f89   :  { %v10096_v29 = vsub.f32 %v10024_v33, %v10095_v37 }
0x2f8b   :  { %v10097_v39 = vand.u32 4294901760, %v10096_v29 }
0x2f8d   :  { %v10098_v40 = vsub.f32 %v10096_v29, %v10097_v39 }
0x2f8f   :  { %v10099_v42 = vand.u32 4294901760, %v10098_v40 }
0x2f91   :  { %12288 = vmatmul.mubr.f32.vlgmr.msra.gmra.mrb[18].mxu0 %v10099_v42 }
0x2f92   :  { %12977 = vmatpush3.bf16.msra.mxu0 %v12976_v51  ;;  %12298 = vmatprep.mubr.msk.f32.mxu0 %vm13516_vm2, %v13517_v46 }
0x2f93   :  { %12978 = vmatprep.subr.bf16.mxu0 %v13515_v24 }
0x2f96   :  { %12980 = vmatpush3.bf16.msra.mxu0 %v12979_v10 }
0x2f97   :  { %12981 = vmatprep.subr.bf16.mxu0 %v13515_v24 }
0x2f99   :  { %12299 = vmatmul.mubr.f32.vlgmr.msra.gmra.mrb[18].mxu0 %v10095_v37 }
0x2f9a   :  { %12983 = vmatpush3.bf16.msra.mxu0 %v12982_v20  ;;  %12309 = vmatprep.mubr.msk.f32.mxu0 %vm13516_vm2, %v13517_v46 }
0x2f9b   :  { %12984 = vmatprep.subr.bf16.mxu0 %v13515_v24 }
0x2f9e   :  { %12986 = vmatpush3.bf16.msra.mxu0 %v12985_v35 }
0x2f9f   :  { %12987 = vmatprep.subr.bf16.mxu0 %v13515_v24 }
0x2fa1   :  { %12310 = vmatmul.mubr.f32.vlgmr.msra.gmra.mrb[18].mxu0 %v10096_v29 }
0x2fa2   :  { %12989 = vmatpush3.bf16.msra.mxu0 %v14649_v22  ;;  %12320 = vmatprep.mubr.msk.f32.mxu0 %vm13516_vm2, %v13517_v46 }
0x2fa3   :  { %12990 = vmatprep.subr.bf16.mxu0 %v13515_v24 }
0x2fa6   :  { %12992 = vmatpush3.bf16.msra.mxu0 %v12973_v23 }
0x2fa7   :  { %12993 = vmatprep.subr.bf16.mxu0 %v13515_v24 }
0x2fa9   :  { %12321 = vmatmul.mubr.f32.vlgmr.msra.gmra.mrb[18].mxu0 %v10097_v39 }
0x2faa   :  { %12995 = vmatpush3.bf16.msra.mxu0 %v12994_v54  ;;  %12331 = vmatprep.mubr.msk.f32.mxu0 %vm13516_vm2, %v13517_v46 }
0x2fab   :  { %12996 = vmatprep.subr.bf16.mxu0 %v13515_v24 }
0x2fae   :  { %12998 = vmatpush3.bf16.msra.mxu0 %v12997_v53 }
0x2faf   :  { %12999 = vmatprep.subr.bf16.mxu0 %v13515_v24 }
0x2fb1   :  { %12332 = vmatmul.mubr.f32.vlgmr.msra.gmra.mrb[18].mxu0 %v10095_v37 }
0x2fb2   :  { %13001 = vmatpush3.bf16.msra.mxu0 %v14649_v22  ;;  %12342 = vmatprep.mubr.msk.f32.mxu0 %vm13516_vm2, %v13517_v46 }
0x2fb3   :  { %13002 = vmatprep.subr.bf16.mxu0 %v13515_v24 }
0x2fb6   :  { %13004 = vmatpush3.bf16.msra.mxu0 %v12973_v23 }
0x2fb9   :  { %12343 = vmatmul.mubr.f32.vlgmr.msra.gmra.mrb[18].mxu0 %v10095_v37 }
0x308c   :  { %v10507_v38 = vpop.f32.mrb[18].mxu0 }
0x308d   :  { %v13012_v43 = vadd.f32 %v10562_v55, %v10507_v38  ;;  %v12344_v41 = vpop.f32.mrb[19].mxu0 }
0x308f   :  { %10512 = vst.msk [vmem:[#allocation6] sm:$0x3] %vm10511_vm13, %v13012_v43 }
0x3090   :  { %13497 = shalt.err (!%p13494_p12)
}
0x3091   :  { %s13498_s4 = scalar_lea.hbm %s14692_s2, 32 }
0x3092   :  { %p13499_p13 = scmp.ne.s32.totalorder %s14692_s2, %s13498_s4  ;;  %p13502_p0 = scmp.lt.u32.totalorder %s13498_s4, %s14692_s2 }
0x3094   :  { %p13504_p1 = pnand %p13502_p0, %p13499_p13 }
0x3096   :  { %13507 = shalt.err (!%p13504_p1)
}
0x3097   :  { %10522 = dma.vmem_to_hbm [thread:$0]  %s10520_s28, 32, %s14692_s2, [#allocation5]  }
0x3098   :  { %13510 = dma.done.wait [#allocation5], 32  }
0x3099   :  { %13511 = vsyncadd [#allocation5], 4294967264 }
0x309a   :  { %10526 = vsyncpa [#allocation4], 1 }
0x309b   :  { %10527 = vsyncpa [#allocation5], 1 }

</bundles_post_ra>
